<compile_context>
chip_gen: v5e
topology: v5e:2x2
jax: 0.10.0
libtpu: 0.0.40
codegen_flags: <defaults>
</compile_context>

<pallas_src>
import functools
import math

import jax
import jax.numpy as jnp
import numpy as np
from jax.experimental import pallas as pl
from jax.experimental.pallas import tpu as pltpu


def _layernorm(x, g, b, eps=1e-6):
    mu = jnp.mean(x, axis=-1, keepdims=True)
    xc = x - mu
    var = jnp.mean(xc * xc, axis=-1, keepdims=True)
    inv = jax.lax.rsqrt(var + eps)
    return xc * inv * g + b


def encoder_layer_kernel(x_ref,
                         ln1_g_ref, ln1_b_ref,
                         wq_ref, wk_ref, wv_ref, wo_ref,
                         ln2_g_ref, ln2_b_ref,
                         w1_ref, b1_ref, w2_ref, b2_ref,
                         lnf_g_ref, lnf_b_ref,
                         o_ref, *,
                         n_batch, seq_len, head_size, kv_block,
                         emb_scale, apply_final_ln):
    """One full encoder layer for a block of `n_batch` batch elements.

    x_ref tile: (n_batch*seq_len, H) in bf16 (residual stream).  `emb_scale`
    (python float or None) is the pre-encoder embedding scale, folded in only for
    the first layer.  `apply_final_ln` fuses the encoder's final LayerNorm into the
    last layer.  The 1/sqrt(dk) attention scale is pre-folded into wq_ref.
    """
    Bblk, S = n_batch, seq_len
    M, H = x_ref.shape
    dk = H // head_size

    x = x_ref[...].astype(jnp.float32)                       # residual stream, f32
    if emb_scale is not None:
        x = x * emb_scale

    # ---- self-attention block ------------------------------------------------
    y = _layernorm(x, ln1_g_ref[...], ln1_b_ref[...]).astype(jnp.bfloat16)
    # Big, well-shaped (M, H) x (H, H) projections; cast to bf16 as produced so no
    # (M, H) f32 copies of q/k/v stay live.
    q = jnp.dot(y, wq_ref[...], preferred_element_type=jnp.float32).astype(jnp.bfloat16)
    k = jnp.dot(y, wk_ref[...], preferred_element_type=jnp.float32).astype(jnp.bfloat16)
    v = jnp.dot(y, wv_ref[...], preferred_element_type=jnp.float32).astype(jnp.bfloat16)

    # Leading-dim split only (lane dim untouched) -> no relayout.
    q3 = q.reshape(Bblk, S, H)
    k3 = k.reshape(Bblk, S, H)
    v3 = v.reshape(Bblk, S, H)

    n_kv = S // kv_block
    ctx_heads = []
    for h in range(head_size):
        qh = q3[:, :, h * dk:(h + 1) * dk]                    # (Bblk, S, dk) bf16
        m_i = None
        l_i = None
        acc = None
        # Flash-style online softmax over KV chunks (single chunk for short S).
        for c in range(n_kv):
            kh = k3[:, c * kv_block:(c + 1) * kv_block, h * dk:(h + 1) * dk]
            vh = v3[:, c * kv_block:(c + 1) * kv_block, h * dk:(h + 1) * dk]
            s = jnp.einsum('bqd,bkd->bqk', qh, kh,
                           preferred_element_type=jnp.float32)  # (Bblk, S, kv_blk)
            m_c = jnp.max(s, axis=-1, keepdims=True)
            if c == 0:
                m_new = m_c
                e = jnp.exp(s - m_new)
                l_i = jnp.sum(e, axis=-1, keepdims=True)
                acc = jnp.einsum('bqk,bkd->bqd', e.astype(jnp.bfloat16), vh,
                                 preferred_element_type=jnp.float32)
            else:
                m_new = jnp.maximum(m_i, m_c)
                alpha = jnp.exp(m_i - m_new)
                e = jnp.exp(s - m_new)
                l_i = alpha * l_i + jnp.sum(e, axis=-1, keepdims=True)
                acc = alpha * acc + jnp.einsum('bqk,bkd->bqd', e.astype(jnp.bfloat16),
                                               vh, preferred_element_type=jnp.float32)
            m_i = m_new
        # EUP reciprocal (approx) instead of a VPU divide.
        ctx_heads.append(acc * pl.reciprocal(l_i, approx=True))

    # Single lane-concat merges heads; reshape only merges leading dims.
    ctx = jnp.concatenate(ctx_heads, axis=-1).reshape(M, H)   # (M, H) f32
    attn = jnp.dot(ctx.astype(jnp.bfloat16), wo_ref[...],
                   preferred_element_type=jnp.float32)
    x = x + attn                                              # residual (f32)

    # ---- feed-forward block ----------------------------------------------------
    y2 = _layernorm(x, ln2_g_ref[...], ln2_b_ref[...]).astype(jnp.bfloat16)
    h1 = jnp.maximum(jnp.dot(y2, w1_ref[...], preferred_element_type=jnp.float32)
                     + b1_ref[...], 0.0).astype(jnp.bfloat16)
    ffn = jnp.dot(h1, w2_ref[...], preferred_element_type=jnp.float32) + b2_ref[...]
    x = x + ffn                                               # residual (f32)

    if apply_final_ln:
        x = _layernorm(x, lnf_g_ref[...], lnf_b_ref[...])

    o_ref[...] = x.astype(o_ref.dtype)

    # TODO(synk): dropout layers are identity (eval mode); no in-kernel RNG dropout.
    # TODO(synk): no src_mask / key-padding-mask path (module does not use one).
    # TODO(synk): on v7x (64 MiB VMEM), split attention and FFN into two
    #             pallas_calls / K-tile the FFN GEMMs for very large H/F.
    # TODO(synk): cross-pallas_call prefetch of the next layer's weights (P10) to
    #             hide the per-layer weight DMA behind the previous layer's compute.


def _pick_batch_block(batch, seq, target_rows=512):
    """Largest divisor of `batch` giving ~target_rows GEMM rows per grid step,
    capped so the batch grid keeps >=2 steps (v7x has 2 TensorCores)."""
    cap = max(1, -(-target_rows // seq))
    if batch >= 2:
        cap = min(cap, batch // 2)
    cap = max(1, min(cap, batch))
    for bb in range(cap, 0, -1):
        if batch % bb == 0:
            return bb
    return 1
    # TODO(synk): for ragged S (rows not a multiple of the packed sublane tile),
    #             pick bb so rows stays tile-aligned or pad the sequence.


def _pick_kv_block(seq):
    """KV chunk size for the online softmax (full S for short sequences)."""
    if seq <= 512:
        return seq
    for blk in (512, 256, 128, 64):
        if seq % blk == 0:
            return blk
    return seq  # TODO(synk): pad/mask ragged sequence lengths.


def _vmem_limit_bytes():
    """Generation-aware VMEM budget (3/4 of physical capacity as headroom)."""
    cap = 64 * 1024 * 1024
    try:
        cap = int(pltpu.get_tpu_info().vmem_capacity_bytes)
    except Exception:
        pass
    return max(32 * 1024 * 1024, (cap * 3) // 4)


_WEIGHT_SINGLE_BUFFER_OK = None   # probe result for pipeline_mode=pl.Buffered(1)


def encoder_layer_pallas(x2, p, lnf_g, lnf_b, *, batch, seq, head_size,
                         emb_scale, apply_final_ln, out_dtype):
    M, H = x2.shape
    F = p["w1"].shape[1]
    bblk = _pick_batch_block(batch, seq)
    rows = bblk * seq
    grid = (batch // bblk,)
    kv_blk = _pick_kv_block(seq)

    kern = functools.partial(
        encoder_layer_kernel,
        n_batch=bblk, seq_len=seq, head_size=head_size, kv_block=kv_blk,
        emb_scale=emb_scale, apply_final_ln=apply_final_ln)

    operands = (x2,
                p["ln1_g"], p["ln1_b"], p["wq"], p["wk"], p["wv"], p["wo"],
                p["ln2_g"], p["ln2_b"], p["w1"], p["b1"], p["w2"], p["b2"],
                lnf_g, lnf_b)

    def build(weight_mode):
        def wspec(shape):
            # Grid-invariant weight/bias tile: fetched once, held in VMEM.
            if weight_mode is None:
                return pl.BlockSpec(shape, lambda i: (0, 0))
            return pl.BlockSpec(shape, lambda i: (0, 0), pipeline_mode=weight_mode)

        return pl.pallas_call(
            kern,
            out_shape=jax.ShapeDtypeStruct((M, H), out_dtype),
            grid=grid,
            in_specs=[
                pl.BlockSpec((rows, H), lambda i: (i, 0)),   # x (batch-blocked rows)
                wspec((1, H)), wspec((1, H)),                # ln1 gamma / beta
                wspec((H, H)), wspec((H, H)),                # Wq (pre-scaled), Wk
                wspec((H, H)), wspec((H, H)),                # Wv, Wo
                wspec((1, H)), wspec((1, H)),                # ln2 gamma / beta
                wspec((H, F)), wspec((1, F)),                # W1, b1
                wspec((F, H)), wspec((1, H)),                # W2, b2
                wspec((1, H)), wspec((1, H)),                # final LN gamma / beta
            ],
            out_specs=pl.BlockSpec((rows, H), lambda i: (i, 0)),   # lane-dense store
            compiler_params=pltpu.CompilerParams(
                dimension_semantics=("parallel",),
                vmem_limit_bytes=_vmem_limit_bytes()),
        )

    # Single-buffer the grid-invariant weights (saves a full weight copy of VMEM);
    # fall back to the default pipeline mode if this JAX build rejects Buffered(1).
    global _WEIGHT_SINGLE_BUFFER_OK
    if _WEIGHT_SINGLE_BUFFER_OK is not False:
        try:
            out = build(pl.Buffered(1))(*operands)
            _WEIGHT_SINGLE_BUFFER_OK = True
            return out
        except Exception:
            if _WEIGHT_SINGLE_BUFFER_OK is True:
                raise                      # previously worked -> real failure
            _WEIGHT_SINGLE_BUFFER_OK = False
    return build(None)(*operands)


def _prepare_layer_weights(p, att_size):
    """Fold the 1/sqrt(dk) attention scale into Wq (kept in bf16)."""
    # TODO(synk): cache the prepared weights across forward calls in production.
    scale = att_size ** (-0.5)
    q = dict(p)
    q["wq"] = (p["wq"].astype(jnp.float32) * scale).astype(p["wq"].dtype)
    return q


def transformer_forward(x, params, emb_scale, head_size):
    """Full Transformer.encode: x *= sqrt(H); N encoder layers; final LayerNorm."""
    B, S, H = x.shape
    layers = params["layers"]
    assert len(layers) >= 1
    dk = H // head_size
    prepped = [_prepare_layer_weights(p, dk) for p in layers]

    # Residual stream carried in bf16 between layers (halves per-layer HBM traffic).
    x2 = x.reshape(B * S, H).astype(jnp.bfloat16)
    for li, p in enumerate(prepped):
        last = (li == len(prepped) - 1)
        x2 = encoder_layer_pallas(
            x2, p, params["last_g"], params["last_b"],
            batch=B, seq=S, head_size=head_size,
            emb_scale=(emb_scale if li == 0 else None),
            apply_final_ln=last,
            out_dtype=(jnp.float32 if last else jnp.bfloat16))
    return x2.reshape(B, S, H)


# ------------------------------ reference (plain JAX) -------------------------
def ref_forward(x, params, emb_scale, head_size):
    """Mirrors the kernel's numeric path (bf16 matmul operands, f32 accumulate,
    bf16 residual carry between layers, scale folded into Wq)."""
    B, S, H = x.shape
    dk = H // head_size

    def mm(a, w):
        return jnp.dot(a.astype(jnp.bfloat16), w, preferred_element_type=jnp.float32)

    layers = [_prepare_layer_weights(p, dk) for p in params["layers"]]
    x = x.astype(jnp.bfloat16).astype(jnp.float32) * emb_scale
    for li, p in enumerate(layers):
        y = _layernorm(x, p["ln1_g"], p["ln1_b"])
        q = mm(y, p["wq"]).reshape(B, S, head_size, dk)     # scale already folded
        k = mm(y, p["wk"]).reshape(B, S, head_size, dk)
        v = mm(y, p["wv"]).reshape(B, S, head_size, dk)
        qh = q.transpose(0, 2, 1, 3).astype(jnp.bfloat16)
        kh = k.transpose(0, 2, 1, 3).astype(jnp.bfloat16)
        vh = v.transpose(0, 2, 1, 3).astype(jnp.bfloat16)
        s = jnp.einsum('bhqd,bhkd->bhqk', qh, kh, preferred_element_type=jnp.float32)
        a = jax.nn.softmax(s, axis=-1)
        ctx = jnp.einsum('bhqk,bhkd->bhqd', a.astype(jnp.bfloat16), vh,
                         preferred_element_type=jnp.float32)
        ctx = ctx.transpose(0, 2, 1, 3).reshape(B, S, H)
        x = x + mm(ctx, p["wo"])
        y = _layernorm(x, p["ln2_g"], p["ln2_b"])
        h1 = jnp.maximum(mm(y, p["w1"]) + p["b1"], 0.0)
        x = x + mm(h1, p["w2"]) + p["b2"]
        if li < len(layers) - 1:
            x = x.astype(jnp.bfloat16).astype(jnp.float32)
    return _layernorm(x, params["last_g"], params["last_b"])


# ------------------------------ parameter init --------------------------------
def xavier_uniform(key, fan_in, fan_out, dtype=jnp.bfloat16):
    limit = math.sqrt(6.0 / (fan_in + fan_out))
    # stored as (in, out): transposed relative to torch's (out, in); same distribution.
    w = jax.random.uniform(key, (fan_in, fan_out), jnp.float32, -limit, limit)
    return w.astype(dtype)


def init_params(key, n_layers, hidden, filter_size):
    layers = []
    for _ in range(n_layers):
        keys = jax.random.split(key, 7)
        key = keys[0]
        layers.append(dict(
            ln1_g=jnp.ones((1, hidden), jnp.float32),
            ln1_b=jnp.zeros((1, hidden), jnp.float32),
            wq=xavier_uniform(keys[1], hidden, hidden),
            wk=xavier_uniform(keys[2], hidden, hidden),
            wv=xavier_uniform(keys[3], hidden, hidden),
            wo=xavier_uniform(keys[4], hidden, hidden),
            ln2_g=jnp.ones((1, hidden), jnp.float32),
            ln2_b=jnp.zeros((1, hidden), jnp.float32),
            w1=xavier_uniform(keys[5], hidden, filter_size),
            b1=jnp.zeros((1, filter_size), jnp.float32),
            w2=xavier_uniform(keys[6], filter_size, hidden),
            b2=jnp.zeros((1, hidden), jnp.float32),
        ))
    return dict(layers=layers,
                last_g=jnp.ones((1, hidden), jnp.float32),
                last_b=jnp.zeros((1, hidden), jnp.float32))


if __name__ == "__main__":
    B, S, H, FILT, HEADS, N_LAYERS = 2, 16, 128, 256, 8, 2
    emb_scale = float(H ** 0.5)

    root = jax.random.PRNGKey(0)
    k_x, k_p = jax.random.split(root)
    x = jax.random.normal(k_x, (B, S, H), jnp.float32)
    params = init_params(k_p, N_LAYERS, H, FILT)

    out = jax.block_until_ready(transformer_forward(x, params, emb_scale, HEADS))
    ref = jax.block_until_ready(ref_forward(x, params, emb_scale, HEADS))
    np.testing.assert_allclose(np.asarray(out), np.asarray(ref), rtol=2e-2, atol=2e-2)

    print("KERNEL_OK")
</pallas_src>

<mosaic_0001>
module attributes {stable_mosaic.version = 11 : i64} {
  func.func @encoder_layer_kernel(%arg0: i32, %arg1: memref<16x128xbf16, #tpu.memory_space<vmem>>, %arg2: memref<1x128xf32, #tpu.memory_space<vmem>>, %arg3: memref<1x128xf32, #tpu.memory_space<vmem>>, %arg4: memref<128x128xbf16, #tpu.memory_space<vmem>>, %arg5: memref<128x128xbf16, #tpu.memory_space<vmem>>, %arg6: memref<128x128xbf16, #tpu.memory_space<vmem>>, %arg7: memref<128x128xbf16, #tpu.memory_space<vmem>>, %arg8: memref<1x128xf32, #tpu.memory_space<vmem>>, %arg9: memref<1x128xf32, #tpu.memory_space<vmem>>, %arg10: memref<128x256xbf16, #tpu.memory_space<vmem>>, %arg11: memref<1x256xf32, #tpu.memory_space<vmem>>, %arg12: memref<256x128xbf16, #tpu.memory_space<vmem>>, %arg13: memref<1x128xf32, #tpu.memory_space<vmem>>, %arg14: memref<1x128xf32, #tpu.memory_space<vmem>>, %arg15: memref<1x128xf32, #tpu.memory_space<vmem>>, %arg16: memref<16x128xbf16, #tpu.memory_space<vmem>>) attributes {dimension_semantics = [#tpu.dimension_semantics<parallel>], iteration_bounds = array<i64: 2>, scalar_prefetch = 0 : i64, scratch_operands = 0 : i64, tpu.core_type = #tpu.core_type<tc>, window_params = [{transform_indices = @transform_0, window_bounds = array<i64: 16, 128>}, {pipeline_mode = #tpu.pipeline_mode<synchronous>, transform_indices = @transform_1, window_bounds = array<i64: 1, 128>}, {pipeline_mode = #tpu.pipeline_mode<synchronous>, transform_indices = @transform_2, window_bounds = array<i64: 1, 128>}, {pipeline_mode = #tpu.pipeline_mode<synchronous>, transform_indices = @transform_3, window_bounds = array<i64: 128, 128>}, {pipeline_mode = #tpu.pipeline_mode<synchronous>, transform_indices = @transform_4, window_bounds = array<i64: 128, 128>}, {pipeline_mode = #tpu.pipeline_mode<synchronous>, transform_indices = @transform_5, window_bounds = array<i64: 128, 128>}, {pipeline_mode = #tpu.pipeline_mode<synchronous>, transform_indices = @transform_6, window_bounds = array<i64: 128, 128>}, {pipeline_mode = #tpu.pipeline_mode<synchronous>, transform_indices = @transform_7, window_bounds = array<i64: 1, 128>}, {pipeline_mode = #tpu.pipeline_mode<synchronous>, transform_indices = @transform_8, window_bounds = array<i64: 1, 128>}, {pipeline_mode = #tpu.pipeline_mode<synchronous>, transform_indices = @transform_9, window_bounds = array<i64: 128, 256>}, {pipeline_mode = #tpu.pipeline_mode<synchronous>, transform_indices = @transform_10, window_bounds = array<i64: 1, 256>}, {pipeline_mode = #tpu.pipeline_mode<synchronous>, transform_indices = @transform_11, window_bounds = array<i64: 256, 128>}, {pipeline_mode = #tpu.pipeline_mode<synchronous>, transform_indices = @transform_12, window_bounds = array<i64: 1, 128>}, {pipeline_mode = #tpu.pipeline_mode<synchronous>, transform_indices = @transform_13, window_bounds = array<i64: 1, 128>}, {pipeline_mode = #tpu.pipeline_mode<synchronous>, transform_indices = @transform_14, window_bounds = array<i64: 1, 128>}, {transform_indices = @transform_15, window_bounds = array<i64: 16, 128>}]} {
    %c0 = arith.constant 0 : index
    %c0_0 = arith.constant 0 : index
    %0 = vector.load %arg1[%c0, %c0_0] : memref<16x128xbf16, #tpu.memory_space<vmem>>, vector<16x128xbf16>
    %1 = arith.extf %0 : vector<16x128xbf16> to vector<16x128xf32>
    %cst = arith.constant 11.3137083 : f32
    %2 = vector.broadcast %cst : f32 to vector<16x128xf32>
    %3 = arith.mulf %1, %2 : vector<16x128xf32>
    %c0_1 = arith.constant 0 : index
    %c0_2 = arith.constant 0 : index
    %4 = vector.load %arg2[%c0_1, %c0_2] : memref<1x128xf32, #tpu.memory_space<vmem>>, vector<1x128xf32>
    %c0_3 = arith.constant 0 : index
    %c0_4 = arith.constant 0 : index
    %5 = vector.load %arg3[%c0_3, %c0_4] : memref<1x128xf32, #tpu.memory_space<vmem>>, vector<1x128xf32>
    %cst_5 = arith.constant dense<0.000000e+00> : vector<16xf32>
    %6 = vector.multi_reduction <add>, %3, %cst_5 [1] : vector<16x128xf32> to vector<16xf32>
    %7 = vector.shape_cast %6 : vector<16xf32> to vector<16x1xf32>
    %cst_6 = arith.constant 1.280000e+02 : f32
    %8 = vector.broadcast %cst_6 : f32 to vector<16x1xf32>
    %9 = arith.divf %7, %8 : vector<16x1xf32>
    %10 = vector.broadcast %9 : vector<16x1xf32> to vector<16x128xf32>
    %11 = arith.subf %3, %10 : vector<16x128xf32>
    %12 = arith.mulf %11, %11 : vector<16x128xf32>
    %cst_7 = arith.constant dense<0.000000e+00> : vector<16xf32>
    %13 = vector.multi_reduction <add>, %12, %cst_7 [1] : vector<16x128xf32> to vector<16xf32>
    %14 = vector.shape_cast %13 : vector<16xf32> to vector<16x1xf32>
    %cst_8 = arith.constant 1.280000e+02 : f32
    %15 = vector.broadcast %cst_8 : f32 to vector<16x1xf32>
    %16 = arith.divf %14, %15 : vector<16x1xf32>
    %cst_9 = arith.constant 9.99999997E-7 : f32
    %17 = vector.broadcast %cst_9 : f32 to vector<16x1xf32>
    %18 = arith.addf %16, %17 : vector<16x1xf32>
    %19 = math.rsqrt %18 : vector<16x1xf32>
    %20 = vector.broadcast %19 : vector<16x1xf32> to vector<16x128xf32>
    %21 = arith.mulf %11, %20 : vector<16x128xf32>
    %22 = vector.broadcast %4 : vector<1x128xf32> to vector<16x128xf32>
    %23 = arith.mulf %21, %22 : vector<16x128xf32>
    %24 = vector.broadcast %5 : vector<1x128xf32> to vector<16x128xf32>
    %25 = arith.addf %23, %24 : vector<16x128xf32>
    %26 = arith.truncf %25 : vector<16x128xf32> to vector<16x128xbf16>
    %c0_10 = arith.constant 0 : index
    %c0_11 = arith.constant 0 : index
    %27 = vector.load %arg4[%c0_10, %c0_11] : memref<128x128xbf16, #tpu.memory_space<vmem>>, vector<128x128xbf16>
    %cst_12 = arith.constant dense<0.000000e+00> : vector<16x128xf32>
    %28 = tpu.matmul %26, %27, %cst_12 {dimension_numbers = #tpu.dot_dimension_numbers<[1], [0], [0], [1], [0, 0, 1, 1], [], []>} : vector<16x128xbf16>, vector<128x128xbf16>, vector<16x128xf32> -> vector<16x128xf32>
    %29 = arith.truncf %28 : vector<16x128xf32> to vector<16x128xbf16>
    %c0_13 = arith.constant 0 : index
    %c0_14 = arith.constant 0 : index
    %30 = vector.load %arg5[%c0_13, %c0_14] : memref<128x128xbf16, #tpu.memory_space<vmem>>, vector<128x128xbf16>
    %cst_15 = arith.constant dense<0.000000e+00> : vector<16x128xf32>
    %31 = tpu.matmul %26, %30, %cst_15 {dimension_numbers = #tpu.dot_dimension_numbers<[1], [0], [0], [1], [0, 0, 1, 1], [], []>} : vector<16x128xbf16>, vector<128x128xbf16>, vector<16x128xf32> -> vector<16x128xf32>
    %32 = arith.truncf %31 : vector<16x128xf32> to vector<16x128xbf16>
    %c0_16 = arith.constant 0 : index
    %c0_17 = arith.constant 0 : index
    %33 = vector.load %arg6[%c0_16, %c0_17] : memref<128x128xbf16, #tpu.memory_space<vmem>>, vector<128x128xbf16>
    %cst_18 = arith.constant dense<0.000000e+00> : vector<16x128xf32>
    %34 = tpu.matmul %26, %33, %cst_18 {dimension_numbers = #tpu.dot_dimension_numbers<[1], [0], [0], [1], [0, 0, 1, 1], [], []>} : vector<16x128xbf16>, vector<128x128xbf16>, vector<16x128xf32> -> vector<16x128xf32>
    %35 = arith.truncf %34 : vector<16x128xf32> to vector<16x128xbf16>
    %36 = vector.shape_cast %29 : vector<16x128xbf16> to vector<1x16x128xbf16>
    %37 = vector.shape_cast %32 : vector<16x128xbf16> to vector<1x16x128xbf16>
    %38 = vector.shape_cast %35 : vector<16x128xbf16> to vector<1x16x128xbf16>
    %39 = vector.extract_strided_slice %36 {offsets = [0, 0, 0], sizes = [1, 16, 16], strides = [1, 1, 1]} : vector<1x16x128xbf16> to vector<1x16x16xbf16>
    %40 = vector.extract_strided_slice %37 {offsets = [0, 0, 0], sizes = [1, 16, 16], strides = [1, 1, 1]} : vector<1x16x128xbf16> to vector<1x16x16xbf16>
    %41 = vector.extract_strided_slice %38 {offsets = [0, 0, 0], sizes = [1, 16, 16], strides = [1, 1, 1]} : vector<1x16x128xbf16> to vector<1x16x16xbf16>
    "tpu.trace_start"() <{level = 10 : i32, message = "bqd,bkd->bqk"}> : () -> ()
    %cst_19 = arith.constant dense<0.000000e+00> : vector<1x16x16xf32>
    %42 = tpu.matmul %39, %40, %cst_19 {dimension_numbers = #tpu.dot_dimension_numbers<[2], [2], [1], [1], [0, 0, 0, 1, 1, 1], [0], [0]>} : vector<1x16x16xbf16>, vector<1x16x16xbf16>, vector<1x16x16xf32> -> vector<1x16x16xf32>
    "tpu.trace_stop"() : () -> ()
    %cst_20 = arith.constant dense<0xFF800000> : vector<1x16xf32>
    %43 = vector.multi_reduction <maximumf>, %42, %cst_20 [2] : vector<1x16x16xf32> to vector<1x16xf32>
    %44 = vector.shape_cast %43 : vector<1x16xf32> to vector<1x16x1xf32>
    %45 = vector.broadcast %44 : vector<1x16x1xf32> to vector<1x16x16xf32>
    %46 = arith.subf %42, %45 : vector<1x16x16xf32>
    %47 = math.exp %46 : vector<1x16x16xf32>
    %cst_21 = arith.constant dense<0.000000e+00> : vector<1x16xf32>
    %48 = vector.multi_reduction <add>, %47, %cst_21 [2] : vector<1x16x16xf32> to vector<1x16xf32>
    %49 = vector.shape_cast %48 : vector<1x16xf32> to vector<1x16x1xf32>
    %50 = arith.truncf %47 : vector<1x16x16xf32> to vector<1x16x16xbf16>
    "tpu.trace_start"() <{level = 10 : i32, message = "bqk,bkd->bqd"}> : () -> ()
    %cst_22 = arith.constant dense<0.000000e+00> : vector<1x16x16xf32>
    %51 = tpu.matmul %50, %41, %cst_22 {dimension_numbers = #tpu.dot_dimension_numbers<[2], [1], [1], [2], [0, 0, 0, 1, 1, 2], [0], [0]>} : vector<1x16x16xbf16>, vector<1x16x16xbf16>, vector<1x16x16xf32> -> vector<1x16x16xf32>
    "tpu.trace_stop"() : () -> ()
    %52 = tpu.reciprocal %49 {approx = true} : vector<1x16x1xf32> -> vector<1x16x1xf32>
    %53 = vector.broadcast %52 : vector<1x16x1xf32> to vector<1x16x16xf32>
    %54 = arith.mulf %51, %53 : vector<1x16x16xf32>
    %55 = vector.extract_strided_slice %36 {offsets = [0, 0, 16], sizes = [1, 16, 16], strides = [1, 1, 1]} : vector<1x16x128xbf16> to vector<1x16x16xbf16>
    %56 = vector.extract_strided_slice %37 {offsets = [0, 0, 16], sizes = [1, 16, 16], strides = [1, 1, 1]} : vector<1x16x128xbf16> to vector<1x16x16xbf16>
    %57 = vector.extract_strided_slice %38 {offsets = [0, 0, 16], sizes = [1, 16, 16], strides = [1, 1, 1]} : vector<1x16x128xbf16> to vector<1x16x16xbf16>
    "tpu.trace_start"() <{level = 10 : i32, message = "bqd,bkd->bqk"}> : () -> ()
    %cst_23 = arith.constant dense<0.000000e+00> : vector<1x16x16xf32>
    %58 = tpu.matmul %55, %56, %cst_23 {dimension_numbers = #tpu.dot_dimension_numbers<[2], [2], [1], [1], [0, 0, 0, 1, 1, 1], [0], [0]>} : vector<1x16x16xbf16>, vector<1x16x16xbf16>, vector<1x16x16xf32> -> vector<1x16x16xf32>
    "tpu.trace_stop"() : () -> ()
    %cst_24 = arith.constant dense<0xFF800000> : vector<1x16xf32>
    %59 = vector.multi_reduction <maximumf>, %58, %cst_24 [2] : vector<1x16x16xf32> to vector<1x16xf32>
    %60 = vector.shape_cast %59 : vector<1x16xf32> to vector<1x16x1xf32>
    %61 = vector.broadcast %60 : vector<1x16x1xf32> to vector<1x16x16xf32>
    %62 = arith.subf %58, %61 : vector<1x16x16xf32>
    %63 = math.exp %62 : vector<1x16x16xf32>
    %cst_25 = arith.constant dense<0.000000e+00> : vector<1x16xf32>
    %64 = vector.multi_reduction <add>, %63, %cst_25 [2] : vector<1x16x16xf32> to vector<1x16xf32>
    %65 = vector.shape_cast %64 : vector<1x16xf32> to vector<1x16x1xf32>
    %66 = arith.truncf %63 : vector<1x16x16xf32> to vector<1x16x16xbf16>
    "tpu.trace_start"() <{level = 10 : i32, message = "bqk,bkd->bqd"}> : () -> ()
    %cst_26 = arith.constant dense<0.000000e+00> : vector<1x16x16xf32>
    %67 = tpu.matmul %66, %57, %cst_26 {dimension_numbers = #tpu.dot_dimension_numbers<[2], [1], [1], [2], [0, 0, 0, 1, 1, 2], [0], [0]>} : vector<1x16x16xbf16>, vector<1x16x16xbf16>, vector<1x16x16xf32> -> vector<1x16x16xf32>
    "tpu.trace_stop"() : () -> ()
    %68 = tpu.reciprocal %65 {approx = true} : vector<1x16x1xf32> -> vector<1x16x1xf32>
    %69 = vector.broadcast %68 : vector<1x16x1xf32> to vector<1x16x16xf32>
    %70 = arith.mulf %67, %69 : vector<1x16x16xf32>
    %71 = vector.extract_strided_slice %36 {offsets = [0, 0, 32], sizes = [1, 16, 16], strides = [1, 1, 1]} : vector<1x16x128xbf16> to vector<1x16x16xbf16>
    %72 = vector.extract_strided_slice %37 {offsets = [0, 0, 32], sizes = [1, 16, 16], strides = [1, 1, 1]} : vector<1x16x128xbf16> to vector<1x16x16xbf16>
    %73 = vector.extract_strided_slice %38 {offsets = [0, 0, 32], sizes = [1, 16, 16], strides = [1, 1, 1]} : vector<1x16x128xbf16> to vector<1x16x16xbf16>
    "tpu.trace_start"() <{level = 10 : i32, message = "bqd,bkd->bqk"}> : () -> ()
    %cst_27 = arith.constant dense<0.000000e+00> : vector<1x16x16xf32>
    %74 = tpu.matmul %71, %72, %cst_27 {dimension_numbers = #tpu.dot_dimension_numbers<[2], [2], [1], [1], [0, 0, 0, 1, 1, 1], [0], [0]>} : vector<1x16x16xbf16>, vector<1x16x16xbf16>, vector<1x16x16xf32> -> vector<1x16x16xf32>
    "tpu.trace_stop"() : () -> ()
    %cst_28 = arith.constant dense<0xFF800000> : vector<1x16xf32>
    %75 = vector.multi_reduction <maximumf>, %74, %cst_28 [2] : vector<1x16x16xf32> to vector<1x16xf32>
    %76 = vector.shape_cast %75 : vector<1x16xf32> to vector<1x16x1xf32>
    %77 = vector.broadcast %76 : vector<1x16x1xf32> to vector<1x16x16xf32>
    %78 = arith.subf %74, %77 : vector<1x16x16xf32>
    %79 = math.exp %78 : vector<1x16x16xf32>
    %cst_29 = arith.constant dense<0.000000e+00> : vector<1x16xf32>
    %80 = vector.multi_reduction <add>, %79, %cst_29 [2] : vector<1x16x16xf32> to vector<1x16xf32>
    %81 = vector.shape_cast %80 : vector<1x16xf32> to vector<1x16x1xf32>
    %82 = arith.truncf %79 : vector<1x16x16xf32> to vector<1x16x16xbf16>
    "tpu.trace_start"() <{level = 10 : i32, message = "bqk,bkd->bqd"}> : () -> ()
    %cst_30 = arith.constant dense<0.000000e+00> : vector<1x16x16xf32>
    %83 = tpu.matmul %82, %73, %cst_30 {dimension_numbers = #tpu.dot_dimension_numbers<[2], [1], [1], [2], [0, 0, 0, 1, 1, 2], [0], [0]>} : vector<1x16x16xbf16>, vector<1x16x16xbf16>, vector<1x16x16xf32> -> vector<1x16x16xf32>
    "tpu.trace_stop"() : () -> ()
    %84 = tpu.reciprocal %81 {approx = true} : vector<1x16x1xf32> -> vector<1x16x1xf32>
    %85 = vector.broadcast %84 : vector<1x16x1xf32> to vector<1x16x16xf32>
    %86 = arith.mulf %83, %85 : vector<1x16x16xf32>
    %87 = vector.extract_strided_slice %36 {offsets = [0, 0, 48], sizes = [1, 16, 16], strides = [1, 1, 1]} : vector<1x16x128xbf16> to vector<1x16x16xbf16>
    %88 = vector.extract_strided_slice %37 {offsets = [0, 0, 48], sizes = [1, 16, 16], strides = [1, 1, 1]} : vector<1x16x128xbf16> to vector<1x16x16xbf16>
    %89 = vector.extract_strided_slice %38 {offsets = [0, 0, 48], sizes = [1, 16, 16], strides = [1, 1, 1]} : vector<1x16x128xbf16> to vector<1x16x16xbf16>
    "tpu.trace_start"() <{level = 10 : i32, message = "bqd,bkd->bqk"}> : () -> ()
    %cst_31 = arith.constant dense<0.000000e+00> : vector<1x16x16xf32>
    %90 = tpu.matmul %87, %88, %cst_31 {dimension_numbers = #tpu.dot_dimension_numbers<[2], [2], [1], [1], [0, 0, 0, 1, 1, 1], [0], [0]>} : vector<1x16x16xbf16>, vector<1x16x16xbf16>, vector<1x16x16xf32> -> vector<1x16x16xf32>
    "tpu.trace_stop"() : () -> ()
    %cst_32 = arith.constant dense<0xFF800000> : vector<1x16xf32>
    %91 = vector.multi_reduction <maximumf>, %90, %cst_32 [2] : vector<1x16x16xf32> to vector<1x16xf32>
    %92 = vector.shape_cast %91 : vector<1x16xf32> to vector<1x16x1xf32>
    %93 = vector.broadcast %92 : vector<1x16x1xf32> to vector<1x16x16xf32>
    %94 = arith.subf %90, %93 : vector<1x16x16xf32>
    %95 = math.exp %94 : vector<1x16x16xf32>
    %cst_33 = arith.constant dense<0.000000e+00> : vector<1x16xf32>
    %96 = vector.multi_reduction <add>, %95, %cst_33 [2] : vector<1x16x16xf32> to vector<1x16xf32>
    %97 = vector.shape_cast %96 : vector<1x16xf32> to vector<1x16x1xf32>
    %98 = arith.truncf %95 : vector<1x16x16xf32> to vector<1x16x16xbf16>
    "tpu.trace_start"() <{level = 10 : i32, message = "bqk,bkd->bqd"}> : () -> ()
    %cst_34 = arith.constant dense<0.000000e+00> : vector<1x16x16xf32>
    %99 = tpu.matmul %98, %89, %cst_34 {dimension_numbers = #tpu.dot_dimension_numbers<[2], [1], [1], [2], [0, 0, 0, 1, 1, 2], [0], [0]>} : vector<1x16x16xbf16>, vector<1x16x16xbf16>, vector<1x16x16xf32> -> vector<1x16x16xf32>
    "tpu.trace_stop"() : () -> ()
    %100 = tpu.reciprocal %97 {approx = true} : vector<1x16x1xf32> -> vector<1x16x1xf32>
    %101 = vector.broadcast %100 : vector<1x16x1xf32> to vector<1x16x16xf32>
    %102 = arith.mulf %99, %101 : vector<1x16x16xf32>
    %103 = vector.extract_strided_slice %36 {offsets = [0, 0, 64], sizes = [1, 16, 16], strides = [1, 1, 1]} : vector<1x16x128xbf16> to vector<1x16x16xbf16>
    %104 = vector.extract_strided_slice %37 {offsets = [0, 0, 64], sizes = [1, 16, 16], strides = [1, 1, 1]} : vector<1x16x128xbf16> to vector<1x16x16xbf16>
    %105 = vector.extract_strided_slice %38 {offsets = [0, 0, 64], sizes = [1, 16, 16], strides = [1, 1, 1]} : vector<1x16x128xbf16> to vector<1x16x16xbf16>
    "tpu.trace_start"() <{level = 10 : i32, message = "bqd,bkd->bqk"}> : () -> ()
    %cst_35 = arith.constant dense<0.000000e+00> : vector<1x16x16xf32>
    %106 = tpu.matmul %103, %104, %cst_35 {dimension_numbers = #tpu.dot_dimension_numbers<[2], [2], [1], [1], [0, 0, 0, 1, 1, 1], [0], [0]>} : vector<1x16x16xbf16>, vector<1x16x16xbf16>, vector<1x16x16xf32> -> vector<1x16x16xf32>
    "tpu.trace_stop"() : () -> ()
    %cst_36 = arith.constant dense<0xFF800000> : vector<1x16xf32>
    %107 = vector.multi_reduction <maximumf>, %106, %cst_36 [2] : vector<1x16x16xf32> to vector<1x16xf32>
    %108 = vector.shape_cast %107 : vector<1x16xf32> to vector<1x16x1xf32>
    %109 = vector.broadcast %108 : vector<1x16x1xf32> to vector<1x16x16xf32>
    %110 = arith.subf %106, %109 : vector<1x16x16xf32>
    %111 = math.exp %110 : vector<1x16x16xf32>
    %cst_37 = arith.constant dense<0.000000e+00> : vector<1x16xf32>
    %112 = vector.multi_reduction <add>, %111, %cst_37 [2] : vector<1x16x16xf32> to vector<1x16xf32>
    %113 = vector.shape_cast %112 : vector<1x16xf32> to vector<1x16x1xf32>
    %114 = arith.truncf %111 : vector<1x16x16xf32> to vector<1x16x16xbf16>
    "tpu.trace_start"() <{level = 10 : i32, message = "bqk,bkd->bqd"}> : () -> ()
    %cst_38 = arith.constant dense<0.000000e+00> : vector<1x16x16xf32>
    %115 = tpu.matmul %114, %105, %cst_38 {dimension_numbers = #tpu.dot_dimension_numbers<[2], [1], [1], [2], [0, 0, 0, 1, 1, 2], [0], [0]>} : vector<1x16x16xbf16>, vector<1x16x16xbf16>, vector<1x16x16xf32> -> vector<1x16x16xf32>
    "tpu.trace_stop"() : () -> ()
    %116 = tpu.reciprocal %113 {approx = true} : vector<1x16x1xf32> -> vector<1x16x1xf32>
    %117 = vector.broadcast %116 : vector<1x16x1xf32> to vector<1x16x16xf32>
    %118 = arith.mulf %115, %117 : vector<1x16x16xf32>
    %119 = vector.extract_strided_slice %36 {offsets = [0, 0, 80], sizes = [1, 16, 16], strides = [1, 1, 1]} : vector<1x16x128xbf16> to vector<1x16x16xbf16>
    %120 = vector.extract_strided_slice %37 {offsets = [0, 0, 80], sizes = [1, 16, 16], strides = [1, 1, 1]} : vector<1x16x128xbf16> to vector<1x16x16xbf16>
    %121 = vector.extract_strided_slice %38 {offsets = [0, 0, 80], sizes = [1, 16, 16], strides = [1, 1, 1]} : vector<1x16x128xbf16> to vector<1x16x16xbf16>
    "tpu.trace_start"() <{level = 10 : i32, message = "bqd,bkd->bqk"}> : () -> ()
    %cst_39 = arith.constant dense<0.000000e+00> : vector<1x16x16xf32>
    %122 = tpu.matmul %119, %120, %cst_39 {dimension_numbers = #tpu.dot_dimension_numbers<[2], [2], [1], [1], [0, 0, 0, 1, 1, 1], [0], [0]>} : vector<1x16x16xbf16>, vector<1x16x16xbf16>, vector<1x16x16xf32> -> vector<1x16x16xf32>
    "tpu.trace_stop"() : () -> ()
    %cst_40 = arith.constant dense<0xFF800000> : vector<1x16xf32>
    %123 = vector.multi_reduction <maximumf>, %122, %cst_40 [2] : vector<1x16x16xf32> to vector<1x16xf32>
    %124 = vector.shape_cast %123 : vector<1x16xf32> to vector<1x16x1xf32>
    %125 = vector.broadcast %124 : vector<1x16x1xf32> to vector<1x16x16xf32>
    %126 = arith.subf %122, %125 : vector<1x16x16xf32>
    %127 = math.exp %126 : vector<1x16x16xf32>
    %cst_41 = arith.constant dense<0.000000e+00> : vector<1x16xf32>
    %128 = vector.multi_reduction <add>, %127, %cst_41 [2] : vector<1x16x16xf32> to vector<1x16xf32>
    %129 = vector.shape_cast %128 : vector<1x16xf32> to vector<1x16x1xf32>
    %130 = arith.truncf %127 : vector<1x16x16xf32> to vector<1x16x16xbf16>
    "tpu.trace_start"() <{level = 10 : i32, message = "bqk,bkd->bqd"}> : () -> ()
    %cst_42 = arith.constant dense<0.000000e+00> : vector<1x16x16xf32>
    %131 = tpu.matmul %130, %121, %cst_42 {dimension_numbers = #tpu.dot_dimension_numbers<[2], [1], [1], [2], [0, 0, 0, 1, 1, 2], [0], [0]>} : vector<1x16x16xbf16>, vector<1x16x16xbf16>, vector<1x16x16xf32> -> vector<1x16x16xf32>
    "tpu.trace_stop"() : () -> ()
    %132 = tpu.reciprocal %129 {approx = true} : vector<1x16x1xf32> -> vector<1x16x1xf32>
    %133 = vector.broadcast %132 : vector<1x16x1xf32> to vector<1x16x16xf32>
    %134 = arith.mulf %131, %133 : vector<1x16x16xf32>
    %135 = vector.extract_strided_slice %36 {offsets = [0, 0, 96], sizes = [1, 16, 16], strides = [1, 1, 1]} : vector<1x16x128xbf16> to vector<1x16x16xbf16>
    %136 = vector.extract_strided_slice %37 {offsets = [0, 0, 96], sizes = [1, 16, 16], strides = [1, 1, 1]} : vector<1x16x128xbf16> to vector<1x16x16xbf16>
    %137 = vector.extract_strided_slice %38 {offsets = [0, 0, 96], sizes = [1, 16, 16], strides = [1, 1, 1]} : vector<1x16x128xbf16> to vector<1x16x16xbf16>
    "tpu.trace_start"() <{level = 10 : i32, message = "bqd,bkd->bqk"}> : () -> ()
    %cst_43 = arith.constant dense<0.000000e+00> : vector<1x16x16xf32>
    %138 = tpu.matmul %135, %136, %cst_43 {dimension_numbers = #tpu.dot_dimension_numbers<[2], [2], [1], [1], [0, 0, 0, 1, 1, 1], [0], [0]>} : vector<1x16x16xbf16>, vector<1x16x16xbf16>, vector<1x16x16xf32> -> vector<1x16x16xf32>
    "tpu.trace_stop"() : () -> ()
    %cst_44 = arith.constant dense<0xFF800000> : vector<1x16xf32>
    %139 = vector.multi_reduction <maximumf>, %138, %cst_44 [2] : vector<1x16x16xf32> to vector<1x16xf32>
    %140 = vector.shape_cast %139 : vector<1x16xf32> to vector<1x16x1xf32>
    %141 = vector.broadcast %140 : vector<1x16x1xf32> to vector<1x16x16xf32>
    %142 = arith.subf %138, %141 : vector<1x16x16xf32>
    %143 = math.exp %142 : vector<1x16x16xf32>
    %cst_45 = arith.constant dense<0.000000e+00> : vector<1x16xf32>
    %144 = vector.multi_reduction <add>, %143, %cst_45 [2] : vector<1x16x16xf32> to vector<1x16xf32>
    %145 = vector.shape_cast %144 : vector<1x16xf32> to vector<1x16x1xf32>
    %146 = arith.truncf %143 : vector<1x16x16xf32> to vector<1x16x16xbf16>
    "tpu.trace_start"() <{level = 10 : i32, message = "bqk,bkd->bqd"}> : () -> ()
    %cst_46 = arith.constant dense<0.000000e+00> : vector<1x16x16xf32>
    %147 = tpu.matmul %146, %137, %cst_46 {dimension_numbers = #tpu.dot_dimension_numbers<[2], [1], [1], [2], [0, 0, 0, 1, 1, 2], [0], [0]>} : vector<1x16x16xbf16>, vector<1x16x16xbf16>, vector<1x16x16xf32> -> vector<1x16x16xf32>
    "tpu.trace_stop"() : () -> ()
    %148 = tpu.reciprocal %145 {approx = true} : vector<1x16x1xf32> -> vector<1x16x1xf32>
    %149 = vector.broadcast %148 : vector<1x16x1xf32> to vector<1x16x16xf32>
    %150 = arith.mulf %147, %149 : vector<1x16x16xf32>
    %151 = vector.extract_strided_slice %36 {offsets = [0, 0, 112], sizes = [1, 16, 16], strides = [1, 1, 1]} : vector<1x16x128xbf16> to vector<1x16x16xbf16>
    %152 = vector.extract_strided_slice %37 {offsets = [0, 0, 112], sizes = [1, 16, 16], strides = [1, 1, 1]} : vector<1x16x128xbf16> to vector<1x16x16xbf16>
    %153 = vector.extract_strided_slice %38 {offsets = [0, 0, 112], sizes = [1, 16, 16], strides = [1, 1, 1]} : vector<1x16x128xbf16> to vector<1x16x16xbf16>
    "tpu.trace_start"() <{level = 10 : i32, message = "bqd,bkd->bqk"}> : () -> ()
    %cst_47 = arith.constant dense<0.000000e+00> : vector<1x16x16xf32>
    %154 = tpu.matmul %151, %152, %cst_47 {dimension_numbers = #tpu.dot_dimension_numbers<[2], [2], [1], [1], [0, 0, 0, 1, 1, 1], [0], [0]>} : vector<1x16x16xbf16>, vector<1x16x16xbf16>, vector<1x16x16xf32> -> vector<1x16x16xf32>
    "tpu.trace_stop"() : () -> ()
    %cst_48 = arith.constant dense<0xFF800000> : vector<1x16xf32>
    %155 = vector.multi_reduction <maximumf>, %154, %cst_48 [2] : vector<1x16x16xf32> to vector<1x16xf32>
    %156 = vector.shape_cast %155 : vector<1x16xf32> to vector<1x16x1xf32>
    %157 = vector.broadcast %156 : vector<1x16x1xf32> to vector<1x16x16xf32>
    %158 = arith.subf %154, %157 : vector<1x16x16xf32>
    %159 = math.exp %158 : vector<1x16x16xf32>
    %cst_49 = arith.constant dense<0.000000e+00> : vector<1x16xf32>
    %160 = vector.multi_reduction <add>, %159, %cst_49 [2] : vector<1x16x16xf32> to vector<1x16xf32>
    %161 = vector.shape_cast %160 : vector<1x16xf32> to vector<1x16x1xf32>
    %162 = arith.truncf %159 : vector<1x16x16xf32> to vector<1x16x16xbf16>
    "tpu.trace_start"() <{level = 10 : i32, message = "bqk,bkd->bqd"}> : () -> ()
    %cst_50 = arith.constant dense<0.000000e+00> : vector<1x16x16xf32>
    %163 = tpu.matmul %162, %153, %cst_50 {dimension_numbers = #tpu.dot_dimension_numbers<[2], [1], [1], [2], [0, 0, 0, 1, 1, 2], [0], [0]>} : vector<1x16x16xbf16>, vector<1x16x16xbf16>, vector<1x16x16xf32> -> vector<1x16x16xf32>
    "tpu.trace_stop"() : () -> ()
    %164 = tpu.reciprocal %161 {approx = true} : vector<1x16x1xf32> -> vector<1x16x1xf32>
    %165 = vector.broadcast %164 : vector<1x16x1xf32> to vector<1x16x16xf32>
    %166 = arith.mulf %163, %165 : vector<1x16x16xf32>
    %167 = tpu.concatenate %54, %70, %86, %102, %118, %134, %150, %166 in 2 : vector<1x16x16xf32>, vector<1x16x16xf32>, vector<1x16x16xf32>, vector<1x16x16xf32>, vector<1x16x16xf32>, vector<1x16x16xf32>, vector<1x16x16xf32>, vector<1x16x16xf32> -> vector<1x16x128xf32>
    %168 = vector.shape_cast %167 : vector<1x16x128xf32> to vector<16x128xf32>
    %169 = arith.truncf %168 : vector<16x128xf32> to vector<16x128xbf16>
    %c0_51 = arith.constant 0 : index
    %c0_52 = arith.constant 0 : index
    %170 = vector.load %arg7[%c0_51, %c0_52] : memref<128x128xbf16, #tpu.memory_space<vmem>>, vector<128x128xbf16>
    %cst_53 = arith.constant dense<0.000000e+00> : vector<16x128xf32>
    %171 = tpu.matmul %169, %170, %cst_53 {dimension_numbers = #tpu.dot_dimension_numbers<[1], [0], [0], [1], [0, 0, 1, 1], [], []>} : vector<16x128xbf16>, vector<128x128xbf16>, vector<16x128xf32> -> vector<16x128xf32>
    %172 = arith.addf %3, %171 : vector<16x128xf32>
    %c0_54 = arith.constant 0 : index
    %c0_55 = arith.constant 0 : index
    %173 = vector.load %arg8[%c0_54, %c0_55] : memref<1x128xf32, #tpu.memory_space<vmem>>, vector<1x128xf32>
    %c0_56 = arith.constant 0 : index
    %c0_57 = arith.constant 0 : index
    %174 = vector.load %arg9[%c0_56, %c0_57] : memref<1x128xf32, #tpu.memory_space<vmem>>, vector<1x128xf32>
    %cst_58 = arith.constant dense<0.000000e+00> : vector<16xf32>
    %175 = vector.multi_reduction <add>, %172, %cst_58 [1] : vector<16x128xf32> to vector<16xf32>
    %176 = vector.shape_cast %175 : vector<16xf32> to vector<16x1xf32>
    %cst_59 = arith.constant 1.280000e+02 : f32
    %177 = vector.broadcast %cst_59 : f32 to vector<16x1xf32>
    %178 = arith.divf %176, %177 : vector<16x1xf32>
    %179 = vector.broadcast %178 : vector<16x1xf32> to vector<16x128xf32>
    %180 = arith.subf %172, %179 : vector<16x128xf32>
    %181 = arith.mulf %180, %180 : vector<16x128xf32>
    %cst_60 = arith.constant dense<0.000000e+00> : vector<16xf32>
    %182 = vector.multi_reduction <add>, %181, %cst_60 [1] : vector<16x128xf32> to vector<16xf32>
    %183 = vector.shape_cast %182 : vector<16xf32> to vector<16x1xf32>
    %cst_61 = arith.constant 1.280000e+02 : f32
    %184 = vector.broadcast %cst_61 : f32 to vector<16x1xf32>
    %185 = arith.divf %183, %184 : vector<16x1xf32>
    %cst_62 = arith.constant 9.99999997E-7 : f32
    %186 = vector.broadcast %cst_62 : f32 to vector<16x1xf32>
    %187 = arith.addf %185, %186 : vector<16x1xf32>
    %188 = math.rsqrt %187 : vector<16x1xf32>
    %189 = vector.broadcast %188 : vector<16x1xf32> to vector<16x128xf32>
    %190 = arith.mulf %180, %189 : vector<16x128xf32>
    %191 = vector.broadcast %173 : vector<1x128xf32> to vector<16x128xf32>
    %192 = arith.mulf %190, %191 : vector<16x128xf32>
    %193 = vector.broadcast %174 : vector<1x128xf32> to vector<16x128xf32>
    %194 = arith.addf %192, %193 : vector<16x128xf32>
    %195 = arith.truncf %194 : vector<16x128xf32> to vector<16x128xbf16>
    %c0_63 = arith.constant 0 : index
    %c0_64 = arith.constant 0 : index
    %196 = vector.load %arg10[%c0_63, %c0_64] : memref<128x256xbf16, #tpu.memory_space<vmem>>, vector<128x256xbf16>
    %cst_65 = arith.constant dense<0.000000e+00> : vector<16x256xf32>
    %197 = tpu.matmul %195, %196, %cst_65 {dimension_numbers = #tpu.dot_dimension_numbers<[1], [0], [0], [1], [0, 0, 1, 1], [], []>} : vector<16x128xbf16>, vector<128x256xbf16>, vector<16x256xf32> -> vector<16x256xf32>
    %c0_66 = arith.constant 0 : index
    %c0_67 = arith.constant 0 : index
    %198 = vector.load %arg11[%c0_66, %c0_67] : memref<1x256xf32, #tpu.memory_space<vmem>>, vector<1x256xf32>
    %199 = vector.broadcast %198 : vector<1x256xf32> to vector<16x256xf32>
    %200 = arith.addf %197, %199 : vector<16x256xf32>
    %cst_68 = arith.constant 0.000000e+00 : f32
    %201 = vector.broadcast %cst_68 : f32 to vector<16x256xf32>
    %202 = arith.maximumf %200, %201 : vector<16x256xf32>
    %203 = arith.truncf %202 : vector<16x256xf32> to vector<16x256xbf16>
    %c0_69 = arith.constant 0 : index
    %c0_70 = arith.constant 0 : index
    %204 = vector.load %arg12[%c0_69, %c0_70] : memref<256x128xbf16, #tpu.memory_space<vmem>>, vector<256x128xbf16>
    %cst_71 = arith.constant dense<0.000000e+00> : vector<16x128xf32>
    %205 = tpu.matmul %203, %204, %cst_71 {dimension_numbers = #tpu.dot_dimension_numbers<[1], [0], [0], [1], [0, 0, 1, 1], [], []>} : vector<16x256xbf16>, vector<256x128xbf16>, vector<16x128xf32> -> vector<16x128xf32>
    %c0_72 = arith.constant 0 : index
    %c0_73 = arith.constant 0 : index
    %206 = vector.load %arg13[%c0_72, %c0_73] : memref<1x128xf32, #tpu.memory_space<vmem>>, vector<1x128xf32>
    %207 = vector.broadcast %206 : vector<1x128xf32> to vector<16x128xf32>
    %208 = arith.addf %205, %207 : vector<16x128xf32>
    %209 = arith.addf %172, %208 : vector<16x128xf32>
    %210 = arith.truncf %209 : vector<16x128xf32> to vector<16x128xbf16>
    %c0_74 = arith.constant 0 : index
    %c0_75 = arith.constant 0 : index
    %211 = vector.load %arg16[%c0_74, %c0_75] : memref<16x128xbf16, #tpu.memory_space<vmem>>, vector<16x128xbf16>
    tpu.vector_store %arg16[%c0_74, %c0_75], %210 {strides = array<i32>} : memref<16x128xbf16, #tpu.memory_space<vmem>>, vector<16x128xbf16>,
    return
  }
  func.func @transform_0(%arg0: i32) -> (i32, i32) {
    %c0_i32 = arith.constant 0 : i32
    %c0_i32_0 = arith.constant 0 : i32
    return %arg0, %c0_i32 : i32, i32
  }
  func.func @transform_1(%arg0: i32) -> (i32, i32) {
    %c0_i32 = arith.constant 0 : i32
    %c0_i32_0 = arith.constant 0 : i32
    %c0_i32_1 = arith.constant 0 : i32
    return %c0_i32, %c0_i32_0 : i32, i32
  }
  func.func @transform_2(%arg0: i32) -> (i32, i32) {
    %c0_i32 = arith.constant 0 : i32
    %c0_i32_0 = arith.constant 0 : i32
    %c0_i32_1 = arith.constant 0 : i32
    return %c0_i32, %c0_i32_0 : i32, i32
  }
  func.func @transform_3(%arg0: i32) -> (i32, i32) {
    %c0_i32 = arith.constant 0 : i32
    %c0_i32_0 = arith.constant 0 : i32
    %c0_i32_1 = arith.constant 0 : i32
    return %c0_i32, %c0_i32_0 : i32, i32
  }
  func.func @transform_4(%arg0: i32) -> (i32, i32) {
    %c0_i32 = arith.constant 0 : i32
    %c0_i32_0 = arith.constant 0 : i32
    %c0_i32_1 = arith.constant 0 : i32
    return %c0_i32, %c0_i32_0 : i32, i32
  }
  func.func @transform_5(%arg0: i32) -> (i32, i32) {
    %c0_i32 = arith.constant 0 : i32
    %c0_i32_0 = arith.constant 0 : i32
    %c0_i32_1 = arith.constant 0 : i32
    return %c0_i32, %c0_i32_0 : i32, i32
  }
  func.func @transform_6(%arg0: i32) -> (i32, i32) {
    %c0_i32 = arith.constant 0 : i32
    %c0_i32_0 = arith.constant 0 : i32
    %c0_i32_1 = arith.constant 0 : i32
    return %c0_i32, %c0_i32_0 : i32, i32
  }
  func.func @transform_7(%arg0: i32) -> (i32, i32) {
    %c0_i32 = arith.constant 0 : i32
    %c0_i32_0 = arith.constant 0 : i32
    %c0_i32_1 = arith.constant 0 : i32
    return %c0_i32, %c0_i32_0 : i32, i32
  }
  func.func @transform_8(%arg0: i32) -> (i32, i32) {
    %c0_i32 = arith.constant 0 : i32
    %c0_i32_0 = arith.constant 0 : i32
    %c0_i32_1 = arith.constant 0 : i32
    return %c0_i32, %c0_i32_0 : i32, i32
  }
  func.func @transform_9(%arg0: i32) -> (i32, i32) {
    %c0_i32 = arith.constant 0 : i32
    %c0_i32_0 = arith.constant 0 : i32
    %c0_i32_1 = arith.constant 0 : i32
    return %c0_i32, %c0_i32_0 : i32, i32
  }
  func.func @transform_10(%arg0: i32) -> (i32, i32) {
    %c0_i32 = arith.constant 0 : i32
    %c0_i32_0 = arith.constant 0 : i32
    %c0_i32_1 = arith.constant 0 : i32
    return %c0_i32, %c0_i32_0 : i32, i32
  }
  func.func @transform_11(%arg0: i32) -> (i32, i32) {
    %c0_i32 = arith.constant 0 : i32
    %c0_i32_0 = arith.constant 0 : i32
    %c0_i32_1 = arith.constant 0 : i32
    return %c0_i32, %c0_i32_0 : i32, i32
  }
  func.func @transform_12(%arg0: i32) -> (i32, i32) {
    %c0_i32 = arith.constant 0 : i32
    %c0_i32_0 = arith.constant 0 : i32
    %c0_i32_1 = arith.constant 0 : i32
    return %c0_i32, %c0_i32_0 : i32, i32
  }
  func.func @transform_13(%arg0: i32) -> (i32, i32) {
    %c0_i32 = arith.constant 0 : i32
    %c0_i32_0 = arith.constant 0 : i32
    %c0_i32_1 = arith.constant 0 : i32
    return %c0_i32, %c0_i32_0 : i32, i32
  }
  func.func @transform_14(%arg0: i32) -> (i32, i32) {
    %c0_i32 = arith.constant 0 : i32
    %c0_i32_0 = arith.constant 0 : i32
    %c0_i32_1 = arith.constant 0 : i32
    return %c0_i32, %c0_i32_0 : i32, i32
  }
  func.func @transform_15(%arg0: i32) -> (i32, i32) {
    %c0_i32 = arith.constant 0 : i32
    %c0_i32_0 = arith.constant 0 : i32
    return %arg0, %c0_i32 : i32, i32
  }
}

module attributes {stable_mosaic.version = 11 : i64} {
  func.func @encoder_layer_kernel(%arg0: i32, %arg1: memref<16x128xbf16, #tpu.memory_space<vmem>>, %arg2: memref<1x128xf32, #tpu.memory_space<vmem>>, %arg3: memref<1x128xf32, #tpu.memory_space<vmem>>, %arg4: memref<128x128xbf16, #tpu.memory_space<vmem>>, %arg5: memref<128x128xbf16, #tpu.memory_space<vmem>>, %arg6: memref<128x128xbf16, #tpu.memory_space<vmem>>, %arg7: memref<128x128xbf16, #tpu.memory_space<vmem>>, %arg8: memref<1x128xf32, #tpu.memory_space<vmem>>, %arg9: memref<1x128xf32, #tpu.memory_space<vmem>>, %arg10: memref<128x256xbf16, #tpu.memory_space<vmem>>, %arg11: memref<1x256xf32, #tpu.memory_space<vmem>>, %arg12: memref<256x128xbf16, #tpu.memory_space<vmem>>, %arg13: memref<1x128xf32, #tpu.memory_space<vmem>>, %arg14: memref<1x128xf32, #tpu.memory_space<vmem>>, %arg15: memref<1x128xf32, #tpu.memory_space<vmem>>, %arg16: memref<16x128xbf16, #tpu.memory_space<vmem>>) attributes {dimension_semantics = [#tpu.dimension_semantics<parallel>], iteration_bounds = array<i64: 2>, scalar_prefetch = 0 : i64, scratch_operands = 0 : i64, tpu.core_type = #tpu.core_type<tc>, window_params = [{transform_indices = @transform_0, window_bounds = array<i64: 16, 128>}, {pipeline_mode = #tpu.pipeline_mode<synchronous>, transform_indices = @transform_1, window_bounds = array<i64: 1, 128>}, {pipeline_mode = #tpu.pipeline_mode<synchronous>, transform_indices = @transform_2, window_bounds = array<i64: 1, 128>}, {pipeline_mode = #tpu.pipeline_mode<synchronous>, transform_indices = @transform_3, window_bounds = array<i64: 128, 128>}, {pipeline_mode = #tpu.pipeline_mode<synchronous>, transform_indices = @transform_4, window_bounds = array<i64: 128, 128>}, {pipeline_mode = #tpu.pipeline_mode<synchronous>, transform_indices = @transform_5, window_bounds = array<i64: 128, 128>}, {pipeline_mode = #tpu.pipeline_mode<synchronous>, transform_indices = @transform_6, window_bounds = array<i64: 128, 128>}, {pipeline_mode = #tpu.pipeline_mode<synchronous>, transform_indices = @transform_7, window_bounds = array<i64: 1, 128>}, {pipeline_mode = #tpu.pipeline_mode<synchronous>, transform_indices = @transform_8, window_bounds = array<i64: 1, 128>}, {pipeline_mode = #tpu.pipeline_mode<synchronous>, transform_indices = @transform_9, window_bounds = array<i64: 128, 256>}, {pipeline_mode = #tpu.pipeline_mode<synchronous>, transform_indices = @transform_10, window_bounds = array<i64: 1, 256>}, {pipeline_mode = #tpu.pipeline_mode<synchronous>, transform_indices = @transform_11, window_bounds = array<i64: 256, 128>}, {pipeline_mode = #tpu.pipeline_mode<synchronous>, transform_indices = @transform_12, window_bounds = array<i64: 1, 128>}, {pipeline_mode = #tpu.pipeline_mode<synchronous>, transform_indices = @transform_13, window_bounds = array<i64: 1, 128>}, {pipeline_mode = #tpu.pipeline_mode<synchronous>, transform_indices = @transform_14, window_bounds = array<i64: 1, 128>}, {transform_indices = @transform_15, window_bounds = array<i64: 16, 128>}]} {
    %c0 = arith.constant 0 : index
    %c0_0 = arith.constant 0 : index
    %0 = vector.load %arg1[%c0, %c0_0] : memref<16x128xbf16, #tpu.memory_space<vmem>>, vector<16x128xbf16>
    %1 = arith.extf %0 : vector<16x128xbf16> to vector<16x128xf32>
    %cst = arith.constant 11.3137083 : f32
    %2 = vector.broadcast %cst : f32 to vector<16x128xf32>
    %3 = arith.mulf %1, %2 : vector<16x128xf32>
    %c0_1 = arith.constant 0 : index
    %c0_2 = arith.constant 0 : index
    %4 = vector.load %arg2[%c0_1, %c0_2] : memref<1x128xf32, #tpu.memory_space<vmem>>, vector<1x128xf32>
    %c0_3 = arith.constant 0 : index
    %c0_4 = arith.constant 0 : index
    %5 = vector.load %arg3[%c0_3, %c0_4] : memref<1x128xf32, #tpu.memory_space<vmem>>, vector<1x128xf32>
    %cst_5 = arith.constant dense<0.000000e+00> : vector<16xf32>
    %6 = vector.multi_reduction <add>, %3, %cst_5 [1] : vector<16x128xf32> to vector<16xf32>
    %7 = vector.shape_cast %6 : vector<16xf32> to vector<16x1xf32>
    %cst_6 = arith.constant 1.280000e+02 : f32
    %8 = vector.broadcast %cst_6 : f32 to vector<16x1xf32>
    %9 = arith.divf %7, %8 : vector<16x1xf32>
    %10 = vector.broadcast %9 : vector<16x1xf32> to vector<16x128xf32>
    %11 = arith.subf %3, %10 : vector<16x128xf32>
    %12 = arith.mulf %11, %11 : vector<16x128xf32>
    %cst_7 = arith.constant dense<0.000000e+00> : vector<16xf32>
    %13 = vector.multi_reduction <add>, %12, %cst_7 [1] : vector<16x128xf32> to vector<16xf32>
    %14 = vector.shape_cast %13 : vector<16xf32> to vector<16x1xf32>
    %cst_8 = arith.constant 1.280000e+02 : f32
    %15 = vector.broadcast %cst_8 : f32 to vector<16x1xf32>
    %16 = arith.divf %14, %15 : vector<16x1xf32>
    %cst_9 = arith.constant 9.99999997E-7 : f32
    %17 = vector.broadcast %cst_9 : f32 to vector<16x1xf32>
    %18 = arith.addf %16, %17 : vector<16x1xf32>
    %19 = math.rsqrt %18 : vector<16x1xf32>
    %20 = vector.broadcast %19 : vector<16x1xf32> to vector<16x128xf32>
    %21 = arith.mulf %11, %20 : vector<16x128xf32>
    %22 = vector.broadcast %4 : vector<1x128xf32> to vector<16x128xf32>
    %23 = arith.mulf %21, %22 : vector<16x128xf32>
    %24 = vector.broadcast %5 : vector<1x128xf32> to vector<16x128xf32>
    %25 = arith.addf %23, %24 : vector<16x128xf32>
    %26 = arith.truncf %25 : vector<16x128xf32> to vector<16x128xbf16>
    %c0_10 = arith.constant 0 : index
    %c0_11 = arith.constant 0 : index
    %27 = vector.load %arg4[%c0_10, %c0_11] : memref<128x128xbf16, #tpu.memory_space<vmem>>, vector<128x128xbf16>
    %cst_12 = arith.constant dense<0.000000e+00> : vector<16x128xf32>
    %28 = tpu.matmul %26, %27, %cst_12 {dimension_numbers = #tpu.dot_dimension_numbers<[1], [0], [0], [1], [0, 0, 1, 1], [], []>} : vector<16x128xbf16>, vector<128x128xbf16>, vector<16x128xf32> -> vector<16x128xf32>
    %29 = arith.truncf %28 : vector<16x128xf32> to vector<16x128xbf16>
    %c0_13 = arith.constant 0 : index
    %c0_14 = arith.constant 0 : index
    %30 = vector.load %arg5[%c0_13, %c0_14] : memref<128x128xbf16, #tpu.memory_space<vmem>>, vector<128x128xbf16>
    %cst_15 = arith.constant dense<0.000000e+00> : vector<16x128xf32>
    %31 = tpu.matmul %26, %30, %cst_15 {dimension_numbers = #tpu.dot_dimension_numbers<[1], [0], [0], [1], [0, 0, 1, 1], [], []>} : vector<16x128xbf16>, vector<128x128xbf16>, vector<16x128xf32> -> vector<16x128xf32>
    %32 = arith.truncf %31 : vector<16x128xf32> to vector<16x128xbf16>
    %c0_16 = arith.constant 0 : index
    %c0_17 = arith.constant 0 : index
    %33 = vector.load %arg6[%c0_16, %c0_17] : memref<128x128xbf16, #tpu.memory_space<vmem>>, vector<128x128xbf16>
    %cst_18 = arith.constant dense<0.000000e+00> : vector<16x128xf32>
    %34 = tpu.matmul %26, %33, %cst_18 {dimension_numbers = #tpu.dot_dimension_numbers<[1], [0], [0], [1], [0, 0, 1, 1], [], []>} : vector<16x128xbf16>, vector<128x128xbf16>, vector<16x128xf32> -> vector<16x128xf32>
    %35 = arith.truncf %34 : vector<16x128xf32> to vector<16x128xbf16>
    %36 = vector.shape_cast %29 : vector<16x128xbf16> to vector<1x16x128xbf16>
    %37 = vector.shape_cast %32 : vector<16x128xbf16> to vector<1x16x128xbf16>
    %38 = vector.shape_cast %35 : vector<16x128xbf16> to vector<1x16x128xbf16>
    %39 = vector.extract_strided_slice %36 {offsets = [0, 0, 0], sizes = [1, 16, 16], strides = [1, 1, 1]} : vector<1x16x128xbf16> to vector<1x16x16xbf16>
    %40 = vector.extract_strided_slice %37 {offsets = [0, 0, 0], sizes = [1, 16, 16], strides = [1, 1, 1]} : vector<1x16x128xbf16> to vector<1x16x16xbf16>
    %41 = vector.extract_strided_slice %38 {offsets = [0, 0, 0], sizes = [1, 16, 16], strides = [1, 1, 1]} : vector<1x16x128xbf16> to vector<1x16x16xbf16>
    "tpu.trace_start"() <{level = 10 : i32, message = "bqd,bkd->bqk"}> : () -> ()
    %cst_19 = arith.constant dense<0.000000e+00> : vector<1x16x16xf32>
    %42 = tpu.matmul %39, %40, %cst_19 {dimension_numbers = #tpu.dot_dimension_numbers<[2], [2], [1], [1], [0, 0, 0, 1, 1, 1], [0], [0]>} : vector<1x16x16xbf16>, vector<1x16x16xbf16>, vector<1x16x16xf32> -> vector<1x16x16xf32>
    "tpu.trace_stop"() : () -> ()
    %cst_20 = arith.constant dense<0xFF800000> : vector<1x16xf32>
    %43 = vector.multi_reduction <maximumf>, %42, %cst_20 [2] : vector<1x16x16xf32> to vector<1x16xf32>
    %44 = vector.shape_cast %43 : vector<1x16xf32> to vector<1x16x1xf32>
    %45 = vector.broadcast %44 : vector<1x16x1xf32> to vector<1x16x16xf32>
    %46 = arith.subf %42, %45 : vector<1x16x16xf32>
    %47 = math.exp %46 : vector<1x16x16xf32>
    %cst_21 = arith.constant dense<0.000000e+00> : vector<1x16xf32>
    %48 = vector.multi_reduction <add>, %47, %cst_21 [2] : vector<1x16x16xf32> to vector<1x16xf32>
    %49 = vector.shape_cast %48 : vector<1x16xf32> to vector<1x16x1xf32>
    %50 = arith.truncf %47 : vector<1x16x16xf32> to vector<1x16x16xbf16>
    "tpu.trace_start"() <{level = 10 : i32, message = "bqk,bkd->bqd"}> : () -> ()
    %cst_22 = arith.constant dense<0.000000e+00> : vector<1x16x16xf32>
    %51 = tpu.matmul %50, %41, %cst_22 {dimension_numbers = #tpu.dot_dimension_numbers<[2], [1], [1], [2], [0, 0, 0, 1, 1, 2], [0], [0]>} : vector<1x16x16xbf16>, vector<1x16x16xbf16>, vector<1x16x16xf32> -> vector<1x16x16xf32>
    "tpu.trace_stop"() : () -> ()
    %52 = tpu.reciprocal %49 {approx = true} : vector<1x16x1xf32> -> vector<1x16x1xf32>
    %53 = vector.broadcast %52 : vector<1x16x1xf32> to vector<1x16x16xf32>
    %54 = arith.mulf %51, %53 : vector<1x16x16xf32>
    %55 = vector.extract_strided_slice %36 {offsets = [0, 0, 16], sizes = [1, 16, 16], strides = [1, 1, 1]} : vector<1x16x128xbf16> to vector<1x16x16xbf16>
    %56 = vector.extract_strided_slice %37 {offsets = [0, 0, 16], sizes = [1, 16, 16], strides = [1, 1, 1]} : vector<1x16x128xbf16> to vector<1x16x16xbf16>
    %57 = vector.extract_strided_slice %38 {offsets = [0, 0, 16], sizes = [1, 16, 16], strides = [1, 1, 1]} : vector<1x16x128xbf16> to vector<1x16x16xbf16>
    "tpu.trace_start"() <{level = 10 : i32, message = "bqd,bkd->bqk"}> : () -> ()
    %cst_23 = arith.constant dense<0.000000e+00> : vector<1x16x16xf32>
    %58 = tpu.matmul %55, %56, %cst_23 {dimension_numbers = #tpu.dot_dimension_numbers<[2], [2], [1], [1], [0, 0, 0, 1, 1, 1], [0], [0]>} : vector<1x16x16xbf16>, vector<1x16x16xbf16>, vector<1x16x16xf32> -> vector<1x16x16xf32>
    "tpu.trace_stop"() : () -> ()
    %cst_24 = arith.constant dense<0xFF800000> : vector<1x16xf32>
    %59 = vector.multi_reduction <maximumf>, %58, %cst_24 [2] : vector<1x16x16xf32> to vector<1x16xf32>
    %60 = vector.shape_cast %59 : vector<1x16xf32> to vector<1x16x1xf32>
    %61 = vector.broadcast %60 : vector<1x16x1xf32> to vector<1x16x16xf32>
    %62 = arith.subf %58, %61 : vector<1x16x16xf32>
    %63 = math.exp %62 : vector<1x16x16xf32>
    %cst_25 = arith.constant dense<0.000000e+00> : vector<1x16xf32>
    %64 = vector.multi_reduction <add>, %63, %cst_25 [2] : vector<1x16x16xf32> to vector<1x16xf32>
    %65 = vector.shape_cast %64 : vector<1x16xf32> to vector<1x16x1xf32>
    %66 = arith.truncf %63 : vector<1x16x16xf32> to vector<1x16x16xbf16>
    "tpu.trace_start"() <{level = 10 : i32, message = "bqk,bkd->bqd"}> : () -> ()
    %cst_26 = arith.constant dense<0.000000e+00> : vector<1x16x16xf32>
    %67 = tpu.matmul %66, %57, %cst_26 {dimension_numbers = #tpu.dot_dimension_numbers<[2], [1], [1], [2], [0, 0, 0, 1, 1, 2], [0], [0]>} : vector<1x16x16xbf16>, vector<1x16x16xbf16>, vector<1x16x16xf32> -> vector<1x16x16xf32>
    "tpu.trace_stop"() : () -> ()
    %68 = tpu.reciprocal %65 {approx = true} : vector<1x16x1xf32> -> vector<1x16x1xf32>
    %69 = vector.broadcast %68 : vector<1x16x1xf32> to vector<1x16x16xf32>
    %70 = arith.mulf %67, %69 : vector<1x16x16xf32>
    %71 = vector.extract_strided_slice %36 {offsets = [0, 0, 32], sizes = [1, 16, 16], strides = [1, 1, 1]} : vector<1x16x128xbf16> to vector<1x16x16xbf16>
    %72 = vector.extract_strided_slice %37 {offsets = [0, 0, 32], sizes = [1, 16, 16], strides = [1, 1, 1]} : vector<1x16x128xbf16> to vector<1x16x16xbf16>
    %73 = vector.extract_strided_slice %38 {offsets = [0, 0, 32], sizes = [1, 16, 16], strides = [1, 1, 1]} : vector<1x16x128xbf16> to vector<1x16x16xbf16>
    "tpu.trace_start"() <{level = 10 : i32, message = "bqd,bkd->bqk"}> : () -> ()
    %cst_27 = arith.constant dense<0.000000e+00> : vector<1x16x16xf32>
    %74 = tpu.matmul %71, %72, %cst_27 {dimension_numbers = #tpu.dot_dimension_numbers<[2], [2], [1], [1], [0, 0, 0, 1, 1, 1], [0], [0]>} : vector<1x16x16xbf16>, vector<1x16x16xbf16>, vector<1x16x16xf32> -> vector<1x16x16xf32>
    "tpu.trace_stop"() : () -> ()
    %cst_28 = arith.constant dense<0xFF800000> : vector<1x16xf32>
    %75 = vector.multi_reduction <maximumf>, %74, %cst_28 [2] : vector<1x16x16xf32> to vector<1x16xf32>
    %76 = vector.shape_cast %75 : vector<1x16xf32> to vector<1x16x1xf32>
    %77 = vector.broadcast %76 : vector<1x16x1xf32> to vector<1x16x16xf32>
    %78 = arith.subf %74, %77 : vector<1x16x16xf32>
    %79 = math.exp %78 : vector<1x16x16xf32>
    %cst_29 = arith.constant dense<0.000000e+00> : vector<1x16xf32>
    %80 = vector.multi_reduction <add>, %79, %cst_29 [2] : vector<1x16x16xf32> to vector<1x16xf32>
    %81 = vector.shape_cast %80 : vector<1x16xf32> to vector<1x16x1xf32>
    %82 = arith.truncf %79 : vector<1x16x16xf32> to vector<1x16x16xbf16>
    "tpu.trace_start"() <{level = 10 : i32, message = "bqk,bkd->bqd"}> : () -> ()
    %cst_30 = arith.constant dense<0.000000e+00> : vector<1x16x16xf32>
    %83 = tpu.matmul %82, %73, %cst_30 {dimension_numbers = #tpu.dot_dimension_numbers<[2], [1], [1], [2], [0, 0, 0, 1, 1, 2], [0], [0]>} : vector<1x16x16xbf16>, vector<1x16x16xbf16>, vector<1x16x16xf32> -> vector<1x16x16xf32>
    "tpu.trace_stop"() : () -> ()
    %84 = tpu.reciprocal %81 {approx = true} : vector<1x16x1xf32> -> vector<1x16x1xf32>
    %85 = vector.broadcast %84 : vector<1x16x1xf32> to vector<1x16x16xf32>
    %86 = arith.mulf %83, %85 : vector<1x16x16xf32>
    %87 = vector.extract_strided_slice %36 {offsets = [0, 0, 48], sizes = [1, 16, 16], strides = [1, 1, 1]} : vector<1x16x128xbf16> to vector<1x16x16xbf16>
    %88 = vector.extract_strided_slice %37 {offsets = [0, 0, 48], sizes = [1, 16, 16], strides = [1, 1, 1]} : vector<1x16x128xbf16> to vector<1x16x16xbf16>
    %89 = vector.extract_strided_slice %38 {offsets = [0, 0, 48], sizes = [1, 16, 16], strides = [1, 1, 1]} : vector<1x16x128xbf16> to vector<1x16x16xbf16>
    "tpu.trace_start"() <{level = 10 : i32, message = "bqd,bkd->bqk"}> : () -> ()
    %cst_31 = arith.constant dense<0.000000e+00> : vector<1x16x16xf32>
    %90 = tpu.matmul %87, %88, %cst_31 {dimension_numbers = #tpu.dot_dimension_numbers<[2], [2], [1], [1], [0, 0, 0, 1, 1, 1], [0], [0]>} : vector<1x16x16xbf16>, vector<1x16x16xbf16>, vector<1x16x16xf32> -> vector<1x16x16xf32>
    "tpu.trace_stop"() : () -> ()
    %cst_32 = arith.constant dense<0xFF800000> : vector<1x16xf32>
    %91 = vector.multi_reduction <maximumf>, %90, %cst_32 [2] : vector<1x16x16xf32> to vector<1x16xf32>
    %92 = vector.shape_cast %91 : vector<1x16xf32> to vector<1x16x1xf32>
    %93 = vector.broadcast %92 : vector<1x16x1xf32> to vector<1x16x16xf32>
    %94 = arith.subf %90, %93 : vector<1x16x16xf32>
    %95 = math.exp %94 : vector<1x16x16xf32>
    %cst_33 = arith.constant dense<0.000000e+00> : vector<1x16xf32>
    %96 = vector.multi_reduction <add>, %95, %cst_33 [2] : vector<1x16x16xf32> to vector<1x16xf32>
    %97 = vector.shape_cast %96 : vector<1x16xf32> to vector<1x16x1xf32>
    %98 = arith.truncf %95 : vector<1x16x16xf32> to vector<1x16x16xbf16>
    "tpu.trace_start"() <{level = 10 : i32, message = "bqk,bkd->bqd"}> : () -> ()
    %cst_34 = arith.constant dense<0.000000e+00> : vector<1x16x16xf32>
    %99 = tpu.matmul %98, %89, %cst_34 {dimension_numbers = #tpu.dot_dimension_numbers<[2], [1], [1], [2], [0, 0, 0, 1, 1, 2], [0], [0]>} : vector<1x16x16xbf16>, vector<1x16x16xbf16>, vector<1x16x16xf32> -> vector<1x16x16xf32>
    "tpu.trace_stop"() : () -> ()
    %100 = tpu.reciprocal %97 {approx = true} : vector<1x16x1xf32> -> vector<1x16x1xf32>
    %101 = vector.broadcast %100 : vector<1x16x1xf32> to vector<1x16x16xf32>
    %102 = arith.mulf %99, %101 : vector<1x16x16xf32>
    %103 = vector.extract_strided_slice %36 {offsets = [0, 0, 64], sizes = [1, 16, 16], strides = [1, 1, 1]} : vector<1x16x128xbf16> to vector<1x16x16xbf16>
    %104 = vector.extract_strided_slice %37 {offsets = [0, 0, 64], sizes = [1, 16, 16], strides = [1, 1, 1]} : vector<1x16x128xbf16> to vector<1x16x16xbf16>
    %105 = vector.extract_strided_slice %38 {offsets = [0, 0, 64], sizes = [1, 16, 16], strides = [1, 1, 1]} : vector<1x16x128xbf16> to vector<1x16x16xbf16>
    "tpu.trace_start"() <{level = 10 : i32, message = "bqd,bkd->bqk"}> : () -> ()
    %cst_35 = arith.constant dense<0.000000e+00> : vector<1x16x16xf32>
    %106 = tpu.matmul %103, %104, %cst_35 {dimension_numbers = #tpu.dot_dimension_numbers<[2], [2], [1], [1], [0, 0, 0, 1, 1, 1], [0], [0]>} : vector<1x16x16xbf16>, vector<1x16x16xbf16>, vector<1x16x16xf32> -> vector<1x16x16xf32>
    "tpu.trace_stop"() : () -> ()
    %cst_36 = arith.constant dense<0xFF800000> : vector<1x16xf32>
    %107 = vector.multi_reduction <maximumf>, %106, %cst_36 [2] : vector<1x16x16xf32> to vector<1x16xf32>
    %108 = vector.shape_cast %107 : vector<1x16xf32> to vector<1x16x1xf32>
    %109 = vector.broadcast %108 : vector<1x16x1xf32> to vector<1x16x16xf32>
    %110 = arith.subf %106, %109 : vector<1x16x16xf32>
    %111 = math.exp %110 : vector<1x16x16xf32>
    %cst_37 = arith.constant dense<0.000000e+00> : vector<1x16xf32>
    %112 = vector.multi_reduction <add>, %111, %cst_37 [2] : vector<1x16x16xf32> to vector<1x16xf32>
    %113 = vector.shape_cast %112 : vector<1x16xf32> to vector<1x16x1xf32>
    %114 = arith.truncf %111 : vector<1x16x16xf32> to vector<1x16x16xbf16>
    "tpu.trace_start"() <{level = 10 : i32, message = "bqk,bkd->bqd"}> : () -> ()
    %cst_38 = arith.constant dense<0.000000e+00> : vector<1x16x16xf32>
    %115 = tpu.matmul %114, %105, %cst_38 {dimension_numbers = #tpu.dot_dimension_numbers<[2], [1], [1], [2], [0, 0, 0, 1, 1, 2], [0], [0]>} : vector<1x16x16xbf16>, vector<1x16x16xbf16>, vector<1x16x16xf32> -> vector<1x16x16xf32>
    "tpu.trace_stop"() : () -> ()
    %116 = tpu.reciprocal %113 {approx = true} : vector<1x16x1xf32> -> vector<1x16x1xf32>
    %117 = vector.broadcast %116 : vector<1x16x1xf32> to vector<1x16x16xf32>
    %118 = arith.mulf %115, %117 : vector<1x16x16xf32>
    %119 = vector.extract_strided_slice %36 {offsets = [0, 0, 80], sizes = [1, 16, 16], strides = [1, 1, 1]} : vector<1x16x128xbf16> to vector<1x16x16xbf16>
    %120 = vector.extract_strided_slice %37 {offsets = [0, 0, 80], sizes = [1, 16, 16], strides = [1, 1, 1]} : vector<1x16x128xbf16> to vector<1x16x16xbf16>
    %121 = vector.extract_strided_slice %38 {offsets = [0, 0, 80], sizes = [1, 16, 16], strides = [1, 1, 1]} : vector<1x16x128xbf16> to vector<1x16x16xbf16>
    "tpu.trace_start"() <{level = 10 : i32, message = "bqd,bkd->bqk"}> : () -> ()
    %cst_39 = arith.constant dense<0.000000e+00> : vector<1x16x16xf32>
    %122 = tpu.matmul %119, %120, %cst_39 {dimension_numbers = #tpu.dot_dimension_numbers<[2], [2], [1], [1], [0, 0, 0, 1, 1, 1], [0], [0]>} : vector<1x16x16xbf16>, vector<1x16x16xbf16>, vector<1x16x16xf32> -> vector<1x16x16xf32>
    "tpu.trace_stop"() : () -> ()
    %cst_40 = arith.constant dense<0xFF800000> : vector<1x16xf32>
    %123 = vector.multi_reduction <maximumf>, %122, %cst_40 [2] : vector<1x16x16xf32> to vector<1x16xf32>
    %124 = vector.shape_cast %123 : vector<1x16xf32> to vector<1x16x1xf32>
    %125 = vector.broadcast %124 : vector<1x16x1xf32> to vector<1x16x16xf32>
    %126 = arith.subf %122, %125 : vector<1x16x16xf32>
    %127 = math.exp %126 : vector<1x16x16xf32>
    %cst_41 = arith.constant dense<0.000000e+00> : vector<1x16xf32>
    %128 = vector.multi_reduction <add>, %127, %cst_41 [2] : vector<1x16x16xf32> to vector<1x16xf32>
    %129 = vector.shape_cast %128 : vector<1x16xf32> to vector<1x16x1xf32>
    %130 = arith.truncf %127 : vector<1x16x16xf32> to vector<1x16x16xbf16>
    "tpu.trace_start"() <{level = 10 : i32, message = "bqk,bkd->bqd"}> : () -> ()
    %cst_42 = arith.constant dense<0.000000e+00> : vector<1x16x16xf32>
    %131 = tpu.matmul %130, %121, %cst_42 {dimension_numbers = #tpu.dot_dimension_numbers<[2], [1], [1], [2], [0, 0, 0, 1, 1, 2], [0], [0]>} : vector<1x16x16xbf16>, vector<1x16x16xbf16>, vector<1x16x16xf32> -> vector<1x16x16xf32>
    "tpu.trace_stop"() : () -> ()
    %132 = tpu.reciprocal %129 {approx = true} : vector<1x16x1xf32> -> vector<1x16x1xf32>
    %133 = vector.broadcast %132 : vector<1x16x1xf32> to vector<1x16x16xf32>
    %134 = arith.mulf %131, %133 : vector<1x16x16xf32>
    %135 = vector.extract_strided_slice %36 {offsets = [0, 0, 96], sizes = [1, 16, 16], strides = [1, 1, 1]} : vector<1x16x128xbf16> to vector<1x16x16xbf16>
    %136 = vector.extract_strided_slice %37 {offsets = [0, 0, 96], sizes = [1, 16, 16], strides = [1, 1, 1]} : vector<1x16x128xbf16> to vector<1x16x16xbf16>
    %137 = vector.extract_strided_slice %38 {offsets = [0, 0, 96], sizes = [1, 16, 16], strides = [1, 1, 1]} : vector<1x16x128xbf16> to vector<1x16x16xbf16>
    "tpu.trace_start"() <{level = 10 : i32, message = "bqd,bkd->bqk"}> : () -> ()
    %cst_43 = arith.constant dense<0.000000e+00> : vector<1x16x16xf32>
    %138 = tpu.matmul %135, %136, %cst_43 {dimension_numbers = #tpu.dot_dimension_numbers<[2], [2], [1], [1], [0, 0, 0, 1, 1, 1], [0], [0]>} : vector<1x16x16xbf16>, vector<1x16x16xbf16>, vector<1x16x16xf32> -> vector<1x16x16xf32>
    "tpu.trace_stop"() : () -> ()
    %cst_44 = arith.constant dense<0xFF800000> : vector<1x16xf32>
    %139 = vector.multi_reduction <maximumf>, %138, %cst_44 [2] : vector<1x16x16xf32> to vector<1x16xf32>
    %140 = vector.shape_cast %139 : vector<1x16xf32> to vector<1x16x1xf32>
    %141 = vector.broadcast %140 : vector<1x16x1xf32> to vector<1x16x16xf32>
    %142 = arith.subf %138, %141 : vector<1x16x16xf32>
    %143 = math.exp %142 : vector<1x16x16xf32>
    %cst_45 = arith.constant dense<0.000000e+00> : vector<1x16xf32>
    %144 = vector.multi_reduction <add>, %143, %cst_45 [2] : vector<1x16x16xf32> to vector<1x16xf32>
    %145 = vector.shape_cast %144 : vector<1x16xf32> to vector<1x16x1xf32>
    %146 = arith.truncf %143 : vector<1x16x16xf32> to vector<1x16x16xbf16>
    "tpu.trace_start"() <{level = 10 : i32, message = "bqk,bkd->bqd"}> : () -> ()
    %cst_46 = arith.constant dense<0.000000e+00> : vector<1x16x16xf32>
    %147 = tpu.matmul %146, %137, %cst_46 {dimension_numbers = #tpu.dot_dimension_numbers<[2], [1], [1], [2], [0, 0, 0, 1, 1, 2], [0], [0]>} : vector<1x16x16xbf16>, vector<1x16x16xbf16>, vector<1x16x16xf32> -> vector<1x16x16xf32>
    "tpu.trace_stop"() : () -> ()
    %148 = tpu.reciprocal %145 {approx = true} : vector<1x16x1xf32> -> vector<1x16x1xf32>
    %149 = vector.broadcast %148 : vector<1x16x1xf32> to vector<1x16x16xf32>
    %150 = arith.mulf %147, %149 : vector<1x16x16xf32>
    %151 = vector.extract_strided_slice %36 {offsets = [0, 0, 112], sizes = [1, 16, 16], strides = [1, 1, 1]} : vector<1x16x128xbf16> to vector<1x16x16xbf16>
    %152 = vector.extract_strided_slice %37 {offsets = [0, 0, 112], sizes = [1, 16, 16], strides = [1, 1, 1]} : vector<1x16x128xbf16> to vector<1x16x16xbf16>
    %153 = vector.extract_strided_slice %38 {offsets = [0, 0, 112], sizes = [1, 16, 16], strides = [1, 1, 1]} : vector<1x16x128xbf16> to vector<1x16x16xbf16>
    "tpu.trace_start"() <{level = 10 : i32, message = "bqd,bkd->bqk"}> : () -> ()
    %cst_47 = arith.constant dense<0.000000e+00> : vector<1x16x16xf32>
    %154 = tpu.matmul %151, %152, %cst_47 {dimension_numbers = #tpu.dot_dimension_numbers<[2], [2], [1], [1], [0, 0, 0, 1, 1, 1], [0], [0]>} : vector<1x16x16xbf16>, vector<1x16x16xbf16>, vector<1x16x16xf32> -> vector<1x16x16xf32>
    "tpu.trace_stop"() : () -> ()
    %cst_48 = arith.constant dense<0xFF800000> : vector<1x16xf32>
    %155 = vector.multi_reduction <maximumf>, %154, %cst_48 [2] : vector<1x16x16xf32> to vector<1x16xf32>
    %156 = vector.shape_cast %155 : vector<1x16xf32> to vector<1x16x1xf32>
    %157 = vector.broadcast %156 : vector<1x16x1xf32> to vector<1x16x16xf32>
    %158 = arith.subf %154, %157 : vector<1x16x16xf32>
    %159 = math.exp %158 : vector<1x16x16xf32>
    %cst_49 = arith.constant dense<0.000000e+00> : vector<1x16xf32>
    %160 = vector.multi_reduction <add>, %159, %cst_49 [2] : vector<1x16x16xf32> to vector<1x16xf32>
    %161 = vector.shape_cast %160 : vector<1x16xf32> to vector<1x16x1xf32>
    %162 = arith.truncf %159 : vector<1x16x16xf32> to vector<1x16x16xbf16>
    "tpu.trace_start"() <{level = 10 : i32, message = "bqk,bkd->bqd"}> : () -> ()
    %cst_50 = arith.constant dense<0.000000e+00> : vector<1x16x16xf32>
    %163 = tpu.matmul %162, %153, %cst_50 {dimension_numbers = #tpu.dot_dimension_numbers<[2], [1], [1], [2], [0, 0, 0, 1, 1, 2], [0], [0]>} : vector<1x16x16xbf16>, vector<1x16x16xbf16>, vector<1x16x16xf32> -> vector<1x16x16xf32>
    "tpu.trace_stop"() : () -> ()
    %164 = tpu.reciprocal %161 {approx = true} : vector<1x16x1xf32> -> vector<1x16x1xf32>
    %165 = vector.broadcast %164 : vector<1x16x1xf32> to vector<1x16x16xf32>
    %166 = arith.mulf %163, %165 : vector<1x16x16xf32>
    %167 = tpu.concatenate %54, %70, %86, %102, %118, %134, %150, %166 in 2 : vector<1x16x16xf32>, vector<1x16x16xf32>, vector<1x16x16xf32>, vector<1x16x16xf32>, vector<1x16x16xf32>, vector<1x16x16xf32>, vector<1x16x16xf32>, vector<1x16x16xf32> -> vector<1x16x128xf32>
    %168 = vector.shape_cast %167 : vector<1x16x128xf32> to vector<16x128xf32>
    %169 = arith.truncf %168 : vector<16x128xf32> to vector<16x128xbf16>
    %c0_51 = arith.constant 0 : index
    %c0_52 = arith.constant 0 : index
    %170 = vector.load %arg7[%c0_51, %c0_52] : memref<128x128xbf16, #tpu.memory_space<vmem>>, vector<128x128xbf16>
    %cst_53 = arith.constant dense<0.000000e+00> : vector<16x128xf32>
    %171 = tpu.matmul %169, %170, %cst_53 {dimension_numbers = #tpu.dot_dimension_numbers<[1], [0], [0], [1], [0, 0, 1, 1], [], []>} : vector<16x128xbf16>, vector<128x128xbf16>, vector<16x128xf32> -> vector<16x128xf32>
    %172 = arith.addf %3, %171 : vector<16x128xf32>
    %c0_54 = arith.constant 0 : index
    %c0_55 = arith.constant 0 : index
    %173 = vector.load %arg8[%c0_54, %c0_55] : memref<1x128xf32, #tpu.memory_space<vmem>>, vector<1x128xf32>
    %c0_56 = arith.constant 0 : index
    %c0_57 = arith.constant 0 : index
    %174 = vector.load %arg9[%c0_56, %c0_57] : memref<1x128xf32, #tpu.memory_space<vmem>>, vector<1x128xf32>
    %cst_58 = arith.constant dense<0.000000e+00> : vector<16xf32>
    %175 = vector.multi_reduction <add>, %172, %cst_58 [1] : vector<16x128xf32> to vector<16xf32>
    %176 = vector.shape_cast %175 : vector<16xf32> to vector<16x1xf32>
    %cst_59 = arith.constant 1.280000e+02 : f32
    %177 = vector.broadcast %cst_59 : f32 to vector<16x1xf32>
    %178 = arith.divf %176, %177 : vector<16x1xf32>
    %179 = vector.broadcast %178 : vector<16x1xf32> to vector<16x128xf32>
    %180 = arith.subf %172, %179 : vector<16x128xf32>
    %181 = arith.mulf %180, %180 : vector<16x128xf32>
    %cst_60 = arith.constant dense<0.000000e+00> : vector<16xf32>
    %182 = vector.multi_reduction <add>, %181, %cst_60 [1] : vector<16x128xf32> to vector<16xf32>
    %183 = vector.shape_cast %182 : vector<16xf32> to vector<16x1xf32>
    %cst_61 = arith.constant 1.280000e+02 : f32
    %184 = vector.broadcast %cst_61 : f32 to vector<16x1xf32>
    %185 = arith.divf %183, %184 : vector<16x1xf32>
    %cst_62 = arith.constant 9.99999997E-7 : f32
    %186 = vector.broadcast %cst_62 : f32 to vector<16x1xf32>
    %187 = arith.addf %185, %186 : vector<16x1xf32>
    %188 = math.rsqrt %187 : vector<16x1xf32>
    %189 = vector.broadcast %188 : vector<16x1xf32> to vector<16x128xf32>
    %190 = arith.mulf %180, %189 : vector<16x128xf32>
    %191 = vector.broadcast %173 : vector<1x128xf32> to vector<16x128xf32>
    %192 = arith.mulf %190, %191 : vector<16x128xf32>
    %193 = vector.broadcast %174 : vector<1x128xf32> to vector<16x128xf32>
    %194 = arith.addf %192, %193 : vector<16x128xf32>
    %195 = arith.truncf %194 : vector<16x128xf32> to vector<16x128xbf16>
    %c0_63 = arith.constant 0 : index
    %c0_64 = arith.constant 0 : index
    %196 = vector.load %arg10[%c0_63, %c0_64] : memref<128x256xbf16, #tpu.memory_space<vmem>>, vector<128x256xbf16>
    %cst_65 = arith.constant dense<0.000000e+00> : vector<16x256xf32>
    %197 = tpu.matmul %195, %196, %cst_65 {dimension_numbers = #tpu.dot_dimension_numbers<[1], [0], [0], [1], [0, 0, 1, 1], [], []>} : vector<16x128xbf16>, vector<128x256xbf16>, vector<16x256xf32> -> vector<16x256xf32>
    %c0_66 = arith.constant 0 : index
    %c0_67 = arith.constant 0 : index
    %198 = vector.load %arg11[%c0_66, %c0_67] : memref<1x256xf32, #tpu.memory_space<vmem>>, vector<1x256xf32>
    %199 = vector.broadcast %198 : vector<1x256xf32> to vector<16x256xf32>
    %200 = arith.addf %197, %199 : vector<16x256xf32>
    %cst_68 = arith.constant 0.000000e+00 : f32
    %201 = vector.broadcast %cst_68 : f32 to vector<16x256xf32>
    %202 = arith.maximumf %200, %201 : vector<16x256xf32>
    %203 = arith.truncf %202 : vector<16x256xf32> to vector<16x256xbf16>
    %c0_69 = arith.constant 0 : index
    %c0_70 = arith.constant 0 : index
    %204 = vector.load %arg12[%c0_69, %c0_70] : memref<256x128xbf16, #tpu.memory_space<vmem>>, vector<256x128xbf16>
    %cst_71 = arith.constant dense<0.000000e+00> : vector<16x128xf32>
    %205 = tpu.matmul %203, %204, %cst_71 {dimension_numbers = #tpu.dot_dimension_numbers<[1], [0], [0], [1], [0, 0, 1, 1], [], []>} : vector<16x256xbf16>, vector<256x128xbf16>, vector<16x128xf32> -> vector<16x128xf32>
    %c0_72 = arith.constant 0 : index
    %c0_73 = arith.constant 0 : index
    %206 = vector.load %arg13[%c0_72, %c0_73] : memref<1x128xf32, #tpu.memory_space<vmem>>, vector<1x128xf32>
    %207 = vector.broadcast %206 : vector<1x128xf32> to vector<16x128xf32>
    %208 = arith.addf %205, %207 : vector<16x128xf32>
    %209 = arith.addf %172, %208 : vector<16x128xf32>
    %210 = arith.truncf %209 : vector<16x128xf32> to vector<16x128xbf16>
    %c0_74 = arith.constant 0 : index
    %c0_75 = arith.constant 0 : index
    %211 = vector.load %arg16[%c0_74, %c0_75] : memref<16x128xbf16, #tpu.memory_space<vmem>>, vector<16x128xbf16>
    tpu.vector_store %arg16[%c0_74, %c0_75], %210 {strides = array<i32>} : memref<16x128xbf16, #tpu.memory_space<vmem>>, vector<16x128xbf16>,
    return
  }
  func.func @transform_0(%arg0: i32) -> (i32, i32) {
    %c0_i32 = arith.constant 0 : i32
    %c0_i32_0 = arith.constant 0 : i32
    return %arg0, %c0_i32 : i32, i32
  }
  func.func @transform_1(%arg0: i32) -> (i32, i32) {
    %c0_i32 = arith.constant 0 : i32
    %c0_i32_0 = arith.constant 0 : i32
    %c0_i32_1 = arith.constant 0 : i32
    return %c0_i32, %c0_i32_0 : i32, i32
  }
  func.func @transform_2(%arg0: i32) -> (i32, i32) {
    %c0_i32 = arith.constant 0 : i32
    %c0_i32_0 = arith.constant 0 : i32
    %c0_i32_1 = arith.constant 0 : i32
    return %c0_i32, %c0_i32_0 : i32, i32
  }
  func.func @transform_3(%arg0: i32) -> (i32, i32) {
    %c0_i32 = arith.constant 0 : i32
    %c0_i32_0 = arith.constant 0 : i32
    %c0_i32_1 = arith.constant 0 : i32
    return %c0_i32, %c0_i32_0 : i32, i32
  }
  func.func @transform_4(%arg0: i32) -> (i32, i32) {
    %c0_i32 = arith.constant 0 : i32
    %c0_i32_0 = arith.constant 0 : i32
    %c0_i32_1 = arith.constant 0 : i32
    return %c0_i32, %c0_i32_0 : i32, i32
  }
  func.func @transform_5(%arg0: i32) -> (i32, i32) {
    %c0_i32 = arith.constant 0 : i32
    %c0_i32_0 = arith.constant 0 : i32
    %c0_i32_1 = arith.constant 0 : i32
    return %c0_i32, %c0_i32_0 : i32, i32
  }
  func.func @transform_6(%arg0: i32) -> (i32, i32) {
    %c0_i32 = arith.constant 0 : i32
    %c0_i32_0 = arith.constant 0 : i32
    %c0_i32_1 = arith.constant 0 : i32
    return %c0_i32, %c0_i32_0 : i32, i32
  }
  func.func @transform_7(%arg0: i32) -> (i32, i32) {
    %c0_i32 = arith.constant 0 : i32
    %c0_i32_0 = arith.constant 0 : i32
    %c0_i32_1 = arith.constant 0 : i32
    return %c0_i32, %c0_i32_0 : i32, i32
  }
  func.func @transform_8(%arg0: i32) -> (i32, i32) {
    %c0_i32 = arith.constant 0 : i32
    %c0_i32_0 = arith.constant 0 : i32
    %c0_i32_1 = arith.constant 0 : i32
    return %c0_i32, %c0_i32_0 : i32, i32
  }
  func.func @transform_9(%arg0: i32) -> (i32, i32) {
    %c0_i32 = arith.constant 0 : i32
    %c0_i32_0 = arith.constant 0 : i32
    %c0_i32_1 = arith.constant 0 : i32
    return %c0_i32, %c0_i32_0 : i32, i32
  }
  func.func @transform_10(%arg0: i32) -> (i32, i32) {
    %c0_i32 = arith.constant 0 : i32
    %c0_i32_0 = arith.constant 0 : i32
    %c0_i32_1 = arith.constant 0 : i32
    return %c0_i32, %c0_i32_0 : i32, i32
  }
  func.func @transform_11(%arg0: i32) -> (i32, i32) {
    %c0_i32 = arith.constant 0 : i32
    %c0_i32_0 = arith.constant 0 : i32
    %c0_i32_1 = arith.constant 0 : i32
    return %c0_i32, %c0_i32_0 : i32, i32
  }
  func.func @transform_12(%arg0: i32) -> (i32, i32) {
    %c0_i32 = arith.constant 0 : i32
    %c0_i32_0 = arith.constant 0 : i32
    %c0_i32_1 = arith.constant 0 : i32
    return %c0_i32, %c0_i32_0 : i32, i32
  }
  func.func @transform_13(%arg0: i32) -> (i32, i32) {
    %c0_i32 = arith.constant 0 : i32
    %c0_i32_0 = arith.constant 0 : i32
    %c0_i32_1 = arith.constant 0 : i32
    return %c0_i32, %c0_i32_0 : i32, i32
  }
  func.func @transform_14(%arg0: i32) -> (i32, i32) {
    %c0_i32 = arith.constant 0 : i32
    %c0_i32_0 = arith.constant 0 : i32
    %c0_i32_1 = arith.constant 0 : i32
    return %c0_i32, %c0_i32_0 : i32, i32
  }
  func.func @transform_15(%arg0: i32) -> (i32, i32) {
    %c0_i32 = arith.constant 0 : i32
    %c0_i32_0 = arith.constant 0 : i32
    return %arg0, %c0_i32 : i32, i32
  }
}

</mosaic_0001>

<bundles_post_ra>
// kernel: tpu_custom_call.1
= control target key start
LH: loop header
LB: loop body
LE: loop exit
PB: predicated region body
PF: predicated region fallthrough
CT: control target
= control target key end

     0   :  { %s3690_s0 = inlined_call_operand.hbm [shape: bf16[32,128], index: 0, kind: input, shape index: {}]   ;;  %s3691_s1 = inlined_call_operand.hbm [shape: f32[1,128], index: 1, kind: input, shape index: {}]   ;;  %s3692_s2 = inlined_call_operand.vmem [shape: f32[1,128], index: 2, kind: input, shape index: {}]   ;;  %s3693_s3 = inlined_call_operand.hbm [shape: bf16[128,128], index: 3, kind: input, shape index: {}]   ;;  %s3694_s4 = inlined_call_operand.hbm [shape: bf16[128,128], index: 4, kind: input, shape index: {}]   ;;  %s3695_s5 = inlined_call_operand.hbm [shape: bf16[128,128], index: 5, kind: input, shape index: {}]   ;;  %s3696_s6 = inlined_call_operand.hbm [shape: bf16[128,128], index: 6, kind: input, shape index: {}]   ;;  %s3697_s7 = inlined_call_operand.vmem [shape: f32[1,128], index: 7, kind: input, shape index: {}]   ;;  %s3698_s8 = inlined_call_operand.vmem [shape: f32[1,128], index: 8, kind: input, shape index: {}]   ;;  %s3699_s9 = inlined_call_operand.hbm [shape: bf16[128,256], index: 9, kind: input, shape index: {}]   ;;  %s3700_s10 = inlined_call_operand.vmem [shape: f32[1,256], index: 10, kind: input, shape index: {}]   ;;  %s3701_s11 = inlined_call_operand.hbm [shape: bf16[256,128], index: 11, kind: input, shape index: {}]   ;;  %s3702_s12 = inlined_call_operand.vmem [shape: f32[1,128], index: 12, kind: input, shape index: {}]   ;;  %s3703_s13 = inlined_call_operand.vmem [shape: f32[1,128], index: 13, kind: input, shape index: {}]   ;;  %s3704_s14 = inlined_call_operand.vmem [shape: f32[1,128], index: 14, kind: input, shape index: {}]   ;;  %s3705_s15 = inlined_call_operand.hbm [shape: bf16[32,128], index: 15, kind: output, shape index: {}]  }
   0x1   :  { %3709 = sst [smem:[#allocation23_spill]] %s3691_s1 }
   0x2   :  { %3710 = sst [smem:[#allocation24_spill]] %s3693_s3 }
   0x3   :  { %3711 = sst [smem:[#allocation25_spill]] %s3694_s4 }
   0x4   :  { %3712 = sst [smem:[#allocation26_spill]] %s3695_s5 }
   0x5   :  { %3713 = sst [smem:[#allocation27_spill]] %s3696_s6 }
   0x6   :  { %3714 = sst [smem:[#allocation28_spill]] %s3699_s9 }
   0x7   :  { %3715 = sst [smem:[#allocation29_spill]] %s3705_s15 }
   0x8   :  { %20 = vsyncpa [#allocation3], 0 }
   0x9   :  { %22 = vsyncpa [#allocation3 + $0x1], 0 }
   0xa   :  { %23 = vsyncpa [#allocation6], 0 }
   0xb   :  { %24 = vsyncpa [#allocation9], 0 }
   0xc   :  { %25 = vsyncpa [#allocation12], 0 }
   0xd   :  { %26 = vsyncpa [#allocation15], 0 }
   0xe   :  { %27 = vsyncpa [#allocation4], 0 }
   0xf   :  { %29 = vsyncpa [#allocation4 + $0x1], 0  ;;  %s3243_s18 = smov 0   ;;  %s3245_s19 = smov 0  }
  0x10   :  { %s3247_s20 = smov 0   ;;  %s3249_s13 = smov 0  }
  0x11 LB: > { %s3716_s1 = sld [smem:[#allocation23_spill]]  ;;  %s3267_s23 = sadd.s32 4294967295, %s3141_s13   ;;  %s3141_s13 = sphi %s3249_s13, %s3735_s13   ;;  %s3137_s20 = sphi %s3247_s20, %s3734_s20   ;;  %s3133_s19 = sphi %s3245_s19, %s3733_s19   ;;  %s3129_s18 = sphi %s3243_s18, %s3732_s18  }
  0x12   : > { %p2201_p0 = scmp.ge.s32.totalorder %s3141_s13, 1  ;;  %p56_p1 = scmp.eq.s32.totalorder %s3267_s23, 0 }
  0x13   : > { %p386_p2 = scmp.lt.s32.totalorder %s3141_s13, 3  ;;  %s3143_s25 = smov [#allocation5]  }
  0x14   : > { %s400_s26 = sshll.u32 %s3143_s25, 4  ;;  %s3718_s4 = sld [smem:[#allocation25_spill]]  ;;  %s401_s26 = int_to_ptr.vmem [resolvable:$true] %s400_s26 }
  0x15   : > { %p3272_p3 = pnand %p2201_p0, %p386_p2  ;;  %s3720_s6 = sld [smem:[#allocation27_spill]] }
  0x16   : > { %s3144_s21 = smov [#allocation8]   ;;  %s3707_s27 = smov 64  }
  0x17   : > { %s398_s22 = sshll.u32 %s3716_s1, 4  ;;  %p2607_p5 = pneg %p3272_p3  ;;  %s399_s22 = int_to_ptr.hbm [resolvable:$true] %s398_s22 }
  0x18   : > { %s428_s25 = sshll.u32 %s3144_s21, 4  ;;  %s3708_s28 = smov 4   ;;  %s429_s25 = int_to_ptr.vmem [resolvable:$true] %s428_s25 }
  0x19   : > { %p3284_p6 = pnand %p2607_p5, %p56_p1  ;;  %s3721_s3 = sld [smem:[#allocation24_spill]] }
  0x1a   : > { %s426_s29 = sshll.u32 %s3718_s4, 4  ;;  %s3147_s16 = smov [#allocation11]   ;;  %s427_s29 = int_to_ptr.hbm [resolvable:$true] %s426_s29 }
  0x1b   : > { %s454_s14 = sshll.u32 %s3720_s6, 4  ;;  %s456_s17 = sshll.u32 %s3147_s16, 4  ;;  %s455_s14 = int_to_ptr.hbm [resolvable:$true] %s454_s14  ;;  %s457_s17 = int_to_ptr.vmem [resolvable:$true] %s456_s17 }
  0x1c   : > { %2610 = dma.hbm_to_vmem [thread:$0]  (!%p3284_p6), %s399_s22, 16, %s401_s26, [#allocation6]  }
  0x1d   : > { %2616 = dma.hbm_to_vmem [thread:$0]  (!%p3284_p6), %s427_s29, 1024, %s429_s25, [#allocation9], %s3707_s27, %s3707_s27, %s3708_s28  }
  0x1e   : > { %2622 = dma.hbm_to_vmem [thread:$0]  (!%p3284_p6), %s455_s14, 1024, %s457_s17, [#allocation12], %s3707_s27, %s3707_s27, %s3708_s28  }
  0x1f   : > { %s412_s15 = sshll.u32 %s3721_s3, 4  ;;  %s3148_s22 = smov [#allocation7]   ;;  %s413_s15 = int_to_ptr.hbm [resolvable:$true] %s412_s15 }
  0x20   : > { %s414_s26 = sshll.u32 %s3148_s22, 4  ;;  %s3722_s5 = sld [smem:[#allocation26_spill]]  ;;  %s415_s26 = int_to_ptr.vmem [resolvable:$true] %s414_s26 }
  0x21   : > { %2613 = dma.hbm_to_vmem [thread:$0]  (!%p3284_p6), %s413_s15, 1024, %s415_s26, [#allocation6], %s3707_s27, %s3707_s27, %s3708_s28  }
  0x22   : > { %s3723_s9 = sld [smem:[#allocation28_spill]]  ;;  %s3149_s16 = smov [#allocation10]  }
  0x23   : > { %s442_s14 = sshll.u32 %s3149_s16, 4  ;;  %s3150_s6 = smov [#allocation13]   ;;  %s443_s14 = int_to_ptr.vmem [resolvable:$true] %s442_s14 }
  0x24   : > { %s476_s15 = sshll.u32 %s3150_s6, 4  ;;  %s3151_s17 = smov 128   ;;  %s477_s15 = int_to_ptr.vmem [resolvable:$true] %s476_s15 }
  0x25   : > { %s3152_s22 = smov 8   ;;  %s491_s1 = sshll.u32 %s3701_s11, 4  ;;  %s492_s1 = int_to_ptr.hbm [resolvable:$true] %s491_s1 }
  0x26   : > { %s440_s29 = sshll.u32 %s3722_s5, 4  ;;  %s2200_s16 = sadd.s32 4294967294, %s3141_s13   ;;  %s441_s29 = int_to_ptr.hbm [resolvable:$true] %s440_s29 }
  0x27   : > { %2619 = dma.hbm_to_vmem [thread:$0]  (!%p3284_p6), %s441_s29, 1024, %s443_s14, [#allocation9], %s3707_s27, %s3707_s27, %s3708_s28  }
  0x28   : > { %s474_s25 = sshll.u32 %s3723_s9, 4  ;;  %s3153_s29 = smov [#allocation14]   ;;  %s475_s25 = int_to_ptr.hbm [resolvable:$true] %s474_s25 }
  0x29   : > { %2625 = dma.hbm_to_vmem [thread:$0]  (!%p3284_p6), %s475_s25, 2048, %s477_s15, [#allocation12], %s3151_s17, %s3151_s17, %s3152_s22  }
  0x2a   : > { %s493_s4 = sshll.u32 %s3153_s29, 4  ;;  %s3334_s14 = sadd.s32 1, %s3141_s13   ;;  %s494_s4 = int_to_ptr.vmem [resolvable:$true] %s493_s4 }
  0x2b   : > { %2628 = dma.hbm_to_vmem [thread:$0]  (!%p3284_p6), %s492_s1, 2048, %s494_s4, [#allocation15], %s3707_s27, %s3707_s27, %s3708_s28  }
  0x2c   : > { %s42_s25 = sadd.s32 1, %s3137_s20  ;;  %s39_s6 = ssub.s32 %s3141_s13, %s3334_s14 }
  0x2d   : > { %p49_p7 = scmp.ne.s32.totalorder %s3137_s20, %s3133_s19  ;;  %p40_p8 = scmp.eq.s32.totalorder %s39_s6, 0 }
  0x2e   : > { %p50_p9 = scmp.eq.s32.totalorder %s3141_s13, 0  ;;  %p55_p10 = scmp.ne.s32.totalorder %s3133_s19, %s3129_s18 }
  0x2f   : > { %p373_p11 = scmp.eq.s32.totalorder %s3267_s23, 1  ;;  %p379_p0 = scmp.eq.s32.totalorder %s2200_s16, 1 }
  0x30   : > { %s3346_s15 = scalar_select %p40_p8, %s3137_s20, %s42_s25  }
  0x31   : > { %p3350_p12 = por %p56_p1, %p55_p10  ;;  %p3354_p13 = por %p373_p11, %p49_p7 }
  0x32   : > { %p51_p2 = por %p50_p9, %p49_p7  ;;  %s516_s22 = sand.u32 1, %s3137_s20  }
  0x33   : > { %p3359_p5 = por %p379_p0, %p55_p10  ;;  %p2644_p6 = scmp.lt.s32.totalorder %s3141_s13, 2 }
  0x34   : > { %s2210_s21 = sshll.u32 %s516_s22, 3  ;;  %s2500_s1 = sshll.u32 %s3141_s13, 3 }
  0x35   : > { %s525_s25 = scalar_lea.hbm %s3690_s0, %s2500_s1  ;;  %s520_s27 = scalar_lea.vmem [#allocation2], %s2210_s21 }
  0x36   : > { %s526_s6 = sshll.u32 %s525_s25, 4  ;;  %s528_s28 = sshll.u32 %s520_s27, 4  ;;  %s527_s6 = int_to_ptr.hbm [resolvable:$true] %s526_s6  ;;  %s529_s28 = int_to_ptr.vmem [resolvable:$true] %s528_s28 }
  0x37   : > { %p3368_p8 = pnand %p2644_p6, %p51_p2  ;;  %s517_s3 = scalar_lea.sflag [#allocation3], %s516_s22 }
  0x38   : > { %s3029_s5 = sshra.s32 %s527_s6, 4  ;;  %s3036_s27 = scalar_lea.hbm %s3690_s0, 16  ;;  %s3030_s5 = int_to_ptr.hbm [resolvable:$true] %s3029_s5 }
  0x39   : > { %s3031_s9 = scalar_lea.hbm %s3030_s5, 8  ;;  %p3033_p9 = pneg %p3368_p8 }
  0x3a   : > { %p3032_p7 = scmp.ne.s32.totalorder %s3030_s5, %s3031_s9  ;;  %p3037_p0 = scmp.lt.s32.totalorder %s3030_s5, %s3690_s0 }
  0x3b   : > { %p3038_p2 = scmp.lt.s32.totalorder %s3036_s27, %s3031_s9 }
  0x3c   : > { %p3034_p10 = pnand %p3033_p9, %p3032_p7 }
  0x3d   : > { %p3039_p6 = por %p3038_p2, %p3037_p0 }
  0x3e   : > { %p3035_p11 = pneg %p3034_p10 }
  0x40   : > { %p3040_p4 = pnand %p3039_p6, %p3035_p11 }
  0x42   : > { %3043 = shalt.err (!%p3040_p4)
}
  0x43   : > { %s3728_s22 = smov 4   ;;  %s3729_s25 = smov 64  }
  0x44   : > { %2632 = dma.hbm_to_vmem [thread:$0]  (!%p3368_p8), %s527_s6, 128, %s529_s28, %s517_s3, %s3729_s25, %s3729_s25, %s3728_s22  }
  0x45   : > { %540 = sbr.rel (%p3272_p3) target bundleno = 2122 (0x84a), region = 80  ;;  %s3388_s1 = sand.u32 (!%p3272_p3), 1, %s3133_s19  }
  0x46   : > { %s2214_s5 = sshll.u32 (!%p3272_p3), %s3388_s1, 3  ;;  %s543_s9 = scalar_lea.sflag (!%p3272_p3), [#allocation3], %s3388_s1 }
  0x47   : > { %s546_s29 = scalar_lea.vmem (!%p3272_p3), [#allocation2], %s2214_s5 }
  0x4a   : > { %3104 = dma.done.wait (%p3350_p12), %s543_s9, 128  }
  0x4b   : > { %3106 = vsyncadd (%p3350_p12), %s543_s9, 4294967168 }
  0x4c   : > { %3108 = dma.done.wait (%p56_p1), [#allocation6], 1040  }
  0x4d   : > { %3110 = vsyncadd (%p56_p1), [#allocation6], 4294966256 }
  0x4e   : > { %3112 = dma.done.wait (%p56_p1), [#allocation9], 2048  }
  0x4f   : > { %3114 = vsyncadd (%p56_p1), [#allocation9], 4294965248 }
  0x50   : > { %3116 = dma.done.wait (%p56_p1), [#allocation12], 3072  }
  0x51   : > { %3118 = vsyncadd (%p56_p1), [#allocation12], 4294964224 }
  0x52   : > { %3120 = dma.done.wait (%p56_p1), [#allocation15], 2048  }
  0x53   : > { %3122 = vsyncadd (%p56_p1), [#allocation15], 4294965248  ;;  %v2567_v0 = vld [vmem:[%s546_s29] sm:$0xff]   ;;  %v3154_v5 = vmov 128.0   ;;  %v2505_v29 = vld [vmem:[#allocation7 + $0x20] sm:$0xff]  ;;  %vm948_vm7 = vcmask 130048  }
  0x54   : > { %v2568_v1 = vunpack.c.l.bf16 %v2567_v0  ;;  %v2569_v3 = vunpack.c.h.bf16 %v2567_v0  ;;  %2745 = vrcp.f32 %v3154_v5  ;;  %v2508_v20 = vld [vmem:[#allocation7 + $0x38] sm:$0xff]  ;;  %v2507_v23 = vld [vmem:[#allocation7 + $0x30] sm:$0xff]  ;;  %v2506_v26 = vld [vmem:[#allocation7 + $0x28] sm:$0xff]  ;;  %s3155_s28 = smov 112   ;;  %s3156_s30 = smov 80   ;;  %vm1590_vm8 = vcmask 261120  }
  0x55   : > { %v2516_v21 = vld [vmem:[#allocation8 + $0x38] sm:$0xff]  ;;  %762 = vmatpush.bf16.msra.mxu0 %v2508_v20  ;;  %v2515_v24 = vld [vmem:[#allocation8 + $0x30] sm:$0xff]  ;;  %v2514_v27 = vld [vmem:[#allocation8 + $0x28] sm:$0xff]  ;;  %s3157_s6 = smov 64   ;;  %s3158_s16 = smov 48   ;;  %vm1593_vm9 = vcmask 392192  }
  0x56   : > { %v3414_v2 = vmul.f32 11.313708, %v2568_v1  ;;  %v3417_v4 = vmul.f32 11.313708, %v2569_v3  ;;  %v2524_v22 = vld [vmem:[#allocation10 + $0x38] sm:$0xff]  ;;  %842 = vmatpush.bf16.msra.mxu1 %v2516_v21  ;;  %v2523_v25 = vld [vmem:[#allocation10 + $0x30] sm:$0xff] }
  0x57   : > { %922 = vmatpush.bf16.msra.mxu2 %v2524_v22  ;;  %v2522_v28 = vld [vmem:[#allocation10 + $0x28] sm:$0xff]  ;;  %v2513_v30 = vld [vmem:[#allocation8 + $0x20] sm:$0xff]  ;;  %v2504_v32 = vld [vmem:[#allocation7 + $0x18] sm:$0xff]  ;;  %s3159_s27 = smov 16   ;;  %s3160_s21 = smov 32   ;;  %vm1596_vm10 = vcmask 523264  }
  0x58   : > { %640 = vadd.xlane.f32.xlu0 %v3414_v2  ;;  %v2521_v31 = vld [vmem:[#allocation10 + $0x20] sm:$0xff]  ;;  %v2512_v33 = vld [vmem:[#allocation8 + $0x18] sm:$0xff]  ;;  %v2503_v35 = vld [vmem:[#allocation7 + $0x10] sm:$0xff]  ;;  %s3161_s4 = smov 96   ;;  %vm1599_vm11 = vcmask 654336   ;;  %vm1602_vm12 = vcmask 785408  }
  0x59   : > { %763 = vmatpush.bf16.msra.mxu0 %v2507_v23  ;;  %v2520_v34 = vld [vmem:[#allocation10 + $0x18] sm:$0xff]  ;;  %v2511_v36 = vld [vmem:[#allocation8 + $0x10] sm:$0xff]  ;;  %v2502_v38 = vld [vmem:[#allocation7 + $0x8] sm:$0xff]  ;;  %vm1605_vm13 = vcmask 916480   ;;  %s628_s25 = scalar_lea.vmem [#allocation16], %s2214_s5 }
  0x5a   : > { %v2746_v6 = vpop.eup %2745  ;;  %843 = vmatpush.bf16.msra.mxu1 %v2515_v24  ;;  %v2519_v37 = vld [vmem:[#allocation10 + $0x10] sm:$0xff]  ;;  %v2510_v39 = vld [vmem:[#allocation8 + $0x8] sm:$0xff]  ;;  %v2501_v42 = vld [vmem:[#allocation7] sm:$0xff]  ;;  %s2057_s9 = sshll.u32 %s628_s25, 4  ;;  %s2058_s9 = int_to_ptr.vmem [resolvable:$true] %s2057_s9 }
  0x5b   : > { %v645_v7 = vmul.f32 128.0, %v2746_v6  ;;  %vm649_vm0 = vweird.f32 %v2746_v6  ;;  %923 = vmatpush.bf16.msra.mxu2 %v2523_v25  ;;  %v2518_v40 = vld [vmem:[#allocation10 + $0x8] sm:$0xff]  ;;  %v2509_v43 = vld [vmem:[#allocation8] sm:$0xff]  ;;  %v2740_v63 = vld [vmem:[#allocation5] ss:$0 sm:$0xff] }
  0x5c   : > { %v2517_v45 = vld [vmem:[#allocation10] sm:$0xff] }
  0x5d   : > { %v646_v8 = vsub.f32 1.0, %v645_v7  ;;  %764 = vmatpush.bf16.msra.mxu0 %v2506_v26 }
  0x5e   : > { %844 = vmatpush.bf16.msra.mxu1 %v2514_v27 }
  0x5f   : > { %v647_v9 = vmul.f32 %v2746_v6, %v646_v8  ;;  %924 = vmatpush.bf16.msra.mxu2 %v2522_v28 }
  0x60   : > { %642 = vadd.xlane.f32.xlu0 %v3417_v4 }
  0x61   : > { %v648_v10 = vadd.f32 %v2746_v6, %v647_v9  ;;  %765 = vmatpush.bf16.msra.mxu0 %v2505_v29 }
  0x62   : > { %845 = vmatpush.bf16.msra.mxu1 %v2513_v30 }
  0x63   : > { %v3420_v11 = vsel %vm649_vm0, %v2746_v6, %v648_v10  ;;  %925 = vmatpush.bf16.msra.mxu2 %v2521_v31  ;;  %v2741_v6 = vld [vmem:[%s3692_s2] ss:$0 sm:$0xff] }
  0x65   : > { %766 = vmatpush.bf16.msra.mxu0 %v2504_v32 }
  0x66   : > { %846 = vmatpush.bf16.msra.mxu1 %v2512_v33 }
  0x67   : > { %926 = vmatpush.bf16.msra.mxu2 %v2520_v34 }
  0x69   : > { %767 = vmatpush.bf16.msra.mxu0 %v2503_v35 }
  0x6a   : > { %847 = vmatpush.bf16.msra.mxu1 %v2511_v36 }
  0x6b   : > { %927 = vmatpush.bf16.msra.mxu2 %v2519_v37 }
  0x6d   : > { %768 = vmatpush.bf16.msra.mxu0 %v2502_v38 }
  0x6e   : > { %848 = vmatpush.bf16.msra.mxu1 %v2510_v39 }
  0x6f   : > { %928 = vmatpush.bf16.msra.mxu2 %v2518_v40 }
  0x71   : > { %769 = vmatpush.bf16.msra.mxu0 %v2501_v42 }
  0x72   : > { %849 = vmatpush.bf16.msra.mxu1 %v2509_v43 }
  0x73   : > { %929 = vmatpush.bf16.msra.mxu2 %v2517_v45 }
  0xcb   : > { %v641_v12 = vpop.xlane.xlu0 %640 }
  0xcc   : > { %v651_v13 = vmul.f32 %v3420_v11, %v641_v12 }
  0xce   : > { %v3424_v14 = vsub.f32 %v3414_v2, %v651_v13 }
  0xd0   : > { %v655_v15 = vmul.f32 %v3424_v14, %v3424_v14 }
  0xd2   : > { %657 = vadd.xlane.f32.xlu1 %v655_v15 }
  0xd3   : > { %v643_v16 = vpop.xlane.xlu0 %642 }
  0xd4   : > { %v652_v17 = vmul.f32 %v3420_v11, %v643_v16 }
  0xd6   : > { %v3430_v18 = vsub.f32 %v3417_v4, %v652_v17 }
  0xd8   : > { %v656_v19 = vmul.f32 %v3430_v18, %v3430_v18 }
  0xda   : > { %659 = vadd.xlane.f32.xlu1 %v656_v19 }
 0x145   : > { %v658_v41 = vpop.xlane.xlu1 %657 }
 0x146   : > { %v661_v44 = vmul.f32 %v658_v41, %v3420_v11 }
 0x148   : > { %v663_v46 = vadd.f32 1e-06, %v661_v44 }
 0x14a   : > { %2747 = vrsqrt.f32 %v663_v46  ;;  %vm671_vm2 = vweird.f32 %v663_v46 }
 0x14d   : > { %v660_v47 = vpop.xlane.xlu1 %659 }
 0x14e   : > { %v662_v48 = vmul.f32 %v660_v47, %v3420_v11 }
 0x150   : > { %v2748_v49 = vpop.eup %2747  ;;  %v664_v50 = vadd.f32 1e-06, %v662_v48 }
 0x151   : > { %v666_v51 = vmul.f32 %v2748_v49, %v663_v46  ;;  %vm672_vm1 = vweird.f32 %v2748_v49 }
 0x152   : > { %2749 = vrsqrt.f32 %v664_v50  ;;  %vm673_vm3 = vmor %vm671_vm2, %vm672_vm1  ;;  %vm681_vm5 = vweird.f32 %v664_v50 }
 0x153   : > { %v667_v52 = vmul.f32 %v2748_v49, %v666_v51 }
 0x155   : > { %v668_v53 = vmul.f32 0.5, %v667_v52 }
 0x157   : > { %v669_v54 = vsub.f32 1.5, %v668_v53 }
 0x158   : > { %v2750_v55 = vpop.eup %2749 }
 0x159   : > { %v670_v56 = vmul.f32 %v2748_v49, %v669_v54  ;;  %v676_v57 = vmul.f32 %v2750_v55, %v664_v50  ;;  %vm682_vm4 = vweird.f32 %v2750_v55 }
 0x15a   : > { %vm683_vm6 = vmor %vm681_vm5, %vm682_vm4 }
 0x15b   : > { %v677_v58 = vmul.f32 %v2750_v55, %v676_v57  ;;  %v674_v59 = vsel %vm673_vm3, %v2748_v49, %v670_v56 }
 0x15c   : > { %v685_v62 = vmul.f32 %v674_v59, %v3424_v14 }
 0x15d   : > { %v678_v60 = vmul.f32 0.5, %v677_v58 }
 0x15e   : > { %v690_v5 = vmul.f32 %v2740_v63, %v685_v62 }
 0x15f   : > { %v679_v61 = vsub.f32 1.5, %v678_v60 }
 0x160   : > { %v695_v8 = vadd.f32 %v2741_v6, %v690_v5 }
 0x161   : > { %v680_v0 = vmul.f32 %v2750_v55, %v679_v61 }
 0x163   : > { %v684_v1 = vsel %vm683_vm6, %v2750_v55, %v680_v0 }
 0x164   : > { %v686_v3 = vmul.f32 %v684_v1, %v3430_v18 }
 0x166   : > { %v691_v7 = vmul.f32 %v2740_v63, %v686_v3 }
 0x168   : > { %v696_v9 = vadd.f32 %v2741_v6, %v691_v7 }
 0x16a   : > { %v697_v10 = vpack.c.bf16 %v696_v9, %v695_v8 }
 0x16c   : > { %770 = vmatmul.bf16.vlgmr.msra.gmra.mxu0 %v697_v10  ;;  %850 = vmatmul.bf16.vlgmr.msra.gmra.mxu1 %v697_v10 }
 0x16d   : > { %930 = vmatmul.bf16.vlgmr.msra.gmra.mxu2 %v697_v10 }
 0x1e9   : > { %v771_v12 = vpop.f32.mrf.mxu0  ;;  %v851_v13 = vpop.f32.mrf.mxu1 }
 0x1ea   : > { %v776_v14 = vpack.c.bf16 %v771_v12, %v771_v12  ;;  %v856_v15 = vpack.c.bf16 %v851_v13, %v851_v13 }
 0x1ec   : > { %v940_v21 = vunpack.c.l.b16 %v776_v14  ;;  %v945_v22 = vunpack.c.l.b16 %v856_v15 }
 0x1f0   : > { %v931_v16 = vpop.f32.mrf.mxu2 }
 0x1f1   : > { %v773_v17 = vpop.f32.mrf.mxu0  ;;  %v853_v19 = vpop.f32.mrf.mxu1  ;;  %v936_v27 = vpack.c.bf16 %v931_v16, %v931_v16 }
 0x1f2   : > { %v777_v18 = vpack.c.bf16 %v773_v17, %v773_v17  ;;  %v857_v20 = vpack.c.bf16 %v853_v19, %v853_v19 }
 0x1f3   : > { %v996_v31 = vunpack.c.l.b16 %v936_v27 }
 0x1f4   : > { %v941_v23 = vunpack.c.l.b16 %v777_v18  ;;  %v946_v24 = vunpack.c.l.b16 %v857_v20 }
 0x1f6   : > { %v942_v25 = vpack.c.b16 %v941_v23, %v940_v21  ;;  %v947_v26 = vpack.c.b16 %v946_v24, %v945_v22 }
 0x1f8   : > { %v933_v28 = vpop.f32.mrf.mxu2  ;;  %1023 = vrot.lane.b32.xlu0 %v947_v26, %s3155_s28  ;;  %1021 = vrot.lane.b32.xlu1 %v942_v25, %s3155_s28  ;;  %v953_v29 = vsel %vm948_vm7, %v947_v26, 0 }
 0x1f9   : > { %v937_v30 = vpack.c.bf16 %v933_v28, %v933_v28  ;;  %962 = vmatpush.bf16.xpose.msra.mxu3 %v953_v29 }
 0x1fb   : > { %v997_v32 = vunpack.c.l.b16 %v937_v30 }
 0x1fd   : > { %v3444_v33 = vpack.c.b16 %v997_v32, %v996_v31 }
 0x200   : > { %1169 = vrot.lane.b32.xlu0 %v947_v26, %s3156_s30  ;;  %1167 = vrot.lane.b32.xlu1 %v942_v25, %s3156_s30 }
 0x201   : > { %1010 = vmatpush.bf16.msrb.mxu3 %v3444_v33 }
 0x202   : > { %2319 = vmatmul.msk.bf16.vlgmr.msra.gmra.mxu3 %vm948_vm7, %v942_v25 }
 0x208   : > { %1242 = vrot.lane.b32.xlu0 %v947_v26, %s3157_s6  ;;  %1240 = vrot.lane.b32.xlu1 %v942_v25, %s3157_s6 }
 0x210   : > { %1313 = vrot.lane.b32.xlu0 %v942_v25, %s3158_s16  ;;  %1461 = vrot.lane.b32.xlu1 %v947_v26, %s3159_s27 }
 0x218   : > { %1386 = vrot.lane.b32.xlu0 %v942_v25, %s3160_s21  ;;  %1216 = vrot.lane.b32.xlu1 %v3444_v33, %s3156_s30 }
 0x220   : > { %1070 = vrot.lane.b32.xlu0 %v3444_v33, %s3155_s28 }
 0x26a   : > { %v1024_v34 = vpop.permute.xlu0 %1023  ;;  %v1022_v36 = vpop.permute.xlu1 %1021 }
 0x26b   : > { %v1029_v35 = vsel %vm948_vm7, %v1024_v34, 0 }
 0x26c   : > { %1038 = vmatpush.bf16.xpose.msra.mxu3 %v1029_v35 }
 0x272   : > { %v1170_v37 = vpop.permute.xlu0 %1169  ;;  %v3460_v38 = vpop.permute.xlu1 %1167 }
 0x273   : > { %v1175_v9 = vsel %vm948_vm7, %v1170_v37, 0 }
 0x27a   : > { %v1243_v39 = vpop.permute.xlu0 %1242  ;;  %v1241_v41 = vpop.permute.xlu1 %1240 }
 0x27b   : > { %v1248_v40 = vsel %vm948_vm7, %v1243_v39, 0 }
 0x27c   : > { %1257 = vmatpush.bf16.xpose.msrb.mxu1 %v1248_v40 }
 0x282   : > { %v3463_v42 = vpop.permute.xlu0 %1313  ;;  %v1462_v45 = vpop.permute.xlu1 %1461 }
 0x283   : > { %2327 = vmatmul.msk.bf16.vlgmr.msrb.gmra.mxu1 %vm948_vm7, %v1241_v41  ;;  %v1467_v17 = vsel %vm948_vm7, %v1462_v45, 0 }
 0x285   : > { %v964_v43 = vpop.f32.mrf.mxu3 }
 0x286   : > { %v969_v44 = vsel %vm948_vm7, %v964_v43, -inf }
 0x287   : > { %970 = vmax.xlane.f32.xlu2 %v969_v44 }
 0x28a   : > { %v1387_v46 = vpop.permute.xlu0 %1386  ;;  %v1217_v50 = vpop.permute.xlu1 %1216 }
 0x28d   : > { %v966_v47 = vpop.f32.mrf.mxu3 }
 0x28e   : > { %v972_v48 = vsel %vm948_vm7, %v966_v47, -inf }
 0x28f   : > { %973 = vmax.xlane.f32.xlu2 %v972_v48 }
 0x292   : > { %v1071_v49 = vpop.permute.xlu0 %1070 }
 0x293   : > { %1083 = vmatpush.bf16.msrb.mxu0 %v1071_v49 }
 0x297   : > { %1229 = vmatpush.bf16.msra.mxu0 %v1217_v50 }
 0x2a7   : > { %1096 = vrot.lane.b32.xlu2 %v947_v26, %s3161_s4 }
 0x2af   : > { %1094 = vrot.lane.b32.xlu2 %v942_v25, %s3161_s4 }
 0x2b7   : > { %1315 = vrot.lane.b32.xlu2 %v947_v26, %s3158_s16 }
 0x2bf   : > { %1388 = vrot.lane.b32.xlu2 %v947_v26, %s3160_s21 }
 0x2c7   : > { %1459 = vrot.lane.b32.xlu2 %v942_v25, %s3159_s27 }
 0x2cf   : > { %1143 = vrot.lane.b32.xlu2 %v3444_v33, %s3161_s4 }
 0x2fa   : > { %v971_v51 = vpop.xlane.xlu2 %970 }
 0x2fb   : > { %v975_v52 = vsub.f32 %v964_v43, %v971_v51 }
 0x2fd   : > { %v977_v53 = vmul.f32 1.442695, %v975_v52 }
 0x2ff   : > { %2751 = vpow2.f32 %v977_v53 }
 0x300   : > { %v3475_v54 = vpop.f32.mrf.mxu1 }
 0x301   : > { %v1264_v56 = vsel %vm948_vm7, %v3475_v54, -inf }
 0x302   : > { %v974_v55 = vpop.xlane.xlu2 %973  ;;  %1265 = vmax.xlane.f32.xlu1 %v1264_v56 }
 0x303   : > { %v976_v57 = vsub.f32 %v966_v47, %v974_v55 }
 0x305   : > { %v979_v58 = vmul.f32 1.442695, %v976_v57  ;;  %v3479_v59 = vpop.eup %2751 }
 0x306   : > { %v987_v0 = vpack.c.bf16 %v3479_v59, %v3479_v59 }
 0x307   : > { %2753 = vpow2.f32 %v979_v58 }
 0x308   : > { %v3481_v60 = vpop.f32.mrf.mxu1  ;;  %v991_v5 = vunpack.c.l.b16 %v987_v0 }
 0x309   : > { %v1267_v62 = vsel %vm948_vm7, %v3481_v60, -inf }
 0x30a   : > { %v1097_v61 = vpop.permute.xlu2 %1096  ;;  %1268 = vmax.xlane.f32.xlu0 %v1267_v62 }
 0x30b   : > { %v1102_v63 = vsel %vm948_vm7, %v1097_v61, 0 }
 0x30c   : > { %1111 = vmatpush.bf16.xpose.msrb.mxu2 %v1102_v63 }
 0x30d   : > { %v3488_v1 = vpop.eup %2753 }
 0x30e   : > { %v988_v3 = vpack.c.bf16 %v3488_v1, %v3488_v1 }
 0x310   : > { %v992_v6 = vunpack.c.l.b16 %v988_v3 }
 0x312   : > { %v1095_v7 = vpop.permute.xlu2 %1094  ;;  %v993_v8 = vpack.c.b16 %v992_v6, %v991_v5 }
 0x313   : > { %2323 = vmatmul.msk.bf16.vlgmr.msrb.gmra.mxu2 %vm948_vm7, %v1095_v7 }
 0x314   : > { %2320 = vmatmul.msk.bf16.vlgmr.msrb.gmra.mxu3 %vm948_vm7, %v993_v8 }
 0x315   : > { %1184 = vmatpush.bf16.xpose.msrb.mxu3 %v1175_v9 }
 0x31a   : > { %v1316_v10 = vpop.permute.xlu2 %1315 }
 0x31b   : > { %v1321_v14 = vsel %vm948_vm7, %v1316_v10, 0 }
 0x322   : > { %v1389_v12 = vpop.permute.xlu2 %1388 }
 0x323   : > { %v1394_v13 = vsel %vm948_vm7, %v1389_v12, 0 }
 0x324   : > { %2321 = vmatmul.msk.bf16.vlgmr.msra.gmra.mxu3 %vm948_vm7, %v1022_v36  ;;  %1403 = vmatpush.bf16.xpose.msra.mxu1 %v1394_v13 }
 0x325   : > { %1330 = vmatpush.bf16.xpose.msra.mxu3 %v1321_v14 }
 0x32a   : > { %v1460_v15 = vpop.permute.xlu2 %1459 }
 0x32b   : > { %2331 = vmatmul.msk.bf16.vlgmr.msra.gmra.mxu1 %vm948_vm7, %v1387_v46 }
 0x332   : > { %v1144_v16 = vpop.permute.xlu2 %1143 }
 0x333   : > { %1156 = vmatpush.bf16.msra.mxu2 %v1144_v16 }
 0x334   : > { %2325 = vmatmul.msk.bf16.vlgmr.msrb.gmra.mxu3 %vm948_vm7, %v3460_v38 }
 0x335   : > { %1476 = vmatpush.bf16.xpose.msrb.mxu3 %v1467_v17 }
 0x344   : > { %2329 = vmatmul.msk.bf16.vlgmr.msra.gmra.mxu3 %vm948_vm7, %v3463_v42 }
 0x354   : > { %2333 = vmatmul.msk.bf16.vlgmr.msrb.gmra.mxu3 %vm948_vm7, %v1460_v15 }
 0x375   : > { %v1266_v45 = vpop.xlane.xlu1 %1265 }
 0x376   : > { %v1270_v51 = vsub.f32 %v3475_v54, %v1266_v45  ;;  %v984_v45 = vsel %vm948_vm7, %v3488_v1, 0.0 }
 0x378   : > { %v1272_v55 = vmul.f32 1.442695, %v1270_v51 }
 0x37d   : > { %v1269_v56 = vpop.xlane.xlu0 %1268 }
 0x37e   : > { %v1271_v5 = vsub.f32 %v3481_v60, %v1269_v56 }
 0x380   : > { %v1274_v13 = vmul.f32 1.442695, %v1271_v5 }
 0x396   : > { %v1113_v19 = vpop.f32.mrf.mxu2 }
 0x397   : > { %v3505_v18 = vpop.f32.mrf.mxu3  ;;  %v1118_v20 = vsel %vm948_vm7, %v1113_v19, -inf }
 0x398   : > { %1119 = vmax.xlane.f32.xlu2 %v1118_v20 }
 0x39e   : > { %v1115_v21 = vpop.f32.mrf.mxu2 }
 0x39f   : > { %v3508_v22 = vpop.f32.mrf.mxu3  ;;  %v1121_v23 = vsel %vm948_vm7, %v1115_v21, -inf }
 0x3a0   : > { %1122 = vmax.xlane.f32.xlu1 %v1121_v23 }
 0x3a7   : > { %v1040_v24 = vpop.f32.mrf.mxu3 }
 0x3a8   : > { %v1405_v25 = vpop.f32.mrf.mxu1  ;;  %v1045_v26 = vsel %vm948_vm7, %v1040_v24, -inf }
 0x3a9   : > { %1046 = vmax.xlane.f32.xlu1 %v1045_v26  ;;  %v1410_v27 = vsel %vm948_vm7, %v1405_v25, -inf }
 0x3aa   : > { %1411 = vmax.xlane.f32.xlu2 %v1410_v27 }
 0x3af   : > { %v3513_v28 = vpop.f32.mrf.mxu3 }
 0x3b0   : > { %v1048_v29 = vsel %vm948_vm7, %v3513_v28, -inf  ;;  %v3543_v42 = vpop.f32.mrf.mxu1 }
 0x3b1   : > { %1049 = vmax.xlane.f32.xlu0 %v1048_v29  ;;  %v1413_v43 = vsel %vm948_vm7, %v3543_v42, -inf }
 0x3b7   : > { %v3517_v30 = vpop.f32.mrf.mxu3 }
 0x3b8   : > { %v1191_v41 = vsel %vm948_vm7, %v3517_v30, -inf }
 0x3bf   : > { %v3519_v31 = vpop.f32.mrf.mxu3 }
 0x3c0   : > { %v1194_v32 = vsel %vm948_vm7, %v3519_v31, -inf }
 0x3c1   : > { %1195 = vmax.xlane.f32.xlu1 %v1194_v32 }
 0x3c2   : > { %1362 = vrot.lane.b32.xlu2 %v3444_v33, %s3158_s16 }
 0x3c5   : > { %1289 = vrot.lane.b32.xlu0 %v3444_v33, %s3157_s6 }
 0x3c7   : > { %v3527_v34 = vpop.f32.mrf.mxu3 }
 0x3c8   : > { %v1337_v44 = vsel %vm948_vm7, %v3527_v34, -inf }
 0x3cf   : > { %v3529_v35 = vpop.f32.mrf.mxu3 }
 0x3d0   : > { %v1340_v36 = vsel %vm948_vm7, %v3529_v35, -inf }
 0x3d1   : > { %1341 = vmax.xlane.f32.xlu1 %v1340_v36 }
 0x3d7   : > { %v3533_v37 = vpop.f32.mrf.mxu3 }
 0x3d8   : > { %v1483_v38 = vsel %vm948_vm7, %v3533_v37, -inf }
 0x3d9   : > { %1484 = vmax.xlane.f32.xlu1 %v1483_v38 }
 0x3df   : > { %v3537_v39 = vpop.f32.mrf.mxu3 }
 0x3e0   : > { %v1486_v40 = vsel %vm948_vm7, %v3537_v39, -inf }
 0x3e1   : > { %1487 = vmax.xlane.f32.xlu1 %v1486_v40 }
 0x3eb   : > { %1192 = vmax.xlane.f32.xlu2 %v1191_v41 }
 0x3ef   : > { %1414 = vmax.xlane.f32.xlu0 %v1413_v43 }
 0x3f3   : > { %1338 = vmax.xlane.f32.xlu2 %v1337_v44 }
 0x3fa   : > { %1435 = vrot.lane.b32.xlu1 %v3444_v33, %s3160_s21 }
 0x40b   : > { %1508 = vrot.lane.b32.xlu2 %v3444_v33, %s3159_s27  ;;  %v1120_v46 = vpop.xlane.xlu2 %1119 }
 0x40c   : > { %v1124_v47 = vsub.f32 %v1113_v19, %v1120_v46 }
 0x40e   : > { %v1126_v48 = vmul.f32 1.442695, %v1124_v47 }
 0x410   : > { %2755 = vpow2.f32 %v1126_v48 }
 0x413   : > { %v1123_v49 = vpop.xlane.xlu1 %1122 }
 0x414   : > { %v1125_v50 = vsub.f32 %v1115_v21, %v1123_v49 }
 0x416   : > { %v1128_v52 = vmul.f32 1.442695, %v1125_v50  ;;  %v2756_v53 = vpop.eup %2755 }
 0x417   : > { %v1136_v58 = vpack.c.bf16 %v2756_v53, %v2756_v53  ;;  %v1130_v10 = vsel %vm948_vm7, %v2756_v53, 0.0 }
 0x418   : > { %2757 = vpow2.f32 %v1128_v52 }
 0x419   : > { %2759 = vpow2.f32 %v1272_v55  ;;  %v1140_v54 = vunpack.c.l.b16 %v1136_v58 }
 0x41c   : > { %v1047_v57 = vpop.xlane.xlu1 %1046 }
 0x41d   : > { %v1051_v61 = vsub.f32 %v1040_v24, %v1047_v57  ;;  %v1412_v62 = vpop.xlane.xlu2 %1411 }
 0x41e   : > { %v2758_v63 = vpop.eup %2757  ;;  %v1416_v33 = vsub.f32 %v1405_v25, %v1412_v62 }
 0x41f   : > { %v1137_v0 = vpack.c.bf16 %v2758_v63, %v2758_v63  ;;  %v1133_v3 = vsel %vm948_vm7, %v2758_v63, 0.0  ;;  %v1053_v8 = vmul.f32 1.442695, %v1051_v61  ;;  %v2760_v12 = vpop.eup %2759 }
 0x420   : > { %v1418_v6 = vmul.f32 1.442695, %v1416_v33  ;;  %1134 = vadd.xlane.f32.xlu0 %v1133_v3  ;;  %v1276_v60 = vsel %vm948_vm7, %v2760_v12, 0.0  ;;  %v1282_v29 = vpack.c.bf16 %v2760_v12, %v2760_v12 }
 0x421   : > { %v1141_v7 = vunpack.c.l.b16 %v1137_v0 }
 0x422   : > { %2761 = vpow2.f32 %v1418_v6  ;;  %v1286_v41 = vunpack.c.l.b16 %v1282_v29 }
 0x423   : > { %v1142_v9 = vpack.c.b16 %v1141_v7, %v1140_v54  ;;  %2763 = vpow2.f32 %v1053_v8 }
 0x424   : > { %v1050_v14 = vpop.xlane.xlu0 %1049  ;;  %1131 = vadd.xlane.f32.xlu1 %v1130_v10  ;;  %2765 = vpow2.f32 %v1274_v13 }
 0x425   : > { %v1052_v15 = vsub.f32 %v3513_v28, %v1050_v14  ;;  %2324 = vmatmul.msk.bf16.vlgmr.msra.gmra.mxu2 %vm948_vm7, %v1142_v9  ;;  %v1363_v40 = vpop.permute.xlu2 %1362 }
 0x427   : > { %v1055_v16 = vmul.f32 1.442695, %v1052_v15 }
 0x428   : > { %v3560_v17 = vpop.eup %2761  ;;  %1277 = vadd.xlane.f32.xlu0 %v1276_v60 }
 0x429   : > { %2767 = vpow2.f32 %v1055_v16  ;;  %v2764_v19 = vpop.eup %2763  ;;  %v1422_v20 = vsel %vm948_vm7, %v3560_v17, 0.0 }
 0x42a   : > { %v2766_v21 = vpop.eup %2765  ;;  %v1063_v23 = vpack.c.bf16 %v2764_v19, %v2764_v19  ;;  %v1057_v47 = vsel %vm948_vm7, %v2764_v19, 0.0 }
 0x42b   : > { %v1283_v26 = vpack.c.bf16 %v2766_v21, %v2766_v21  ;;  %v1279_v32 = vsel %vm948_vm7, %v2766_v21, 0.0 }
 0x42c   : > { %1423 = vadd.xlane.f32.xlu1 %v1422_v20  ;;  %v1067_v27 = vunpack.c.l.b16 %v1063_v23 }
 0x42d   : > { %v1287_v38 = vunpack.c.l.b16 %v1283_v26 }
 0x42f   : > { %v3564_v24 = vpop.eup %2767  ;;  %v1288_v44 = vpack.c.b16 %v1287_v38, %v1286_v41 }
 0x430   : > { %v1064_v25 = vpack.c.bf16 %v3564_v24, %v3564_v24  ;;  %v1060_v38 = vsel %vm948_vm7, %v3564_v24, 0.0 }
 0x432   : > { %v1068_v28 = vunpack.c.l.b16 %v1064_v25 }
 0x434   : > { %1280 = vadd.xlane.f32.xlu2 %v1279_v32  ;;  %v1069_v36 = vpack.c.b16 %v1068_v28, %v1067_v27  ;;  %v1196_v46 = vpop.xlane.xlu1 %1195  ;;  %v981_v27 = vsel %vm948_vm7, %v3479_v59, 0.0 }
 0x435   : > { %v1198_v61 = vsub.f32 %v3519_v31, %v1196_v46 }
 0x436   : > { %2322 = vmatmul.msk.bf16.vlgmr.msrb.gmra.mxu0 %vm948_vm7, %v1069_v36 }
 0x437   : > { %1375 = vmatpush.bf16.msrb.mxu0 %v1363_v40  ;;  %v1290_v43 = vpop.permute.xlu0 %1289  ;;  %v1201_v63 = vmul.f32 1.442695, %v1198_v61 }
 0x438   : > { %1302 = vmatpush.bf16.msrb.mxu2 %v1290_v43 }
 0x43b   : > { %2328 = vmatmul.msk.bf16.vlgmr.msrb.gmra.mxu2 %vm948_vm7, %v1288_v44 }
 0x43c   : > { %985 = vadd.xlane.f32.xlu2 %v984_v45 }
 0x444   : > { %v1342_v48 = vpop.xlane.xlu1 %1341  ;;  %1058 = vadd.xlane.f32.xlu2 %v1057_v47 }
 0x445   : > { %v1344_v49 = vsub.f32 %v3529_v35, %v1342_v48 }
 0x447   : > { %v1347_v50 = vmul.f32 1.442695, %v1344_v49 }
 0x449   : > { %2769 = vpow2.f32 %v1347_v50 }
 0x44c   : > { %v1485_v51 = vpop.xlane.xlu1 %1484 }
 0x44d   : > { %v1489_v52 = vsub.f32 %v3533_v37, %v1485_v51 }
 0x44f   : > { %v2770_v53 = vpop.eup %2769  ;;  %v1491_v55 = vmul.f32 1.442695, %v1489_v52 }
 0x450   : > { %v1352_v56 = vsel %vm948_vm7, %v2770_v53, 0.0  ;;  %v1356_v28 = vpack.c.bf16 %v2770_v53, %v2770_v53 }
 0x451   : > { %2771 = vpow2.f32 %v1491_v55  ;;  %1353 = vadd.xlane.f32.xlu2 %v1352_v56 }
 0x452   : > { %v1360_v32 = vunpack.c.l.b16 %v1356_v28 }
 0x454   : > { %v1488_v1 = vpop.xlane.xlu1 %1487 }
 0x455   : > { %v1490_v57 = vsub.f32 %v3537_v39, %v1488_v1 }
 0x457   : > { %v2772_v58 = vpop.eup %2771  ;;  %v1493_v62 = vmul.f32 1.442695, %v1490_v57 }
 0x458   : > { %v1495_v35 = vsel %vm948_vm7, %v2772_v58, 0.0  ;;  %v1501_v43 = vpack.c.bf16 %v2772_v58, %v2772_v58 }
 0x459   : > { %2773 = vpow2.f32 %v1493_v62  ;;  %1496 = vadd.xlane.f32.xlu2 %v1495_v35 }
 0x45a   : > { %2775 = vpow2.f32 %v1201_v63  ;;  %v1505_v45 = vunpack.c.l.b16 %v1501_v43 }
 0x45e   : > { %v1193_v33 = vpop.xlane.xlu2 %1192 }
 0x45f   : > { %v2774_v37 = vpop.eup %2773  ;;  %v1197_v0 = vsub.f32 %v3517_v30, %v1193_v33  ;;  %v1428_v30 = vpack.c.bf16 %v3560_v17, %v3560_v17 }
 0x460   : > { %v1498_v3 = vsel %vm948_vm7, %v2774_v37, 0.0  ;;  %v2776_v31 = vpop.eup %2775  ;;  %v1502_v40 = vpack.c.bf16 %v2774_v37, %v2774_v37 }
 0x461   : > { %v1199_v5 = vmul.f32 1.442695, %v1197_v0  ;;  %1499 = vadd.xlane.f32.xlu1 %v1498_v3  ;;  %v1210_v9 = vpack.c.bf16 %v2776_v31, %v2776_v31  ;;  %v1206_v59 = vsel %vm948_vm7, %v2776_v31, 0.0 }
 0x462   : > { %v1415_v6 = vpop.xlane.xlu0 %1414  ;;  %v1506_v44 = vunpack.c.l.b16 %v1502_v40 }
 0x463   : > { %2777 = vpow2.f32 %v1199_v5  ;;  %v1417_v39 = vsub.f32 %v3543_v42, %v1415_v6  ;;  %v1214_v14 = vunpack.c.l.b16 %v1210_v9 }
 0x464   : > { %v1507_v46 = vpack.c.b16 %v1506_v44, %v1505_v45 }
 0x465   : > { %v1420_v54 = vmul.f32 1.442695, %v1417_v39 }
 0x466   : > { %v1339_v7 = vpop.xlane.xlu2 %1338 }
 0x467   : > { %2779 = vpow2.f32 %v1420_v54  ;;  %v1343_v8 = vsub.f32 %v3527_v34, %v1339_v7  ;;  %v1432_v34 = vunpack.c.l.b16 %v1428_v30 }
 0x469   : > { %v2778_v10 = vpop.eup %2777  ;;  %v1345_v12 = vmul.f32 1.442695, %v1343_v8 }
 0x46a   : > { %v1209_v13 = vpack.c.bf16 %v2778_v10, %v2778_v10  ;;  %v1203_v41 = vsel %vm948_vm7, %v2778_v10, 0.0 }
 0x46b   : > { %2781 = vpow2.f32 %v1345_v12 }
 0x46c   : > { %v1213_v15 = vunpack.c.l.b16 %v1209_v13  ;;  %v1436_v16 = vpop.permute.xlu1 %1435 }
 0x46d   : > { %v2780_v60 = vpop.eup %2779  ;;  %1448 = vmatpush.bf16.msra.mxu2 %v1436_v16 }
 0x46e   : > { %v1215_v42 = vpack.c.b16 %v1214_v14, %v1213_v15  ;;  %v1429_v19 = vpack.c.bf16 %v2780_v60, %v2780_v60  ;;  %v1509_v20 = vpop.permute.xlu2 %1508  ;;  %v1425_v21 = vsel %vm948_vm7, %v2780_v60, 0.0 }
 0x46f   : > { %1426 = vadd.xlane.f32.xlu0 %v1425_v21 }
 0x470   : > { %v1433_v23 = vunpack.c.l.b16 %v1429_v19  ;;  %2326 = vmatmul.msk.bf16.vlgmr.msra.gmra.mxu0 %vm948_vm7, %v1215_v42 }
 0x471   : > { %1521 = vmatpush.bf16.msra.mxu0 %v1509_v20  ;;  %v2782_v26 = vpop.eup %2781 }
 0x472   : > { %v1434_v25 = vpack.c.b16 %v1433_v23, %v1432_v34  ;;  %v1355_v17 = vpack.c.bf16 %v2782_v26, %v2782_v26  ;;  %v1349_v47 = vsel %vm948_vm7, %v2782_v26, 0.0 }
 0x474   : > { %2332 = vmatmul.msk.bf16.vlgmr.msra.gmra.mxu2 %vm948_vm7, %v1434_v25  ;;  %v1359_v29 = vunpack.c.l.b16 %v1355_v17 }
 0x476   : > { %v1361_v36 = vpack.c.b16 %v1360_v32, %v1359_v29 }
 0x477   : > { %982 = vadd.xlane.f32.xlu0 %v981_v27 }
 0x47f   : > { %1061 = vadd.xlane.f32.xlu0 %v1060_v38 }
 0x480   : > { %2330 = vmatmul.msk.bf16.vlgmr.msrb.gmra.mxu0 %vm948_vm7, %v1361_v36 }
 0x487   : > { %1204 = vadd.xlane.f32.xlu0 %v1203_v41 }
 0x48f   : > { %1207 = vadd.xlane.f32.xlu0 %v1206_v59 }
 0x490   : > { %2334 = vmatmul.msk.bf16.vlgmr.msra.gmra.mxu0 %vm948_vm7, %v1507_v46 }
 0x493   : > { %v1135_v24 = vpop.xlane.xlu0 %1134 }
 0x494   : > { %2783 = vrcp.f32 %v1135_v24 }
 0x497   : > { %1350 = vadd.xlane.f32.xlu0 %v1349_v47  ;;  %v1132_v48 = vpop.xlane.xlu1 %1131 }
 0x498   : > { %2785 = vrcp.f32 %v1132_v48 }
 0x49a   : > { %v2784_v50 = vpop.eup %2783 }
 0x49b   : > { %v1278_v1 = vpop.xlane.xlu0 %1277 }
 0x49c   : > { %2787 = vrcp.f32 %v1278_v1  ;;  %v2529_v1 = vld [vmem:[#allocation11 + $0x20] sm:$0xff] }
 0x49e   : > { %v2786_v51 = vpop.eup %2785 }
 0x49f   : > { %v1424_v19 = vpop.xlane.xlu1 %1423 }
 0x4a2   : > { %v2788_v61 = vpop.eup %2787 }
 0x4a7   : > { %v1281_v57 = vpop.xlane.xlu2 %1280 }
 0x4a8   : > { %v1158_v49 = vpop.f32.mrf.mxu2  ;;  %2789 = vrcp.f32 %v1281_v57  ;;  %v2528_v57 = vld [vmem:[#allocation11 + $0x18] sm:$0xff] }
 0x4a9   : > { %v1165_v53 = vmul.f32 %v2786_v51, %v1158_v49 }
 0x4ae   : > { %v2790_v62 = vpop.eup %2789 }
 0x4af   : > { %v3600_v5 = vpop.xlane.xlu2 %985 }
 0x4b0   : > { %v1160_v52 = vpop.f32.mrf.mxu2 }
 0x4b1   : > { %v1166_v55 = vmul.f32 %v2784_v50, %v1160_v52 }
 0x4b3   : > { %v2705_v56 = vpack.i.bf16 %v1166_v55, %v1165_v53  ;;  %v1085_v0 = vpop.f32.mrf.mxu0  ;;  %v2532_v53 = vld [vmem:[#allocation11 + $0x38] sm:$0xff]  ;;  %v2531_v55 = vld [vmem:[#allocation11 + $0x30] sm:$0xff] }
 0x4b4   : > { %1673 = vmatpush.bf16.msrb.mxu1 %v2532_v53 }
 0x4b5   : > { %2706 = vrot.lane.b32.xlu0 %v2705_v56, %s3160_s21  ;;  %v2530_v56 = vld [vmem:[#allocation11 + $0x28] sm:$0xff] }
 0x4b7   : > { %v1059_v54 = vpop.xlane.xlu2 %1058 }
 0x4b8   : > { %2791 = vrcp.f32 %v1059_v54  ;;  %1674 = vmatpush.bf16.msrb.mxu1 %v2531_v55  ;;  %v2427_v55 = vld [vmem:[#allocation13 + $0x78] sm:$0xf0] }
 0x4bb   : > { %v1087_v6 = vpop.f32.mrf.mxu0 }
 0x4bc   : > { %1675 = vmatpush.bf16.msrb.mxu1 %v2530_v56 }
 0x4be   : > { %v1304_v58 = vpop.f32.mrf.mxu2  ;;  %v2792_v9 = vpop.eup %2791 }
 0x4bf   : > { %v1311_v63 = vmul.f32 %v2788_v61, %v1304_v58  ;;  %v1092_v13 = vmul.f32 %v2792_v9, %v1085_v0  ;;  %v2527_v58 = vld [vmem:[#allocation11 + $0x10] sm:$0xff]  ;;  %v2526_v61 = vld [vmem:[#allocation11 + $0x8] sm:$0xff] }
 0x4c0   : > { %1676 = vmatpush.bf16.msrb.mxu1 %v2529_v1  ;;  %v2417_v1 = vld [vmem:[#allocation13 + $0x60] sm:$0xf] }
 0x4c4   : > { %v1354_v16 = vpop.xlane.xlu2 %1353  ;;  %1677 = vmatpush.bf16.msrb.mxu1 %v2528_v57  ;;  %v2546_v57 = vld [vmem:[#allocation13 + $0x64] sm:$0xf0] }
 0x4c6   : > { %v1306_v35 = vpop.f32.mrf.mxu2 }
 0x4c7   : > { %v1312_v33 = vmul.f32 %v2790_v62, %v1306_v35  ;;  %v2525_v62 = vld [vmem:[#allocation11] sm:$0xff] }
 0x4c8   : > { %1678 = vmatpush.bf16.msrb.mxu1 %v2527_v58  ;;  %v2545_v58 = vld [vmem:[#allocation13 + $0x64] sm:$0xf] }
 0x4c9   : > { %v2710_v37 = vpack.i.bf16 %v1312_v33, %v1311_v63 }
 0x4cb   : > { %2711 = vrot.lane.b32.xlu0 %v2710_v37, %s3157_s6 }
 0x4cc   : > { %v1497_v17 = vpop.xlane.xlu2 %1496  ;;  %1679 = vmatpush.bf16.msrb.mxu1 %v2526_v61  ;;  %v2418_v61 = vor.u32 %v2546_v57, %v2417_v1  ;;  %v2561_v1 = vld [vmem:[#allocation14 + $0x60] sm:$0xff] }
 0x4d0   : > { %1680 = vmatpush.bf16.msrb.mxu1 %v2525_v62  ;;  %v2419_v62 = vld [vmem:[#allocation13 + $0x68] sm:$0xf0] }
 0x4d4   : > { %v1500_v27 = vpop.xlane.xlu1 %1499 }
 0x4e2   : > { %v1427_v3 = vpop.xlane.xlu0 %1426 }
 0x4ea   : > { %v3602_v39 = vpop.xlane.xlu0 %982 }
 0x4ed   : > { %v1231_v31 = vpop.f32.mrf.mxu0 }
 0x4f2   : > { %v1062_v7 = vpop.xlane.xlu0 %1061 }
 0x4f3   : > { %2793 = vrcp.f32 %v1062_v7 }
 0x4f5   : > { %v1233_v8 = vpop.f32.mrf.mxu0 }
 0x4f7   : > { %v1450_v42 = vpop.f32.mrf.mxu2 }
 0x4f9   : > { %v2794_v10 = vpop.eup %2793 }
 0x4fa   : > { %v1205_v12 = vpop.xlane.xlu0 %1204  ;;  %v1093_v30 = vmul.f32 %v2794_v10, %v1087_v6 }
 0x4fb   : > { %2795 = vrcp.f32 %v1205_v12 }
 0x4fc   : > { %v2715_v14 = vpack.i.bf16 %v1093_v30, %v1092_v13 }
 0x4fd   : > { %v1377_v15 = vpop.f32.mrf.mxu0 }
 0x4fe   : > { %2716 = vrot.lane.b32.xlu1 %v2715_v14, %s3159_s27 }
 0x4ff   : > { %v1452_v29 = vpop.f32.mrf.mxu2 }
 0x501   : > { %v2796_v21 = vpop.eup %2795 }
 0x502   : > { %v1208_v60 = vpop.xlane.xlu0 %1207  ;;  %v1238_v25 = vmul.f32 %v2796_v21, %v1231_v31 }
 0x503   : > { %2797 = vrcp.f32 %v1208_v60 }
 0x504   : > { %2799 = vrcp.f32 %v1424_v19 }
 0x505   : > { %v1379_v20 = vpop.f32.mrf.mxu0  ;;  %2801 = vrcp.f32 %v1427_v3 }
 0x506   : > { %2803 = vrcp.f32 %v1354_v16 }
 0x509   : > { %v2798_v34 = vpop.eup %2797 }
 0x50a   : > { %v1351_v23 = vpop.xlane.xlu0 %1350  ;;  %v1239_v26 = vmul.f32 %v2798_v34, %v1233_v8  ;;  %v2800_v36 = vpop.eup %2799 }
 0x50b   : > { %2805 = vrcp.f32 %v1351_v23  ;;  %v2802_v38 = vpop.eup %2801  ;;  %v1457_v44 = vmul.f32 %v2800_v36, %v1450_v42 }
 0x50c   : > { %v2720_v28 = vpack.i.bf16 %v1239_v26, %v1238_v25  ;;  %2807 = vrcp.f32 %v1497_v17  ;;  %v2804_v40 = vpop.eup %2803  ;;  %v1458_v41 = vmul.f32 %v2802_v38, %v1452_v29 }
 0x50d   : > { %v1523_v32 = vpop.f32.mrf.mxu0  ;;  %2809 = vrcp.f32 %v1500_v27  ;;  %v1385_v45 = vmul.f32 %v2804_v40, %v1379_v20 }
 0x50e   : > { %2721 = vrot.lane.b32.xlu2 %v2720_v28, %s3158_s16  ;;  %v2730_v47 = vpack.i.bf16 %v1458_v41, %v1457_v44  ;;  %2811 = vrcp.f32 %v3600_v5  ;;  %s2565_s16 = sshll.u32 %s3267_s23, 3  ;;  %s2045_s23 = scalar_lea.sflag [#allocation4], %s3388_s1 }
 0x50f   : > { %2813 = vrcp.f32 %v3602_v39 }
 0x511   : > { %v2806_v43 = vpop.eup %2805 }
 0x512   : > { %v1384_v46 = vmul.f32 %v2806_v43, %v1377_v15  ;;  %v2808_v59 = vpop.eup %2807 }
 0x513   : > { %v2810_v48 = vpop.eup %2809  ;;  %v1530_v50 = vmul.f32 %v2808_v59, %v1523_v32 }
 0x514   : > { %v2725_v24 = vpack.i.bf16 %v1385_v45, %v1384_v46  ;;  %v2812_v63 = vpop.eup %2811 }
 0x515   : > { %v1525_v49 = vpop.f32.mrf.mxu0  ;;  %v2814_v33 = vpop.eup %2813  ;;  %v1020_v6 = vmul.f32 %v2812_v63, %v3508_v22  ;;  %v2409_v63 = vld [vmem:[#allocation13 + $0x50] sm:$0xf] }
 0x516   : > { %v1531_v51 = vmul.f32 %v2810_v48, %v1525_v49  ;;  %2731 = vrot.lane.b32.xlu2 %v2730_v47, %s3161_s4  ;;  %2726 = vrot.lane.b32.xlu1 %v2725_v24, %s3156_s30  ;;  %v1019_v31 = vmul.f32 %v2814_v33, %v3505_v18  ;;  %v2544_v33 = vld [vmem:[#allocation13 + $0x54] sm:$0xf0]  ;;  %s3730_s4 = sld [smem:[#allocation29_spill]] }
 0x518   : > { %v2735_v52 = vpack.i.bf16 %v1531_v51, %v1530_v50  ;;  %v2425_v50 = vld [vmem:[#allocation13 + $0x70] sm:$0xf]  ;;  %v2548_v51 = vld [vmem:[#allocation13 + $0x74] sm:$0xf0] }
 0x519   : > { %v2426_v53 = vor.u32 %v2548_v51, %v2425_v50  ;;  %v2554_v51 = vld [vmem:[#allocation14 + $0x28] sm:$0xff] }
 0x51a   : > { %2736 = vrot.lane.b32.xlu0 %v2735_v52, %s3155_s28  ;;  %v2547_v52 = vld [vmem:[#allocation13 + $0x74] sm:$0xf] }
 0x51b   : > { %v2430_v56 = vor.u32 %v2547_v52, %v2427_v55  ;;  %1844 = vmatpush.bf16.msrb.mxu2 %v2426_v53  ;;  %v2562_v52 = vld [vmem:[#allocation14 + $0x68] sm:$0xff] }
 0x51c   : > { %s2056_s22 = scalar_lea.hbm %s3730_s4, %s2565_s16  ;;  %s3079_s30 = scalar_lea.hbm %s3730_s4, 16 }
 0x51d   : > { %1858 = vmatpush.bf16.msra.mxu3 %v2430_v56  ;;  %v2553_v56 = vld [vmem:[#allocation14 + $0x20] sm:$0xff]  ;;  %s2059_s29 = sshll.u32 %s2056_s22, 4  ;;  %s2060_s29 = int_to_ptr.hbm [resolvable:$true] %s2059_s29 }
 0x51e   : > { %s3073_s3 = sshra.s32 %s2060_s29, 4  ;;  %s3074_s3 = int_to_ptr.hbm [resolvable:$true] %s3073_s3 }
 0x51f   : > { %1845 = vmatpush.bf16.msrb.mxu2 %v2418_v61  ;;  %s3075_s24 = scalar_lea.hbm %s3074_s3, 8  ;;  %p3080_p12 = scmp.lt.s32.totalorder %s3074_s3, %s3730_s4 }
 0x520   : > { %p3076_p1 = scmp.ne.s32.totalorder %s3074_s3, %s3075_s24  ;;  %p3081_p8 = scmp.lt.s32.totalorder %s3079_s30, %s3075_s24 }
 0x522   : > { %p3077_p3 = pnand %p3076_p1, %p3354_p13  ;;  %p3082_p7 = por %p3081_p8, %p3080_p12 }
 0x524   : > { %p3078_p4 = pneg %p3077_p3 }
 0x526   : > { %p3083_p9 = pnand %p3082_p7, %p3078_p4 }
 0x527   : > { %v2707_v37 = vpop.permute.xlu0 %2706 }
 0x528   : > { %v2709_v9 = vunpack.i.h.bf16 %v2707_v37  ;;  %v2708_v5 = vunpack.i.l.bf16 %v2707_v37  ;;  %v2543_v37 = vld [vmem:[#allocation13 + $0x54] sm:$0xf] }
 0x53d   : > { %v2712_v10 = vpop.permute.xlu0 %2711 }
 0x53e   : > { %v2714_v22 = vunpack.i.h.bf16 %v2712_v10  ;;  %v2713_v16 = vunpack.i.l.bf16 %v2712_v10  ;;  %v2393_v10 = vld [vmem:[#allocation13 + $0x30] sm:$0xf] }
 0x568   : > { %v2722_v54 = vpop.permute.xlu2 %2721 }
 0x569   : > { %v2724_v13 = vunpack.i.h.bf16 %v2722_v54  ;;  %v2723_v30 = vunpack.i.l.bf16 %v2722_v54  ;;  %v2542_v54 = vld [vmem:[#allocation13 + $0x44] sm:$0xf0] }
 0x570   : > { %v2717_v35 = vpop.permute.xlu1 %2716  ;;  %v2732_v60 = vpop.permute.xlu2 %2731 }
 0x571   : > { %v2719_v0 = vunpack.i.h.bf16 %v2717_v35  ;;  %v2718_v3 = vunpack.i.l.bf16 %v2717_v35  ;;  %v2734_v25 = vunpack.i.h.bf16 %v2732_v60  ;;  %v2733_v26 = vunpack.i.l.bf16 %v2732_v60  ;;  %v2387_v60 = vld [vmem:[#allocation13 + $0x28] sm:$0xf0] }
 0x572   : > { %v2422_v35 = vor.u32 %v2545_v58, %v2419_v62 }
 0x573   : > { %v1589_v7 = vsel %vm948_vm7, %v1020_v6, %v2719_v0  ;;  %v1588_v8 = vsel %vm948_vm7, %v1019_v31, %v2718_v3  ;;  %v2410_v0 = vor.u32 %v2544_v33, %v2409_v63  ;;  %v2411_v3 = vld [vmem:[#allocation13 + $0x58] sm:$0xf0]  ;;  %v2401_v31 = vld [vmem:[#allocation13 + $0x40] sm:$0xf] }
 0x574   : > { %v1592_v39 = vsel %vm1590_vm8, %v1589_v7, %v2709_v9  ;;  %v1591_v12 = vsel %vm1590_vm8, %v1588_v8, %v2708_v5  ;;  %1859 = vmatpush.bf16.msra.mxu3 %v2422_v35  ;;  %v2414_v6 = vor.u32 %v2543_v37, %v2411_v3  ;;  %v2541_v7 = vld [vmem:[#allocation13 + $0x44] sm:$0xf]  ;;  %v2402_v8 = vor.u32 %v2542_v54, %v2401_v31  ;;  %v2403_v9 = vld [vmem:[#allocation13 + $0x48] sm:$0xf0] }
 0x575   : > { %v1594_v14 = vsel %vm1593_vm9, %v1591_v12, %v2723_v30  ;;  %v1595_v15 = vsel %vm1593_vm9, %v1592_v39, %v2724_v13  ;;  %1846 = vmatpush.bf16.msrb.mxu2 %v2410_v0  ;;  %v2406_v5 = vor.u32 %v2541_v7, %v2403_v9  ;;  %v2540_v39 = vld [vmem:[#allocation13 + $0x34] sm:$0xf0]  ;;  %v2539_v12 = vld [vmem:[#allocation13 + $0x34] sm:$0xf]  ;;  %v2395_v30 = vld [vmem:[#allocation13 + $0x38] sm:$0xf0] }
 0x576   : > { %v1597_v20 = vsel %vm1596_vm10, %v1594_v14, %v2713_v16  ;;  %v1598_v21 = vsel %vm1596_vm10, %v1595_v15, %v2714_v22  ;;  %v2394_v13 = vor.u32 %v2540_v39, %v2393_v10  ;;  %v2398_v14 = vor.u32 %v2539_v12, %v2395_v30  ;;  %v2385_v15 = vld [vmem:[#allocation13 + $0x20] sm:$0xf]  ;;  %v2538_v22 = vld [vmem:[#allocation13 + $0x24] sm:$0xf0]  ;;  %v2537_v16 = vld [vmem:[#allocation13 + $0x24] sm:$0xf] }
 0x577   : > { %v2742_v0 = vld [vmem:[%s3697_s7] ss:$0 sm:$0xff]  ;;  %v2560_v39 = vld [vmem:[#allocation14 + $0x58] sm:$0xff]  ;;  %v2551_v12 = vld [vmem:[#allocation14 + $0x10] sm:$0xff] }
 0x578   : > { %1860 = vmatpush.bf16.msra.mxu3 %v2414_v6  ;;  %v2743_v7 = vld [vmem:[%s3698_s8] ss:$0 sm:$0xff] }
 0x579   : > { %1847 = vmatpush.bf16.msrb.mxu2 %v2402_v8  ;;  %v2558_v30 = vld [vmem:[#allocation14 + $0x48] sm:$0xff] }
 0x57c   : > { %1861 = vmatpush.bf16.msra.mxu3 %v2406_v5 }
 0x57d   : > { %1848 = vmatpush.bf16.msrb.mxu2 %v2394_v13  ;;  %v2559_v13 = vld [vmem:[#allocation14 + $0x50] sm:$0xff] }
 0x580   : > { %1862 = vmatpush.bf16.msra.mxu3 %v2398_v14  ;;  %v2549_v14 = vld [vmem:[#allocation14] sm:$0xff] }
 0x588   : > { %v2727_v18 = vpop.permute.xlu1 %2726 }
 0x589   : > { %v2729_v42 = vunpack.i.h.bf16 %v2727_v18  ;;  %v2728_v19 = vunpack.i.l.bf16 %v2727_v18  ;;  %v2386_v18 = vor.u32 %v2538_v22, %v2385_v15  ;;  %v2557_v15 = vld [vmem:[#allocation14 + $0x40] sm:$0xff]  ;;  %v1758_v22 = vld [vmem:[%s3700_s10] sm:$0x3] }
 0x58b   : > { %v1600_v34 = vsel %vm1599_vm11, %v1597_v20, %v2728_v19  ;;  %v1601_v23 = vsel %vm1599_vm11, %v1598_v21, %v2729_v42  ;;  %v2390_v42 = vor.u32 %v2537_v16, %v2387_v60  ;;  %1849 = vmatpush.bf16.msrb.mxu2 %v2386_v18  ;;  %v2377_v19 = vld [vmem:[#allocation13 + $0x10] sm:$0xf]  ;;  %v2536_v20 = vld [vmem:[#allocation13 + $0x14] sm:$0xf0]  ;;  %v2535_v21 = vld [vmem:[#allocation13 + $0x14] sm:$0xf] }
 0x58c   : > { %v2737_v17 = vpop.permute.xlu0 %2736  ;;  %v1603_v29 = vsel %vm1602_vm12, %v1600_v34, %v2733_v26  ;;  %v1604_v32 = vsel %vm1602_vm12, %v1601_v23, %v2734_v25  ;;  %v2378_v34 = vor.u32 %v2536_v20, %v2377_v19  ;;  %v2379_v23 = vld [vmem:[#allocation13 + $0x18] sm:$0xf0]  ;;  %v2369_v25 = vld [vmem:[#allocation13] sm:$0xf]  ;;  %v2534_v26 = vld [vmem:[#allocation13 + $0x4] sm:$0xf0] }
 0x58d   : > { %v2739_v27 = vunpack.i.h.bf16 %v2737_v17  ;;  %v2738_v28 = vunpack.i.l.bf16 %v2737_v17  ;;  %1863 = vmatpush.bf16.msra.mxu3 %v2390_v42  ;;  %v1760_v60 = vperm.slane %v1758_v22, 0  ;;  %v1761_v42 = vperm.slane %v1758_v22, 1 }
 0x58f   : > { %v1606_v36 = vsel %vm1605_vm13, %v1603_v29, %v2738_v28  ;;  %v1607_v38 = vsel %vm1605_vm13, %v1604_v32, %v2739_v27  ;;  %v2382_v27 = vor.u32 %v2535_v21, %v2379_v23  ;;  %v2533_v28 = vld [vmem:[#allocation13 + $0x4] sm:$0xf]  ;;  %v2371_v29 = vld [vmem:[#allocation13 + $0x8] sm:$0xf0]  ;;  %1850 = vmatpush.bf16.msrb.mxu2 %v2378_v34 }
 0x590   : > { %v1608_v40 = vpack.c.bf16 %v1607_v38, %v1606_v36  ;;  %v2370_v36 = vor.u32 %v2534_v26, %v2369_v25  ;;  %v2374_v38 = vor.u32 %v2533_v28, %v2371_v29 }
 0x591   : > { %1864 = vmatpush.bf16.msra.mxu3 %v2382_v27 }
 0x592   : > { %1681 = vmatmul.bf16.vlgmr.msrb.gmra.mxu1 %v1608_v40 }
 0x593   : > { %1851 = vmatpush.bf16.msrb.mxu2 %v2370_v36 }
 0x595   : > { %1865 = vmatpush.bf16.msra.mxu3 %v2374_v38 }
 0x60f   : > { %v1682_v41 = vpop.f32.mrf.mxu1 }
 0x610   : > { %v3616_v43 = vadd.f32 %v1682_v41, %v3414_v2  ;;  %v2556_v41 = vld [vmem:[#allocation14 + $0x38] sm:$0xff] }
 0x611   : > { %2010 = vmatpush.bf16.msrb.mxu0 %v2556_v41 }
 0x612   : > { %1691 = vadd.xlane.f32.xlu1 %v3616_v43 }
 0x617   : > { %v1684_v44 = vpop.f32.mrf.mxu1 }
 0x618   : > { %v3620_v45 = vadd.f32 %v1684_v44, %v3417_v4  ;;  %v2564_v44 = vld [vmem:[#allocation14 + $0x78] sm:$0xff] }
 0x619   : > { %2024 = vmatpush.bf16.msra.mxu1 %v2564_v44 }
 0x61a   : > { %1693 = vadd.xlane.f32.xlu2 %v3620_v45 }
 0x685   : > { %v1692_v46 = vpop.xlane.xlu1 %1691 }
 0x686   : > { %v1695_v59 = vmul.f32 %v1692_v46, %v3420_v11 }
 0x688   : > { %v3625_v47 = vsub.f32 %v3616_v43, %v1695_v59 }
 0x68a   : > { %v1699_v24 = vmul.f32 %v3625_v47, %v3625_v47 }
 0x68c   : > { %1701 = vadd.xlane.f32.xlu0 %v1699_v24  ;;  %v2555_v24 = vld [vmem:[#allocation14 + $0x30] sm:$0xff] }
 0x68d   : > { %v1694_v2 = vpop.xlane.xlu2 %1693  ;;  %2011 = vmatpush.bf16.msrb.mxu0 %v2555_v24 }
 0x68e   : > { %v1696_v48 = vmul.f32 %v1694_v2, %v3420_v11  ;;  %v2563_v2 = vld [vmem:[#allocation14 + $0x70] sm:$0xff] }
 0x68f   : > { %2025 = vmatpush.bf16.msra.mxu1 %v2563_v2 }
 0x690   : > { %v3631_v49 = vsub.f32 %v3620_v45, %v1696_v48 }
 0x691   : > { %2012 = vmatpush.bf16.msrb.mxu0 %v2554_v51 }
 0x692   : > { %v1700_v4 = vmul.f32 %v3631_v49, %v3631_v49 }
 0x693   : > { %2026 = vmatpush.bf16.msra.mxu1 %v2562_v52 }
 0x694   : > { %1703 = vadd.xlane.f32.xlu1 %v1700_v4 }
 0x695   : > { %2013 = vmatpush.bf16.msrb.mxu0 %v2553_v56 }
 0x697   : > { %2027 = vmatpush.bf16.msra.mxu1 %v2561_v1 }
 0x69b   : > { %2028 = vmatpush.bf16.msra.mxu1 %v2560_v39 }
 0x69f   : > { %2029 = vmatpush.bf16.msra.mxu1 %v2559_v13 }
 0x6a3   : > { %2030 = vmatpush.bf16.msra.mxu1 %v2558_v30 }
 0x6a7   : > { %2031 = vmatpush.bf16.msra.mxu1 %v2557_v15 }
 0x6ff   : > { %v1702_v17 = vpop.xlane.xlu0 %1701 }
 0x700   : > { %v1705_v32 = vmul.f32 %v1702_v17, %v3420_v11 }
 0x702   : > { %v1707_v40 = vadd.f32 1e-06, %v1705_v32 }
 0x704   : > { %2815 = vrsqrt.f32 %v1707_v40  ;;  %vm1715_vm15 = vweird.f32 %v1707_v40 }
 0x707   : > { %v1704_v46 = vpop.xlane.xlu1 %1703 }
 0x708   : > { %v1706_v59 = vmul.f32 %v1704_v46, %v3420_v11 }
 0x70a   : > { %v2816_v48 = vpop.eup %2815  ;;  %v1708_v4 = vadd.f32 1e-06, %v1706_v59 }
 0x70b   : > { %v1710_v50 = vmul.f32 %v2816_v48, %v1707_v40  ;;  %vm1716_vm14 = vweird.f32 %v2816_v48  ;;  %v2744_v40 = vld [vmem:[%s3702_s12] ss:$0 sm:$0xff] }
 0x70c   : > { %2817 = vrsqrt.f32 %v1708_v4  ;;  %vm1717_vm0 = vmor %vm1715_vm15, %vm1716_vm14  ;;  %vm1725_vm2 = vweird.f32 %v1708_v4 }
 0x70d   : > { %v1711_v53 = vmul.f32 %v2816_v48, %v1710_v50 }
 0x70f   : > { %v1712_v55 = vmul.f32 0.5, %v1711_v53 }
 0x711   : > { %v1713_v57 = vsub.f32 1.5, %v1712_v55 }
 0x712   : > { %v2818_v11 = vpop.eup %2817 }
 0x713   : > { %v1714_v58 = vmul.f32 %v2816_v48, %v1713_v57  ;;  %v1720_v61 = vmul.f32 %v2818_v11, %v1708_v4  ;;  %vm1726_vm1 = vweird.f32 %v2818_v11 }
 0x714   : > { %vm1727_vm3 = vmor %vm1725_vm2, %vm1726_vm1 }
 0x715   : > { %v1721_v62 = vmul.f32 %v2818_v11, %v1720_v61  ;;  %v1718_v35 = vsel %vm1717_vm0, %v2816_v48, %v1714_v58 }
 0x716   : > { %v1729_v37 = vmul.f32 %v1718_v35, %v3625_v47  ;;  %v2552_v47 = vld [vmem:[#allocation14 + $0x18] sm:$0xff] }
 0x717   : > { %v1722_v63 = vmul.f32 0.5, %v1721_v62  ;;  %2014 = vmatpush.bf16.msrb.mxu0 %v2552_v47 }
 0x718   : > { %v1734_v54 = vmul.f32 %v2742_v0, %v1729_v37 }
 0x719   : > { %v1723_v33 = vsub.f32 1.5, %v1722_v63 }
 0x71a   : > { %v1739_v9 = vadd.f32 %v2743_v7, %v1734_v54 }
 0x71b   : > { %v1724_v3 = vmul.f32 %v2818_v11, %v1723_v33  ;;  %2015 = vmatpush.bf16.msrb.mxu0 %v2551_v12 }
 0x71d   : > { %v1728_v6 = vsel %vm1727_vm3, %v2818_v11, %v1724_v3 }
 0x71e   : > { %v1730_v31 = vmul.f32 %v1728_v6, %v3631_v49  ;;  %v2550_v49 = vld [vmem:[#allocation14 + $0x8] sm:$0xff] }
 0x71f   : > { %2016 = vmatpush.bf16.msrb.mxu0 %v2550_v49 }
 0x720   : > { %v1735_v8 = vmul.f32 %v2742_v0, %v1730_v31 }
 0x722   : > { %v1740_v5 = vadd.f32 %v2743_v7, %v1735_v8 }
 0x723   : > { %2017 = vmatpush.bf16.msrb.mxu0 %v2549_v14 }
 0x724   : > { %v1741_v10 = vpack.c.bf16 %v1740_v5, %v1739_v9 }
 0x726   : > { %1852 = vmatmul.bf16.vlgmr.msrb.gmra.mxu2 %v1741_v10  ;;  %1866 = vmatmul.bf16.vlgmr.msra.gmra.mxu3 %v1741_v10 }
 0x7a9   : > { %v1853_v16 = vpop.f32.mrf.mxu2  ;;  %v1867_v18 = vpop.f32.mrf.mxu3 }
 0x7aa   : > { %v1854_v19 = vadd.f32 %v1853_v16, %v1760_v60  ;;  %v1868_v20 = vadd.f32 %v1867_v18, %v1761_v42 }
 0x7ac   : > { %v1872_v26 = vmax.f32 %v1854_v19, 0.0  ;;  %v1873_v17 = vmax.f32 %v1868_v20, 0.0 }
 0x7b1   : > { %v1855_v21 = vpop.f32.mrf.mxu2  ;;  %v1869_v34 = vpop.f32.mrf.mxu3 }
 0x7b2   : > { %v1856_v23 = vadd.f32 %v1855_v21, %v1760_v60  ;;  %v1870_v25 = vadd.f32 %v1869_v34, %v1761_v42 }
 0x7b4   : > { %v1874_v27 = vmax.f32 %v1856_v23, 0.0  ;;  %v1875_v28 = vmax.f32 %v1870_v25, 0.0 }
 0x7b6   : > { %v1876_v29 = vpack.c.bf16 %v1874_v27, %v1872_v26  ;;  %v1877_v32 = vpack.c.bf16 %v1875_v28, %v1873_v17 }
 0x7b8   : > { %2018 = vmatmul.bf16.vlgmr.msrb.gmra.mxu0 %v1876_v29  ;;  %2032 = vmatmul.bf16.vlgmr.msra.gmra.mxu1 %v1877_v32 }
 0x835   : > { %v2019_v36 = vpop.f32.mrf.mxu0  ;;  %v2033_v38 = vpop.f32.mrf.mxu1 }
 0x836   : > { %v2020_v41 = vadd.f32 %v2744_v40, %v2019_v36 }
 0x838   : > { %v2034_v46 = vadd.f32 %v2033_v38, %v2020_v41 }
 0x83a   : > { %v2038_v48 = vadd.f32 %v2034_v46, %v3616_v43 }
 0x83d   : > { %v2021_v44 = vpop.f32.mrf.mxu0  ;;  %v2035_v24 = vpop.f32.mrf.mxu1 }
 0x83e   : > { %v2022_v59 = vadd.f32 %v2744_v40, %v2021_v44 }
 0x840   : > { %v2036_v2 = vadd.f32 %v2035_v24, %v2022_v59 }
 0x842   : > { %v2039_v4 = vadd.f32 %v2036_v2, %v3620_v45 }
 0x844   : > { %v2573_v50 = vpack.c.bf16 %v2039_v4, %v2038_v48 }
 0x846   : > { %2574 = vst [vmem:[%s628_s25] sm:$0xff] %v2573_v50  }
 0x847   : > { %3086 = shalt.err (!%p3083_p9)
}
 0x848   : > { %s3162_s1 = smov 4  }
 0x849   : > { %2605 = dma.vmem_to_hbm [thread:$0]  (%p3354_p13), %s2058_s9, 128, %s2060_s29, %s2045_s23, %s3157_s6, %s3157_s6, %s3162_s1  }
 0x84a PF: > { %s2074_s21 = sand.u32 1, %s3129_s18   ;;  %p3731_p10 = scmp.ge.s32.totalorder %s3141_s13, 2 }
 0x84b   : > { %s2075_s22 = scalar_lea.sflag [#allocation4], %s2074_s21 }
 0x84c   : > { %p2634_p11 = pnand %p3731_p10, %p3359_p5 }
 0x84e   : > { %p2635_p0 = pneg %p2634_p11 }
 0x850   : > { %3124 = dma.done.wait (%p2635_p0), %s2075_s22, 128  }
 0x851   : > { %3126 = vsyncadd (%p2635_p0), %s2075_s22, 4294967168  ;;  %p32_p2 = scmp.ge.s32.totalorder %s3334_s14, 4   ;;  %s3732_s18 = smov %s3133_s19 }
 0x852   : > { %s3733_s19 = smov %s3137_s20  ;;  %s3734_s20 = smov %s3346_s15 }
 0x853   : > { %s3735_s13 = smov %s3334_s14  ;;  %34 = sbr.rel (!%p32_p2) target bundleno = 17 (0x11), region = 153 }
 0x858   :  { %2081 = vsyncpa [#allocation3], 1 }
 0x859   :  { %2083 = vsyncpa [#allocation3 + $0x1], 1 }
 0x85a   :  { %2084 = vsyncpa [#allocation6], 1 }
 0x85b   :  { %2085 = vsyncpa [#allocation9], 1 }
 0x85c   :  { %2086 = vsyncpa [#allocation12], 1 }
 0x85d   :  { %2087 = vsyncpa [#allocation15], 1 }
 0x85e   :  { %2088 = vsyncpa [#allocation4], 1 }
 0x85f   :  { %2090 = vsyncpa [#allocation4 + $0x1], 1 }

// kernel: tpu_custom_call.1
= control target key start
LH: loop header
LB: loop body
LE: loop exit
PB: predicated region body
PF: predicated region fallthrough
CT: control target
= control target key end

     0   :  { %s3690_s0 = inlined_call_operand.hbm [shape: bf16[32,128], index: 0, kind: input, shape index: {}]   ;;  %s3691_s1 = inlined_call_operand.hbm [shape: f32[1,128], index: 1, kind: input, shape index: {}]   ;;  %s3692_s2 = inlined_call_operand.vmem [shape: f32[1,128], index: 2, kind: input, shape index: {}]   ;;  %s3693_s3 = inlined_call_operand.hbm [shape: bf16[128,128], index: 3, kind: input, shape index: {}]   ;;  %s3694_s4 = inlined_call_operand.hbm [shape: bf16[128,128], index: 4, kind: input, shape index: {}]   ;;  %s3695_s5 = inlined_call_operand.hbm [shape: bf16[128,128], index: 5, kind: input, shape index: {}]   ;;  %s3696_s6 = inlined_call_operand.hbm [shape: bf16[128,128], index: 6, kind: input, shape index: {}]   ;;  %s3697_s7 = inlined_call_operand.vmem [shape: f32[1,128], index: 7, kind: input, shape index: {}]   ;;  %s3698_s8 = inlined_call_operand.vmem [shape: f32[1,128], index: 8, kind: input, shape index: {}]   ;;  %s3699_s9 = inlined_call_operand.hbm [shape: bf16[128,256], index: 9, kind: input, shape index: {}]   ;;  %s3700_s10 = inlined_call_operand.vmem [shape: f32[1,256], index: 10, kind: input, shape index: {}]   ;;  %s3701_s11 = inlined_call_operand.hbm [shape: bf16[256,128], index: 11, kind: input, shape index: {}]   ;;  %s3702_s12 = inlined_call_operand.vmem [shape: f32[1,128], index: 12, kind: input, shape index: {}]   ;;  %s3703_s13 = inlined_call_operand.vmem [shape: f32[1,128], index: 13, kind: input, shape index: {}]   ;;  %s3704_s14 = inlined_call_operand.vmem [shape: f32[1,128], index: 14, kind: input, shape index: {}]   ;;  %s3705_s15 = inlined_call_operand.hbm [shape: bf16[32,128], index: 15, kind: output, shape index: {}]  }
   0x1   :  { %3709 = sst [smem:[#allocation23_spill]] %s3691_s1 }
   0x2   :  { %3710 = sst [smem:[#allocation24_spill]] %s3693_s3 }
   0x3   :  { %3711 = sst [smem:[#allocation25_spill]] %s3694_s4 }
   0x4   :  { %3712 = sst [smem:[#allocation26_spill]] %s3695_s5 }
   0x5   :  { %3713 = sst [smem:[#allocation27_spill]] %s3696_s6 }
   0x6   :  { %3714 = sst [smem:[#allocation28_spill]] %s3699_s9 }
   0x7   :  { %3715 = sst [smem:[#allocation29_spill]] %s3705_s15 }
   0x8   :  { %20 = vsyncpa [#allocation3], 0 }
   0x9   :  { %22 = vsyncpa [#allocation3 + $0x1], 0 }
   0xa   :  { %23 = vsyncpa [#allocation6], 0 }
   0xb   :  { %24 = vsyncpa [#allocation9], 0 }
   0xc   :  { %25 = vsyncpa [#allocation12], 0 }
   0xd   :  { %26 = vsyncpa [#allocation15], 0 }
   0xe   :  { %27 = vsyncpa [#allocation4], 0 }
   0xf   :  { %29 = vsyncpa [#allocation4 + $0x1], 0  ;;  %s3243_s18 = smov 0   ;;  %s3245_s19 = smov 0  }
  0x10   :  { %s3247_s20 = smov 0   ;;  %s3249_s13 = smov 0  }
  0x11 LB: > { %s3716_s1 = sld [smem:[#allocation23_spill]]  ;;  %s3267_s23 = sadd.s32 4294967295, %s3141_s13   ;;  %s3141_s13 = sphi %s3249_s13, %s3735_s13   ;;  %s3137_s20 = sphi %s3247_s20, %s3734_s20   ;;  %s3133_s19 = sphi %s3245_s19, %s3733_s19   ;;  %s3129_s18 = sphi %s3243_s18, %s3732_s18  }
  0x12   : > { %p2201_p0 = scmp.ge.s32.totalorder %s3141_s13, 1  ;;  %p56_p1 = scmp.eq.s32.totalorder %s3267_s23, 0 }
  0x13   : > { %p386_p2 = scmp.lt.s32.totalorder %s3141_s13, 3  ;;  %s3143_s25 = smov [#allocation5]  }
  0x14   : > { %s400_s26 = sshll.u32 %s3143_s25, 4  ;;  %s3718_s4 = sld [smem:[#allocation25_spill]]  ;;  %s401_s26 = int_to_ptr.vmem [resolvable:$true] %s400_s26 }
  0x15   : > { %p3272_p3 = pnand %p2201_p0, %p386_p2  ;;  %s3720_s6 = sld [smem:[#allocation27_spill]] }
  0x16   : > { %s3144_s21 = smov [#allocation8]   ;;  %s3707_s27 = smov 64  }
  0x17   : > { %s398_s22 = sshll.u32 %s3716_s1, 4  ;;  %p2607_p5 = pneg %p3272_p3  ;;  %s399_s22 = int_to_ptr.hbm [resolvable:$true] %s398_s22 }
  0x18   : > { %s428_s25 = sshll.u32 %s3144_s21, 4  ;;  %s3708_s28 = smov 4   ;;  %s429_s25 = int_to_ptr.vmem [resolvable:$true] %s428_s25 }
  0x19   : > { %p3284_p6 = pnand %p2607_p5, %p56_p1  ;;  %s3721_s3 = sld [smem:[#allocation24_spill]] }
  0x1a   : > { %s426_s29 = sshll.u32 %s3718_s4, 4  ;;  %s3147_s16 = smov [#allocation11]   ;;  %s427_s29 = int_to_ptr.hbm [resolvable:$true] %s426_s29 }
  0x1b   : > { %s454_s14 = sshll.u32 %s3720_s6, 4  ;;  %s456_s17 = sshll.u32 %s3147_s16, 4  ;;  %s455_s14 = int_to_ptr.hbm [resolvable:$true] %s454_s14  ;;  %s457_s17 = int_to_ptr.vmem [resolvable:$true] %s456_s17 }
  0x1c   : > { %2610 = dma.hbm_to_vmem [thread:$0]  (!%p3284_p6), %s399_s22, 16, %s401_s26, [#allocation6]  }
  0x1d   : > { %2616 = dma.hbm_to_vmem [thread:$0]  (!%p3284_p6), %s427_s29, 1024, %s429_s25, [#allocation9], %s3707_s27, %s3707_s27, %s3708_s28  }
  0x1e   : > { %2622 = dma.hbm_to_vmem [thread:$0]  (!%p3284_p6), %s455_s14, 1024, %s457_s17, [#allocation12], %s3707_s27, %s3707_s27, %s3708_s28  }
  0x1f   : > { %s412_s15 = sshll.u32 %s3721_s3, 4  ;;  %s3148_s22 = smov [#allocation7]   ;;  %s413_s15 = int_to_ptr.hbm [resolvable:$true] %s412_s15 }
  0x20   : > { %s414_s26 = sshll.u32 %s3148_s22, 4  ;;  %s3722_s5 = sld [smem:[#allocation26_spill]]  ;;  %s415_s26 = int_to_ptr.vmem [resolvable:$true] %s414_s26 }
  0x21   : > { %2613 = dma.hbm_to_vmem [thread:$0]  (!%p3284_p6), %s413_s15, 1024, %s415_s26, [#allocation6], %s3707_s27, %s3707_s27, %s3708_s28  }
  0x22   : > { %s3723_s9 = sld [smem:[#allocation28_spill]]  ;;  %s3149_s16 = smov [#allocation10]  }
  0x23   : > { %s442_s14 = sshll.u32 %s3149_s16, 4  ;;  %s3150_s6 = smov [#allocation13]   ;;  %s443_s14 = int_to_ptr.vmem [resolvable:$true] %s442_s14 }
  0x24   : > { %s476_s15 = sshll.u32 %s3150_s6, 4  ;;  %s3151_s17 = smov 128   ;;  %s477_s15 = int_to_ptr.vmem [resolvable:$true] %s476_s15 }
  0x25   : > { %s3152_s22 = smov 8   ;;  %s491_s1 = sshll.u32 %s3701_s11, 4  ;;  %s492_s1 = int_to_ptr.hbm [resolvable:$true] %s491_s1 }
  0x26   : > { %s440_s29 = sshll.u32 %s3722_s5, 4  ;;  %s2200_s16 = sadd.s32 4294967294, %s3141_s13   ;;  %s441_s29 = int_to_ptr.hbm [resolvable:$true] %s440_s29 }
  0x27   : > { %2619 = dma.hbm_to_vmem [thread:$0]  (!%p3284_p6), %s441_s29, 1024, %s443_s14, [#allocation9], %s3707_s27, %s3707_s27, %s3708_s28  }
  0x28   : > { %s474_s25 = sshll.u32 %s3723_s9, 4  ;;  %s3153_s29 = smov [#allocation14]   ;;  %s475_s25 = int_to_ptr.hbm [resolvable:$true] %s474_s25 }
  0x29   : > { %2625 = dma.hbm_to_vmem [thread:$0]  (!%p3284_p6), %s475_s25, 2048, %s477_s15, [#allocation12], %s3151_s17, %s3151_s17, %s3152_s22  }
  0x2a   : > { %s493_s4 = sshll.u32 %s3153_s29, 4  ;;  %s3334_s14 = sadd.s32 1, %s3141_s13   ;;  %s494_s4 = int_to_ptr.vmem [resolvable:$true] %s493_s4 }
  0x2b   : > { %2628 = dma.hbm_to_vmem [thread:$0]  (!%p3284_p6), %s492_s1, 2048, %s494_s4, [#allocation15], %s3707_s27, %s3707_s27, %s3708_s28  }
  0x2c   : > { %s42_s25 = sadd.s32 1, %s3137_s20  ;;  %s39_s6 = ssub.s32 %s3141_s13, %s3334_s14 }
  0x2d   : > { %p49_p7 = scmp.ne.s32.totalorder %s3137_s20, %s3133_s19  ;;  %p40_p8 = scmp.eq.s32.totalorder %s39_s6, 0 }
  0x2e   : > { %p50_p9 = scmp.eq.s32.totalorder %s3141_s13, 0  ;;  %p55_p10 = scmp.ne.s32.totalorder %s3133_s19, %s3129_s18 }
  0x2f   : > { %p373_p11 = scmp.eq.s32.totalorder %s3267_s23, 1  ;;  %p379_p0 = scmp.eq.s32.totalorder %s2200_s16, 1 }
  0x30   : > { %s3346_s15 = scalar_select %p40_p8, %s3137_s20, %s42_s25  }
  0x31   : > { %p3350_p12 = por %p56_p1, %p55_p10  ;;  %p3354_p13 = por %p373_p11, %p49_p7 }
  0x32   : > { %p51_p2 = por %p50_p9, %p49_p7  ;;  %s516_s22 = sand.u32 1, %s3137_s20  }
  0x33   : > { %p3359_p5 = por %p379_p0, %p55_p10  ;;  %p2644_p6 = scmp.lt.s32.totalorder %s3141_s13, 2 }
  0x34   : > { %s2210_s21 = sshll.u32 %s516_s22, 3  ;;  %s2500_s1 = sshll.u32 %s3141_s13, 3 }
  0x35   : > { %s525_s25 = scalar_lea.hbm %s3690_s0, %s2500_s1  ;;  %s520_s27 = scalar_lea.vmem [#allocation2], %s2210_s21 }
  0x36   : > { %s526_s6 = sshll.u32 %s525_s25, 4  ;;  %s528_s28 = sshll.u32 %s520_s27, 4  ;;  %s527_s6 = int_to_ptr.hbm [resolvable:$true] %s526_s6  ;;  %s529_s28 = int_to_ptr.vmem [resolvable:$true] %s528_s28 }
  0x37   : > { %p3368_p8 = pnand %p2644_p6, %p51_p2  ;;  %s517_s3 = scalar_lea.sflag [#allocation3], %s516_s22 }
  0x38   : > { %s3029_s5 = sshra.s32 %s527_s6, 4  ;;  %s3036_s27 = scalar_lea.hbm %s3690_s0, 16  ;;  %s3030_s5 = int_to_ptr.hbm [resolvable:$true] %s3029_s5 }
  0x39   : > { %s3031_s9 = scalar_lea.hbm %s3030_s5, 8  ;;  %p3033_p9 = pneg %p3368_p8 }
  0x3a   : > { %p3032_p7 = scmp.ne.s32.totalorder %s3030_s5, %s3031_s9  ;;  %p3037_p0 = scmp.lt.s32.totalorder %s3030_s5, %s3690_s0 }
  0x3b   : > { %p3038_p2 = scmp.lt.s32.totalorder %s3036_s27, %s3031_s9 }
  0x3c   : > { %p3034_p10 = pnand %p3033_p9, %p3032_p7 }
  0x3d   : > { %p3039_p6 = por %p3038_p2, %p3037_p0 }
  0x3e   : > { %p3035_p11 = pneg %p3034_p10 }
  0x40   : > { %p3040_p4 = pnand %p3039_p6, %p3035_p11 }
  0x42   : > { %3043 = shalt.err (!%p3040_p4)
}
  0x43   : > { %s3728_s22 = smov 4   ;;  %s3729_s25 = smov 64  }
  0x44   : > { %2632 = dma.hbm_to_vmem [thread:$0]  (!%p3368_p8), %s527_s6, 128, %s529_s28, %s517_s3, %s3729_s25, %s3729_s25, %s3728_s22  }
  0x45   : > { %540 = sbr.rel (%p3272_p3) target bundleno = 2122 (0x84a), region = 80  ;;  %s3388_s1 = sand.u32 (!%p3272_p3), 1, %s3133_s19  }
  0x46   : > { %s2214_s5 = sshll.u32 (!%p3272_p3), %s3388_s1, 3  ;;  %s543_s9 = scalar_lea.sflag (!%p3272_p3), [#allocation3], %s3388_s1 }
  0x47   : > { %s546_s29 = scalar_lea.vmem (!%p3272_p3), [#allocation2], %s2214_s5 }
  0x4a   : > { %3104 = dma.done.wait (%p3350_p12), %s543_s9, 128  }
  0x4b   : > { %3106 = vsyncadd (%p3350_p12), %s543_s9, 4294967168 }
  0x4c   : > { %3108 = dma.done.wait (%p56_p1), [#allocation6], 1040  }
  0x4d   : > { %3110 = vsyncadd (%p56_p1), [#allocation6], 4294966256 }
  0x4e   : > { %3112 = dma.done.wait (%p56_p1), [#allocation9], 2048  }
  0x4f   : > { %3114 = vsyncadd (%p56_p1), [#allocation9], 4294965248 }
  0x50   : > { %3116 = dma.done.wait (%p56_p1), [#allocation12], 3072  }
  0x51   : > { %3118 = vsyncadd (%p56_p1), [#allocation12], 4294964224 }
  0x52   : > { %3120 = dma.done.wait (%p56_p1), [#allocation15], 2048  }
  0x53   : > { %3122 = vsyncadd (%p56_p1), [#allocation15], 4294965248  ;;  %v2567_v0 = vld [vmem:[%s546_s29] sm:$0xff]   ;;  %v3154_v5 = vmov 128.0   ;;  %v2505_v29 = vld [vmem:[#allocation7 + $0x20] sm:$0xff]  ;;  %vm948_vm7 = vcmask 130048  }
  0x54   : > { %v2568_v1 = vunpack.c.l.bf16 %v2567_v0  ;;  %v2569_v3 = vunpack.c.h.bf16 %v2567_v0  ;;  %2745 = vrcp.f32 %v3154_v5  ;;  %v2508_v20 = vld [vmem:[#allocation7 + $0x38] sm:$0xff]  ;;  %v2507_v23 = vld [vmem:[#allocation7 + $0x30] sm:$0xff]  ;;  %v2506_v26 = vld [vmem:[#allocation7 + $0x28] sm:$0xff]  ;;  %s3155_s28 = smov 112   ;;  %s3156_s30 = smov 80   ;;  %vm1590_vm8 = vcmask 261120  }
  0x55   : > { %v2516_v21 = vld [vmem:[#allocation8 + $0x38] sm:$0xff]  ;;  %762 = vmatpush.bf16.msra.mxu0 %v2508_v20  ;;  %v2515_v24 = vld [vmem:[#allocation8 + $0x30] sm:$0xff]  ;;  %v2514_v27 = vld [vmem:[#allocation8 + $0x28] sm:$0xff]  ;;  %s3157_s6 = smov 64   ;;  %s3158_s16 = smov 48   ;;  %vm1593_vm9 = vcmask 392192  }
  0x56   : > { %v3414_v2 = vmul.f32 11.313708, %v2568_v1  ;;  %v3417_v4 = vmul.f32 11.313708, %v2569_v3  ;;  %v2524_v22 = vld [vmem:[#allocation10 + $0x38] sm:$0xff]  ;;  %842 = vmatpush.bf16.msra.mxu1 %v2516_v21  ;;  %v2523_v25 = vld [vmem:[#allocation10 + $0x30] sm:$0xff] }
  0x57   : > { %922 = vmatpush.bf16.msra.mxu2 %v2524_v22  ;;  %v2522_v28 = vld [vmem:[#allocation10 + $0x28] sm:$0xff]  ;;  %v2513_v30 = vld [vmem:[#allocation8 + $0x20] sm:$0xff]  ;;  %v2504_v32 = vld [vmem:[#allocation7 + $0x18] sm:$0xff]  ;;  %s3159_s27 = smov 16   ;;  %s3160_s21 = smov 32   ;;  %vm1596_vm10 = vcmask 523264  }
  0x58   : > { %640 = vadd.xlane.f32.xlu0 %v3414_v2  ;;  %v2521_v31 = vld [vmem:[#allocation10 + $0x20] sm:$0xff]  ;;  %v2512_v33 = vld [vmem:[#allocation8 + $0x18] sm:$0xff]  ;;  %v2503_v35 = vld [vmem:[#allocation7 + $0x10] sm:$0xff]  ;;  %s3161_s4 = smov 96   ;;  %vm1599_vm11 = vcmask 654336   ;;  %vm1602_vm12 = vcmask 785408  }
  0x59   : > { %763 = vmatpush.bf16.msra.mxu0 %v2507_v23  ;;  %v2520_v34 = vld [vmem:[#allocation10 + $0x18] sm:$0xff]  ;;  %v2511_v36 = vld [vmem:[#allocation8 + $0x10] sm:$0xff]  ;;  %v2502_v38 = vld [vmem:[#allocation7 + $0x8] sm:$0xff]  ;;  %vm1605_vm13 = vcmask 916480   ;;  %s628_s25 = scalar_lea.vmem [#allocation16], %s2214_s5 }
  0x5a   : > { %v2746_v6 = vpop.eup %2745  ;;  %843 = vmatpush.bf16.msra.mxu1 %v2515_v24  ;;  %v2519_v37 = vld [vmem:[#allocation10 + $0x10] sm:$0xff]  ;;  %v2510_v39 = vld [vmem:[#allocation8 + $0x8] sm:$0xff]  ;;  %v2501_v42 = vld [vmem:[#allocation7] sm:$0xff]  ;;  %s2057_s9 = sshll.u32 %s628_s25, 4  ;;  %s2058_s9 = int_to_ptr.vmem [resolvable:$true] %s2057_s9 }
  0x5b   : > { %v645_v7 = vmul.f32 128.0, %v2746_v6  ;;  %vm649_vm0 = vweird.f32 %v2746_v6  ;;  %923 = vmatpush.bf16.msra.mxu2 %v2523_v25  ;;  %v2518_v40 = vld [vmem:[#allocation10 + $0x8] sm:$0xff]  ;;  %v2509_v43 = vld [vmem:[#allocation8] sm:$0xff]  ;;  %v2740_v63 = vld [vmem:[#allocation5] ss:$0 sm:$0xff] }
  0x5c   : > { %v2517_v45 = vld [vmem:[#allocation10] sm:$0xff] }
  0x5d   : > { %v646_v8 = vsub.f32 1.0, %v645_v7  ;;  %764 = vmatpush.bf16.msra.mxu0 %v2506_v26 }
  0x5e   : > { %844 = vmatpush.bf16.msra.mxu1 %v2514_v27 }
  0x5f   : > { %v647_v9 = vmul.f32 %v2746_v6, %v646_v8  ;;  %924 = vmatpush.bf16.msra.mxu2 %v2522_v28 }
  0x60   : > { %642 = vadd.xlane.f32.xlu0 %v3417_v4 }
  0x61   : > { %v648_v10 = vadd.f32 %v2746_v6, %v647_v9  ;;  %765 = vmatpush.bf16.msra.mxu0 %v2505_v29 }
  0x62   : > { %845 = vmatpush.bf16.msra.mxu1 %v2513_v30 }
  0x63   : > { %v3420_v11 = vsel %vm649_vm0, %v2746_v6, %v648_v10  ;;  %925 = vmatpush.bf16.msra.mxu2 %v2521_v31  ;;  %v2741_v6 = vld [vmem:[%s3692_s2] ss:$0 sm:$0xff] }
  0x65   : > { %766 = vmatpush.bf16.msra.mxu0 %v2504_v32 }
  0x66   : > { %846 = vmatpush.bf16.msra.mxu1 %v2512_v33 }
  0x67   : > { %926 = vmatpush.bf16.msra.mxu2 %v2520_v34 }
  0x69   : > { %767 = vmatpush.bf16.msra.mxu0 %v2503_v35 }
  0x6a   : > { %847 = vmatpush.bf16.msra.mxu1 %v2511_v36 }
  0x6b   : > { %927 = vmatpush.bf16.msra.mxu2 %v2519_v37 }
  0x6d   : > { %768 = vmatpush.bf16.msra.mxu0 %v2502_v38 }
  0x6e   : > { %848 = vmatpush.bf16.msra.mxu1 %v2510_v39 }
  0x6f   : > { %928 = vmatpush.bf16.msra.mxu2 %v2518_v40 }
  0x71   : > { %769 = vmatpush.bf16.msra.mxu0 %v2501_v42 }
  0x72   : > { %849 = vmatpush.bf16.msra.mxu1 %v2509_v43 }
  0x73   : > { %929 = vmatpush.bf16.msra.mxu2 %v2517_v45 }
  0xcb   : > { %v641_v12 = vpop.xlane.xlu0 %640 }
  0xcc   : > { %v651_v13 = vmul.f32 %v3420_v11, %v641_v12 }
  0xce   : > { %v3424_v14 = vsub.f32 %v3414_v2, %v651_v13 }
  0xd0   : > { %v655_v15 = vmul.f32 %v3424_v14, %v3424_v14 }
  0xd2   : > { %657 = vadd.xlane.f32.xlu1 %v655_v15 }
  0xd3   : > { %v643_v16 = vpop.xlane.xlu0 %642 }
  0xd4   : > { %v652_v17 = vmul.f32 %v3420_v11, %v643_v16 }
  0xd6   : > { %v3430_v18 = vsub.f32 %v3417_v4, %v652_v17 }
  0xd8   : > { %v656_v19 = vmul.f32 %v3430_v18, %v3430_v18 }
  0xda   : > { %659 = vadd.xlane.f32.xlu1 %v656_v19 }
 0x145   : > { %v658_v41 = vpop.xlane.xlu1 %657 }
 0x146   : > { %v661_v44 = vmul.f32 %v658_v41, %v3420_v11 }
 0x148   : > { %v663_v46 = vadd.f32 1e-06, %v661_v44 }
 0x14a   : > { %2747 = vrsqrt.f32 %v663_v46  ;;  %vm671_vm2 = vweird.f32 %v663_v46 }
 0x14d   : > { %v660_v47 = vpop.xlane.xlu1 %659 }
 0x14e   : > { %v662_v48 = vmul.f32 %v660_v47, %v3420_v11 }
 0x150   : > { %v2748_v49 = vpop.eup %2747  ;;  %v664_v50 = vadd.f32 1e-06, %v662_v48 }
 0x151   : > { %v666_v51 = vmul.f32 %v2748_v49, %v663_v46  ;;  %vm672_vm1 = vweird.f32 %v2748_v49 }
 0x152   : > { %2749 = vrsqrt.f32 %v664_v50  ;;  %vm673_vm3 = vmor %vm671_vm2, %vm672_vm1  ;;  %vm681_vm5 = vweird.f32 %v664_v50 }
 0x153   : > { %v667_v52 = vmul.f32 %v2748_v49, %v666_v51 }
 0x155   : > { %v668_v53 = vmul.f32 0.5, %v667_v52 }
 0x157   : > { %v669_v54 = vsub.f32 1.5, %v668_v53 }
 0x158   : > { %v2750_v55 = vpop.eup %2749 }
 0x159   : > { %v670_v56 = vmul.f32 %v2748_v49, %v669_v54  ;;  %v676_v57 = vmul.f32 %v2750_v55, %v664_v50  ;;  %vm682_vm4 = vweird.f32 %v2750_v55 }
 0x15a   : > { %vm683_vm6 = vmor %vm681_vm5, %vm682_vm4 }
 0x15b   : > { %v677_v58 = vmul.f32 %v2750_v55, %v676_v57  ;;  %v674_v59 = vsel %vm673_vm3, %v2748_v49, %v670_v56 }
 0x15c   : > { %v685_v62 = vmul.f32 %v674_v59, %v3424_v14 }
 0x15d   : > { %v678_v60 = vmul.f32 0.5, %v677_v58 }
 0x15e   : > { %v690_v5 = vmul.f32 %v2740_v63, %v685_v62 }
 0x15f   : > { %v679_v61 = vsub.f32 1.5, %v678_v60 }
 0x160   : > { %v695_v8 = vadd.f32 %v2741_v6, %v690_v5 }
 0x161   : > { %v680_v0 = vmul.f32 %v2750_v55, %v679_v61 }
 0x163   : > { %v684_v1 = vsel %vm683_vm6, %v2750_v55, %v680_v0 }
 0x164   : > { %v686_v3 = vmul.f32 %v684_v1, %v3430_v18 }
 0x166   : > { %v691_v7 = vmul.f32 %v2740_v63, %v686_v3 }
 0x168   : > { %v696_v9 = vadd.f32 %v2741_v6, %v691_v7 }
 0x16a   : > { %v697_v10 = vpack.c.bf16 %v696_v9, %v695_v8 }
 0x16c   : > { %770 = vmatmul.bf16.vlgmr.msra.gmra.mxu0 %v697_v10  ;;  %850 = vmatmul.bf16.vlgmr.msra.gmra.mxu1 %v697_v10 }
 0x16d   : > { %930 = vmatmul.bf16.vlgmr.msra.gmra.mxu2 %v697_v10 }
 0x1e9   : > { %v771_v12 = vpop.f32.mrf.mxu0  ;;  %v851_v13 = vpop.f32.mrf.mxu1 }
 0x1ea   : > { %v776_v14 = vpack.c.bf16 %v771_v12, %v771_v12  ;;  %v856_v15 = vpack.c.bf16 %v851_v13, %v851_v13 }
 0x1ec   : > { %v940_v21 = vunpack.c.l.b16 %v776_v14  ;;  %v945_v22 = vunpack.c.l.b16 %v856_v15 }
 0x1f0   : > { %v931_v16 = vpop.f32.mrf.mxu2 }
 0x1f1   : > { %v773_v17 = vpop.f32.mrf.mxu0  ;;  %v853_v19 = vpop.f32.mrf.mxu1  ;;  %v936_v27 = vpack.c.bf16 %v931_v16, %v931_v16 }
 0x1f2   : > { %v777_v18 = vpack.c.bf16 %v773_v17, %v773_v17  ;;  %v857_v20 = vpack.c.bf16 %v853_v19, %v853_v19 }
 0x1f3   : > { %v996_v31 = vunpack.c.l.b16 %v936_v27 }
 0x1f4   : > { %v941_v23 = vunpack.c.l.b16 %v777_v18  ;;  %v946_v24 = vunpack.c.l.b16 %v857_v20 }
 0x1f6   : > { %v942_v25 = vpack.c.b16 %v941_v23, %v940_v21  ;;  %v947_v26 = vpack.c.b16 %v946_v24, %v945_v22 }
 0x1f8   : > { %v933_v28 = vpop.f32.mrf.mxu2  ;;  %1023 = vrot.lane.b32.xlu0 %v947_v26, %s3155_s28  ;;  %1021 = vrot.lane.b32.xlu1 %v942_v25, %s3155_s28  ;;  %v953_v29 = vsel %vm948_vm7, %v947_v26, 0 }
 0x1f9   : > { %v937_v30 = vpack.c.bf16 %v933_v28, %v933_v28  ;;  %962 = vmatpush.bf16.xpose.msra.mxu3 %v953_v29 }
 0x1fb   : > { %v997_v32 = vunpack.c.l.b16 %v937_v30 }
 0x1fd   : > { %v3444_v33 = vpack.c.b16 %v997_v32, %v996_v31 }
 0x200   : > { %1169 = vrot.lane.b32.xlu0 %v947_v26, %s3156_s30  ;;  %1167 = vrot.lane.b32.xlu1 %v942_v25, %s3156_s30 }
 0x201   : > { %1010 = vmatpush.bf16.msrb.mxu3 %v3444_v33 }
 0x202   : > { %2319 = vmatmul.msk.bf16.vlgmr.msra.gmra.mxu3 %vm948_vm7, %v942_v25 }
 0x208   : > { %1242 = vrot.lane.b32.xlu0 %v947_v26, %s3157_s6  ;;  %1240 = vrot.lane.b32.xlu1 %v942_v25, %s3157_s6 }
 0x210   : > { %1313 = vrot.lane.b32.xlu0 %v942_v25, %s3158_s16  ;;  %1461 = vrot.lane.b32.xlu1 %v947_v26, %s3159_s27 }
 0x218   : > { %1386 = vrot.lane.b32.xlu0 %v942_v25, %s3160_s21  ;;  %1216 = vrot.lane.b32.xlu1 %v3444_v33, %s3156_s30 }
 0x220   : > { %1070 = vrot.lane.b32.xlu0 %v3444_v33, %s3155_s28 }
 0x26a   : > { %v1024_v34 = vpop.permute.xlu0 %1023  ;;  %v1022_v36 = vpop.permute.xlu1 %1021 }
 0x26b   : > { %v1029_v35 = vsel %vm948_vm7, %v1024_v34, 0 }
 0x26c   : > { %1038 = vmatpush.bf16.xpose.msra.mxu3 %v1029_v35 }
 0x272   : > { %v1170_v37 = vpop.permute.xlu0 %1169  ;;  %v3460_v38 = vpop.permute.xlu1 %1167 }
 0x273   : > { %v1175_v9 = vsel %vm948_vm7, %v1170_v37, 0 }
 0x27a   : > { %v1243_v39 = vpop.permute.xlu0 %1242  ;;  %v1241_v41 = vpop.permute.xlu1 %1240 }
 0x27b   : > { %v1248_v40 = vsel %vm948_vm7, %v1243_v39, 0 }
 0x27c   : > { %1257 = vmatpush.bf16.xpose.msrb.mxu1 %v1248_v40 }
 0x282   : > { %v3463_v42 = vpop.permute.xlu0 %1313  ;;  %v1462_v45 = vpop.permute.xlu1 %1461 }
 0x283   : > { %2327 = vmatmul.msk.bf16.vlgmr.msrb.gmra.mxu1 %vm948_vm7, %v1241_v41  ;;  %v1467_v17 = vsel %vm948_vm7, %v1462_v45, 0 }
 0x285   : > { %v964_v43 = vpop.f32.mrf.mxu3 }
 0x286   : > { %v969_v44 = vsel %vm948_vm7, %v964_v43, -inf }
 0x287   : > { %970 = vmax.xlane.f32.xlu2 %v969_v44 }
 0x28a   : > { %v1387_v46 = vpop.permute.xlu0 %1386  ;;  %v1217_v50 = vpop.permute.xlu1 %1216 }
 0x28d   : > { %v966_v47 = vpop.f32.mrf.mxu3 }
 0x28e   : > { %v972_v48 = vsel %vm948_vm7, %v966_v47, -inf }
 0x28f   : > { %973 = vmax.xlane.f32.xlu2 %v972_v48 }
 0x292   : > { %v1071_v49 = vpop.permute.xlu0 %1070 }
 0x293   : > { %1083 = vmatpush.bf16.msrb.mxu0 %v1071_v49 }
 0x297   : > { %1229 = vmatpush.bf16.msra.mxu0 %v1217_v50 }
 0x2a7   : > { %1096 = vrot.lane.b32.xlu2 %v947_v26, %s3161_s4 }
 0x2af   : > { %1094 = vrot.lane.b32.xlu2 %v942_v25, %s3161_s4 }
 0x2b7   : > { %1315 = vrot.lane.b32.xlu2 %v947_v26, %s3158_s16 }
 0x2bf   : > { %1388 = vrot.lane.b32.xlu2 %v947_v26, %s3160_s21 }
 0x2c7   : > { %1459 = vrot.lane.b32.xlu2 %v942_v25, %s3159_s27 }
 0x2cf   : > { %1143 = vrot.lane.b32.xlu2 %v3444_v33, %s3161_s4 }
 0x2fa   : > { %v971_v51 = vpop.xlane.xlu2 %970 }
 0x2fb   : > { %v975_v52 = vsub.f32 %v964_v43, %v971_v51 }
 0x2fd   : > { %v977_v53 = vmul.f32 1.442695, %v975_v52 }
 0x2ff   : > { %2751 = vpow2.f32 %v977_v53 }
 0x300   : > { %v3475_v54 = vpop.f32.mrf.mxu1 }
 0x301   : > { %v1264_v56 = vsel %vm948_vm7, %v3475_v54, -inf }
 0x302   : > { %v974_v55 = vpop.xlane.xlu2 %973  ;;  %1265 = vmax.xlane.f32.xlu1 %v1264_v56 }
 0x303   : > { %v976_v57 = vsub.f32 %v966_v47, %v974_v55 }
 0x305   : > { %v979_v58 = vmul.f32 1.442695, %v976_v57  ;;  %v3479_v59 = vpop.eup %2751 }
 0x306   : > { %v987_v0 = vpack.c.bf16 %v3479_v59, %v3479_v59 }
 0x307   : > { %2753 = vpow2.f32 %v979_v58 }
 0x308   : > { %v3481_v60 = vpop.f32.mrf.mxu1  ;;  %v991_v5 = vunpack.c.l.b16 %v987_v0 }
 0x309   : > { %v1267_v62 = vsel %vm948_vm7, %v3481_v60, -inf }
 0x30a   : > { %v1097_v61 = vpop.permute.xlu2 %1096  ;;  %1268 = vmax.xlane.f32.xlu0 %v1267_v62 }
 0x30b   : > { %v1102_v63 = vsel %vm948_vm7, %v1097_v61, 0 }
 0x30c   : > { %1111 = vmatpush.bf16.xpose.msrb.mxu2 %v1102_v63 }
 0x30d   : > { %v3488_v1 = vpop.eup %2753 }
 0x30e   : > { %v988_v3 = vpack.c.bf16 %v3488_v1, %v3488_v1 }
 0x310   : > { %v992_v6 = vunpack.c.l.b16 %v988_v3 }
 0x312   : > { %v1095_v7 = vpop.permute.xlu2 %1094  ;;  %v993_v8 = vpack.c.b16 %v992_v6, %v991_v5 }
 0x313   : > { %2323 = vmatmul.msk.bf16.vlgmr.msrb.gmra.mxu2 %vm948_vm7, %v1095_v7 }
 0x314   : > { %2320 = vmatmul.msk.bf16.vlgmr.msrb.gmra.mxu3 %vm948_vm7, %v993_v8 }
 0x315   : > { %1184 = vmatpush.bf16.xpose.msrb.mxu3 %v1175_v9 }
 0x31a   : > { %v1316_v10 = vpop.permute.xlu2 %1315 }
 0x31b   : > { %v1321_v14 = vsel %vm948_vm7, %v1316_v10, 0 }
 0x322   : > { %v1389_v12 = vpop.permute.xlu2 %1388 }
 0x323   : > { %v1394_v13 = vsel %vm948_vm7, %v1389_v12, 0 }
 0x324   : > { %2321 = vmatmul.msk.bf16.vlgmr.msra.gmra.mxu3 %vm948_vm7, %v1022_v36  ;;  %1403 = vmatpush.bf16.xpose.msra.mxu1 %v1394_v13 }
 0x325   : > { %1330 = vmatpush.bf16.xpose.msra.mxu3 %v1321_v14 }
 0x32a   : > { %v1460_v15 = vpop.permute.xlu2 %1459 }
 0x32b   : > { %2331 = vmatmul.msk.bf16.vlgmr.msra.gmra.mxu1 %vm948_vm7, %v1387_v46 }
 0x332   : > { %v1144_v16 = vpop.permute.xlu2 %1143 }
 0x333   : > { %1156 = vmatpush.bf16.msra.mxu2 %v1144_v16 }
 0x334   : > { %2325 = vmatmul.msk.bf16.vlgmr.msrb.gmra.mxu3 %vm948_vm7, %v3460_v38 }
 0x335   : > { %1476 = vmatpush.bf16.xpose.msrb.mxu3 %v1467_v17 }
 0x344   : > { %2329 = vmatmul.msk.bf16.vlgmr.msra.gmra.mxu3 %vm948_vm7, %v3463_v42 }
 0x354   : > { %2333 = vmatmul.msk.bf16.vlgmr.msrb.gmra.mxu3 %vm948_vm7, %v1460_v15 }
 0x375   : > { %v1266_v45 = vpop.xlane.xlu1 %1265 }
 0x376   : > { %v1270_v51 = vsub.f32 %v3475_v54, %v1266_v45  ;;  %v984_v45 = vsel %vm948_vm7, %v3488_v1, 0.0 }
 0x378   : > { %v1272_v55 = vmul.f32 1.442695, %v1270_v51 }
 0x37d   : > { %v1269_v56 = vpop.xlane.xlu0 %1268 }
 0x37e   : > { %v1271_v5 = vsub.f32 %v3481_v60, %v1269_v56 }
 0x380   : > { %v1274_v13 = vmul.f32 1.442695, %v1271_v5 }
 0x396   : > { %v1113_v19 = vpop.f32.mrf.mxu2 }
 0x397   : > { %v3505_v18 = vpop.f32.mrf.mxu3  ;;  %v1118_v20 = vsel %vm948_vm7, %v1113_v19, -inf }
 0x398   : > { %1119 = vmax.xlane.f32.xlu2 %v1118_v20 }
 0x39e   : > { %v1115_v21 = vpop.f32.mrf.mxu2 }
 0x39f   : > { %v3508_v22 = vpop.f32.mrf.mxu3  ;;  %v1121_v23 = vsel %vm948_vm7, %v1115_v21, -inf }
 0x3a0   : > { %1122 = vmax.xlane.f32.xlu1 %v1121_v23 }
 0x3a7   : > { %v1040_v24 = vpop.f32.mrf.mxu3 }
 0x3a8   : > { %v1405_v25 = vpop.f32.mrf.mxu1  ;;  %v1045_v26 = vsel %vm948_vm7, %v1040_v24, -inf }
 0x3a9   : > { %1046 = vmax.xlane.f32.xlu1 %v1045_v26  ;;  %v1410_v27 = vsel %vm948_vm7, %v1405_v25, -inf }
 0x3aa   : > { %1411 = vmax.xlane.f32.xlu2 %v1410_v27 }
 0x3af   : > { %v3513_v28 = vpop.f32.mrf.mxu3 }
 0x3b0   : > { %v1048_v29 = vsel %vm948_vm7, %v3513_v28, -inf  ;;  %v3543_v42 = vpop.f32.mrf.mxu1 }
 0x3b1   : > { %1049 = vmax.xlane.f32.xlu0 %v1048_v29  ;;  %v1413_v43 = vsel %vm948_vm7, %v3543_v42, -inf }
 0x3b7   : > { %v3517_v30 = vpop.f32.mrf.mxu3 }
 0x3b8   : > { %v1191_v41 = vsel %vm948_vm7, %v3517_v30, -inf }
 0x3bf   : > { %v3519_v31 = vpop.f32.mrf.mxu3 }
 0x3c0   : > { %v1194_v32 = vsel %vm948_vm7, %v3519_v31, -inf }
 0x3c1   : > { %1195 = vmax.xlane.f32.xlu1 %v1194_v32 }
 0x3c2   : > { %1362 = vrot.lane.b32.xlu2 %v3444_v33, %s3158_s16 }
 0x3c5   : > { %1289 = vrot.lane.b32.xlu0 %v3444_v33, %s3157_s6 }
 0x3c7   : > { %v3527_v34 = vpop.f32.mrf.mxu3 }
 0x3c8   : > { %v1337_v44 = vsel %vm948_vm7, %v3527_v34, -inf }
 0x3cf   : > { %v3529_v35 = vpop.f32.mrf.mxu3 }
 0x3d0   : > { %v1340_v36 = vsel %vm948_vm7, %v3529_v35, -inf }
 0x3d1   : > { %1341 = vmax.xlane.f32.xlu1 %v1340_v36 }
 0x3d7   : > { %v3533_v37 = vpop.f32.mrf.mxu3 }
 0x3d8   : > { %v1483_v38 = vsel %vm948_vm7, %v3533_v37, -inf }
 0x3d9   : > { %1484 = vmax.xlane.f32.xlu1 %v1483_v38 }
 0x3df   : > { %v3537_v39 = vpop.f32.mrf.mxu3 }
 0x3e0   : > { %v1486_v40 = vsel %vm948_vm7, %v3537_v39, -inf }
 0x3e1   : > { %1487 = vmax.xlane.f32.xlu1 %v1486_v40 }
 0x3eb   : > { %1192 = vmax.xlane.f32.xlu2 %v1191_v41 }
 0x3ef   : > { %1414 = vmax.xlane.f32.xlu0 %v1413_v43 }
 0x3f3   : > { %1338 = vmax.xlane.f32.xlu2 %v1337_v44 }
 0x3fa   : > { %1435 = vrot.lane.b32.xlu1 %v3444_v33, %s3160_s21 }
 0x40b   : > { %1508 = vrot.lane.b32.xlu2 %v3444_v33, %s3159_s27  ;;  %v1120_v46 = vpop.xlane.xlu2 %1119 }
 0x40c   : > { %v1124_v47 = vsub.f32 %v1113_v19, %v1120_v46 }
 0x40e   : > { %v1126_v48 = vmul.f32 1.442695, %v1124_v47 }
 0x410   : > { %2755 = vpow2.f32 %v1126_v48 }
 0x413   : > { %v1123_v49 = vpop.xlane.xlu1 %1122 }
 0x414   : > { %v1125_v50 = vsub.f32 %v1115_v21, %v1123_v49 }
 0x416   : > { %v1128_v52 = vmul.f32 1.442695, %v1125_v50  ;;  %v2756_v53 = vpop.eup %2755 }
 0x417   : > { %v1136_v58 = vpack.c.bf16 %v2756_v53, %v2756_v53  ;;  %v1130_v10 = vsel %vm948_vm7, %v2756_v53, 0.0 }
 0x418   : > { %2757 = vpow2.f32 %v1128_v52 }
 0x419   : > { %2759 = vpow2.f32 %v1272_v55  ;;  %v1140_v54 = vunpack.c.l.b16 %v1136_v58 }
 0x41c   : > { %v1047_v57 = vpop.xlane.xlu1 %1046 }
 0x41d   : > { %v1051_v61 = vsub.f32 %v1040_v24, %v1047_v57  ;;  %v1412_v62 = vpop.xlane.xlu2 %1411 }
 0x41e   : > { %v2758_v63 = vpop.eup %2757  ;;  %v1416_v33 = vsub.f32 %v1405_v25, %v1412_v62 }
 0x41f   : > { %v1137_v0 = vpack.c.bf16 %v2758_v63, %v2758_v63  ;;  %v1133_v3 = vsel %vm948_vm7, %v2758_v63, 0.0  ;;  %v1053_v8 = vmul.f32 1.442695, %v1051_v61  ;;  %v2760_v12 = vpop.eup %2759 }
 0x420   : > { %v1418_v6 = vmul.f32 1.442695, %v1416_v33  ;;  %1134 = vadd.xlane.f32.xlu0 %v1133_v3  ;;  %v1276_v60 = vsel %vm948_vm7, %v2760_v12, 0.0  ;;  %v1282_v29 = vpack.c.bf16 %v2760_v12, %v2760_v12 }
 0x421   : > { %v1141_v7 = vunpack.c.l.b16 %v1137_v0 }
 0x422   : > { %2761 = vpow2.f32 %v1418_v6  ;;  %v1286_v41 = vunpack.c.l.b16 %v1282_v29 }
 0x423   : > { %v1142_v9 = vpack.c.b16 %v1141_v7, %v1140_v54  ;;  %2763 = vpow2.f32 %v1053_v8 }
 0x424   : > { %v1050_v14 = vpop.xlane.xlu0 %1049  ;;  %1131 = vadd.xlane.f32.xlu1 %v1130_v10  ;;  %2765 = vpow2.f32 %v1274_v13 }
 0x425   : > { %v1052_v15 = vsub.f32 %v3513_v28, %v1050_v14  ;;  %2324 = vmatmul.msk.bf16.vlgmr.msra.gmra.mxu2 %vm948_vm7, %v1142_v9  ;;  %v1363_v40 = vpop.permute.xlu2 %1362 }
 0x427   : > { %v1055_v16 = vmul.f32 1.442695, %v1052_v15 }
 0x428   : > { %v3560_v17 = vpop.eup %2761  ;;  %1277 = vadd.xlane.f32.xlu0 %v1276_v60 }
 0x429   : > { %2767 = vpow2.f32 %v1055_v16  ;;  %v2764_v19 = vpop.eup %2763  ;;  %v1422_v20 = vsel %vm948_vm7, %v3560_v17, 0.0 }
 0x42a   : > { %v2766_v21 = vpop.eup %2765  ;;  %v1063_v23 = vpack.c.bf16 %v2764_v19, %v2764_v19  ;;  %v1057_v47 = vsel %vm948_vm7, %v2764_v19, 0.0 }
 0x42b   : > { %v1283_v26 = vpack.c.bf16 %v2766_v21, %v2766_v21  ;;  %v1279_v32 = vsel %vm948_vm7, %v2766_v21, 0.0 }
 0x42c   : > { %1423 = vadd.xlane.f32.xlu1 %v1422_v20  ;;  %v1067_v27 = vunpack.c.l.b16 %v1063_v23 }
 0x42d   : > { %v1287_v38 = vunpack.c.l.b16 %v1283_v26 }
 0x42f   : > { %v3564_v24 = vpop.eup %2767  ;;  %v1288_v44 = vpack.c.b16 %v1287_v38, %v1286_v41 }
 0x430   : > { %v1064_v25 = vpack.c.bf16 %v3564_v24, %v3564_v24  ;;  %v1060_v38 = vsel %vm948_vm7, %v3564_v24, 0.0 }
 0x432   : > { %v1068_v28 = vunpack.c.l.b16 %v1064_v25 }
 0x434   : > { %1280 = vadd.xlane.f32.xlu2 %v1279_v32  ;;  %v1069_v36 = vpack.c.b16 %v1068_v28, %v1067_v27  ;;  %v1196_v46 = vpop.xlane.xlu1 %1195  ;;  %v981_v27 = vsel %vm948_vm7, %v3479_v59, 0.0 }
 0x435   : > { %v1198_v61 = vsub.f32 %v3519_v31, %v1196_v46 }
 0x436   : > { %2322 = vmatmul.msk.bf16.vlgmr.msrb.gmra.mxu0 %vm948_vm7, %v1069_v36 }
 0x437   : > { %1375 = vmatpush.bf16.msrb.mxu0 %v1363_v40  ;;  %v1290_v43 = vpop.permute.xlu0 %1289  ;;  %v1201_v63 = vmul.f32 1.442695, %v1198_v61 }
 0x438   : > { %1302 = vmatpush.bf16.msrb.mxu2 %v1290_v43 }
 0x43b   : > { %2328 = vmatmul.msk.bf16.vlgmr.msrb.gmra.mxu2 %vm948_vm7, %v1288_v44 }
 0x43c   : > { %985 = vadd.xlane.f32.xlu2 %v984_v45 }
 0x444   : > { %v1342_v48 = vpop.xlane.xlu1 %1341  ;;  %1058 = vadd.xlane.f32.xlu2 %v1057_v47 }
 0x445   : > { %v1344_v49 = vsub.f32 %v3529_v35, %v1342_v48 }
 0x447   : > { %v1347_v50 = vmul.f32 1.442695, %v1344_v49 }
 0x449   : > { %2769 = vpow2.f32 %v1347_v50 }
 0x44c   : > { %v1485_v51 = vpop.xlane.xlu1 %1484 }
 0x44d   : > { %v1489_v52 = vsub.f32 %v3533_v37, %v1485_v51 }
 0x44f   : > { %v2770_v53 = vpop.eup %2769  ;;  %v1491_v55 = vmul.f32 1.442695, %v1489_v52 }
 0x450   : > { %v1352_v56 = vsel %vm948_vm7, %v2770_v53, 0.0  ;;  %v1356_v28 = vpack.c.bf16 %v2770_v53, %v2770_v53 }
 0x451   : > { %2771 = vpow2.f32 %v1491_v55  ;;  %1353 = vadd.xlane.f32.xlu2 %v1352_v56 }
 0x452   : > { %v1360_v32 = vunpack.c.l.b16 %v1356_v28 }
 0x454   : > { %v1488_v1 = vpop.xlane.xlu1 %1487 }
 0x455   : > { %v1490_v57 = vsub.f32 %v3537_v39, %v1488_v1 }
 0x457   : > { %v2772_v58 = vpop.eup %2771  ;;  %v1493_v62 = vmul.f32 1.442695, %v1490_v57 }
 0x458   : > { %v1495_v35 = vsel %vm948_vm7, %v2772_v58, 0.0  ;;  %v1501_v43 = vpack.c.bf16 %v2772_v58, %v2772_v58 }
 0x459   : > { %2773 = vpow2.f32 %v1493_v62  ;;  %1496 = vadd.xlane.f32.xlu2 %v1495_v35 }
 0x45a   : > { %2775 = vpow2.f32 %v1201_v63  ;;  %v1505_v45 = vunpack.c.l.b16 %v1501_v43 }
 0x45e   : > { %v1193_v33 = vpop.xlane.xlu2 %1192 }
 0x45f   : > { %v2774_v37 = vpop.eup %2773  ;;  %v1197_v0 = vsub.f32 %v3517_v30, %v1193_v33  ;;  %v1428_v30 = vpack.c.bf16 %v3560_v17, %v3560_v17 }
 0x460   : > { %v1498_v3 = vsel %vm948_vm7, %v2774_v37, 0.0  ;;  %v2776_v31 = vpop.eup %2775  ;;  %v1502_v40 = vpack.c.bf16 %v2774_v37, %v2774_v37 }
 0x461   : > { %v1199_v5 = vmul.f32 1.442695, %v1197_v0  ;;  %1499 = vadd.xlane.f32.xlu1 %v1498_v3  ;;  %v1210_v9 = vpack.c.bf16 %v2776_v31, %v2776_v31  ;;  %v1206_v59 = vsel %vm948_vm7, %v2776_v31, 0.0 }
 0x462   : > { %v1415_v6 = vpop.xlane.xlu0 %1414  ;;  %v1506_v44 = vunpack.c.l.b16 %v1502_v40 }
 0x463   : > { %2777 = vpow2.f32 %v1199_v5  ;;  %v1417_v39 = vsub.f32 %v3543_v42, %v1415_v6  ;;  %v1214_v14 = vunpack.c.l.b16 %v1210_v9 }
 0x464   : > { %v1507_v46 = vpack.c.b16 %v1506_v44, %v1505_v45 }
 0x465   : > { %v1420_v54 = vmul.f32 1.442695, %v1417_v39 }
 0x466   : > { %v1339_v7 = vpop.xlane.xlu2 %1338 }
 0x467   : > { %2779 = vpow2.f32 %v1420_v54  ;;  %v1343_v8 = vsub.f32 %v3527_v34, %v1339_v7  ;;  %v1432_v34 = vunpack.c.l.b16 %v1428_v30 }
 0x469   : > { %v2778_v10 = vpop.eup %2777  ;;  %v1345_v12 = vmul.f32 1.442695, %v1343_v8 }
 0x46a   : > { %v1209_v13 = vpack.c.bf16 %v2778_v10, %v2778_v10  ;;  %v1203_v41 = vsel %vm948_vm7, %v2778_v10, 0.0 }
 0x46b   : > { %2781 = vpow2.f32 %v1345_v12 }
 0x46c   : > { %v1213_v15 = vunpack.c.l.b16 %v1209_v13  ;;  %v1436_v16 = vpop.permute.xlu1 %1435 }
 0x46d   : > { %v2780_v60 = vpop.eup %2779  ;;  %1448 = vmatpush.bf16.msra.mxu2 %v1436_v16 }
 0x46e   : > { %v1215_v42 = vpack.c.b16 %v1214_v14, %v1213_v15  ;;  %v1429_v19 = vpack.c.bf16 %v2780_v60, %v2780_v60  ;;  %v1509_v20 = vpop.permute.xlu2 %1508  ;;  %v1425_v21 = vsel %vm948_vm7, %v2780_v60, 0.0 }
 0x46f   : > { %1426 = vadd.xlane.f32.xlu0 %v1425_v21 }
 0x470   : > { %v1433_v23 = vunpack.c.l.b16 %v1429_v19  ;;  %2326 = vmatmul.msk.bf16.vlgmr.msra.gmra.mxu0 %vm948_vm7, %v1215_v42 }
 0x471   : > { %1521 = vmatpush.bf16.msra.mxu0 %v1509_v20  ;;  %v2782_v26 = vpop.eup %2781 }
 0x472   : > { %v1434_v25 = vpack.c.b16 %v1433_v23, %v1432_v34  ;;  %v1355_v17 = vpack.c.bf16 %v2782_v26, %v2782_v26  ;;  %v1349_v47 = vsel %vm948_vm7, %v2782_v26, 0.0 }
 0x474   : > { %2332 = vmatmul.msk.bf16.vlgmr.msra.gmra.mxu2 %vm948_vm7, %v1434_v25  ;;  %v1359_v29 = vunpack.c.l.b16 %v1355_v17 }
 0x476   : > { %v1361_v36 = vpack.c.b16 %v1360_v32, %v1359_v29 }
 0x477   : > { %982 = vadd.xlane.f32.xlu0 %v981_v27 }
 0x47f   : > { %1061 = vadd.xlane.f32.xlu0 %v1060_v38 }
 0x480   : > { %2330 = vmatmul.msk.bf16.vlgmr.msrb.gmra.mxu0 %vm948_vm7, %v1361_v36 }
 0x487   : > { %1204 = vadd.xlane.f32.xlu0 %v1203_v41 }
 0x48f   : > { %1207 = vadd.xlane.f32.xlu0 %v1206_v59 }
 0x490   : > { %2334 = vmatmul.msk.bf16.vlgmr.msra.gmra.mxu0 %vm948_vm7, %v1507_v46 }
 0x493   : > { %v1135_v24 = vpop.xlane.xlu0 %1134 }
 0x494   : > { %2783 = vrcp.f32 %v1135_v24 }
 0x497   : > { %1350 = vadd.xlane.f32.xlu0 %v1349_v47  ;;  %v1132_v48 = vpop.xlane.xlu1 %1131 }
 0x498   : > { %2785 = vrcp.f32 %v1132_v48 }
 0x49a   : > { %v2784_v50 = vpop.eup %2783 }
 0x49b   : > { %v1278_v1 = vpop.xlane.xlu0 %1277 }
 0x49c   : > { %2787 = vrcp.f32 %v1278_v1  ;;  %v2529_v1 = vld [vmem:[#allocation11 + $0x20] sm:$0xff] }
 0x49e   : > { %v2786_v51 = vpop.eup %2785 }
 0x49f   : > { %v1424_v19 = vpop.xlane.xlu1 %1423 }
 0x4a2   : > { %v2788_v61 = vpop.eup %2787 }
 0x4a7   : > { %v1281_v57 = vpop.xlane.xlu2 %1280 }
 0x4a8   : > { %v1158_v49 = vpop.f32.mrf.mxu2  ;;  %2789 = vrcp.f32 %v1281_v57  ;;  %v2528_v57 = vld [vmem:[#allocation11 + $0x18] sm:$0xff] }
 0x4a9   : > { %v1165_v53 = vmul.f32 %v2786_v51, %v1158_v49 }
 0x4ae   : > { %v2790_v62 = vpop.eup %2789 }
 0x4af   : > { %v3600_v5 = vpop.xlane.xlu2 %985 }
 0x4b0   : > { %v1160_v52 = vpop.f32.mrf.mxu2 }
 0x4b1   : > { %v1166_v55 = vmul.f32 %v2784_v50, %v1160_v52 }
 0x4b3   : > { %v2705_v56 = vpack.i.bf16 %v1166_v55, %v1165_v53  ;;  %v1085_v0 = vpop.f32.mrf.mxu0  ;;  %v2532_v53 = vld [vmem:[#allocation11 + $0x38] sm:$0xff]  ;;  %v2531_v55 = vld [vmem:[#allocation11 + $0x30] sm:$0xff] }
 0x4b4   : > { %1673 = vmatpush.bf16.msrb.mxu1 %v2532_v53 }
 0x4b5   : > { %2706 = vrot.lane.b32.xlu0 %v2705_v56, %s3160_s21  ;;  %v2530_v56 = vld [vmem:[#allocation11 + $0x28] sm:$0xff] }
 0x4b7   : > { %v1059_v54 = vpop.xlane.xlu2 %1058 }
 0x4b8   : > { %2791 = vrcp.f32 %v1059_v54  ;;  %1674 = vmatpush.bf16.msrb.mxu1 %v2531_v55  ;;  %v2427_v55 = vld [vmem:[#allocation13 + $0x78] sm:$0xf0] }
 0x4bb   : > { %v1087_v6 = vpop.f32.mrf.mxu0 }
 0x4bc   : > { %1675 = vmatpush.bf16.msrb.mxu1 %v2530_v56 }
 0x4be   : > { %v1304_v58 = vpop.f32.mrf.mxu2  ;;  %v2792_v9 = vpop.eup %2791 }
 0x4bf   : > { %v1311_v63 = vmul.f32 %v2788_v61, %v1304_v58  ;;  %v1092_v13 = vmul.f32 %v2792_v9, %v1085_v0  ;;  %v2527_v58 = vld [vmem:[#allocation11 + $0x10] sm:$0xff]  ;;  %v2526_v61 = vld [vmem:[#allocation11 + $0x8] sm:$0xff] }
 0x4c0   : > { %1676 = vmatpush.bf16.msrb.mxu1 %v2529_v1  ;;  %v2417_v1 = vld [vmem:[#allocation13 + $0x60] sm:$0xf] }
 0x4c4   : > { %v1354_v16 = vpop.xlane.xlu2 %1353  ;;  %1677 = vmatpush.bf16.msrb.mxu1 %v2528_v57  ;;  %v2546_v57 = vld [vmem:[#allocation13 + $0x64] sm:$0xf0] }
 0x4c6   : > { %v1306_v35 = vpop.f32.mrf.mxu2 }
 0x4c7   : > { %v1312_v33 = vmul.f32 %v2790_v62, %v1306_v35  ;;  %v2525_v62 = vld [vmem:[#allocation11] sm:$0xff] }
 0x4c8   : > { %1678 = vmatpush.bf16.msrb.mxu1 %v2527_v58  ;;  %v2545_v58 = vld [vmem:[#allocation13 + $0x64] sm:$0xf] }
 0x4c9   : > { %v2710_v37 = vpack.i.bf16 %v1312_v33, %v1311_v63 }
 0x4cb   : > { %2711 = vrot.lane.b32.xlu0 %v2710_v37, %s3157_s6 }
 0x4cc   : > { %v1497_v17 = vpop.xlane.xlu2 %1496  ;;  %1679 = vmatpush.bf16.msrb.mxu1 %v2526_v61  ;;  %v2418_v61 = vor.u32 %v2546_v57, %v2417_v1  ;;  %v2561_v1 = vld [vmem:[#allocation14 + $0x60] sm:$0xff] }
 0x4d0   : > { %1680 = vmatpush.bf16.msrb.mxu1 %v2525_v62  ;;  %v2419_v62 = vld [vmem:[#allocation13 + $0x68] sm:$0xf0] }
 0x4d4   : > { %v1500_v27 = vpop.xlane.xlu1 %1499 }
 0x4e2   : > { %v1427_v3 = vpop.xlane.xlu0 %1426 }
 0x4ea   : > { %v3602_v39 = vpop.xlane.xlu0 %982 }
 0x4ed   : > { %v1231_v31 = vpop.f32.mrf.mxu0 }
 0x4f2   : > { %v1062_v7 = vpop.xlane.xlu0 %1061 }
 0x4f3   : > { %2793 = vrcp.f32 %v1062_v7 }
 0x4f5   : > { %v1233_v8 = vpop.f32.mrf.mxu0 }
 0x4f7   : > { %v1450_v42 = vpop.f32.mrf.mxu2 }
 0x4f9   : > { %v2794_v10 = vpop.eup %2793 }
 0x4fa   : > { %v1205_v12 = vpop.xlane.xlu0 %1204  ;;  %v1093_v30 = vmul.f32 %v2794_v10, %v1087_v6 }
 0x4fb   : > { %2795 = vrcp.f32 %v1205_v12 }
 0x4fc   : > { %v2715_v14 = vpack.i.bf16 %v1093_v30, %v1092_v13 }
 0x4fd   : > { %v1377_v15 = vpop.f32.mrf.mxu0 }
 0x4fe   : > { %2716 = vrot.lane.b32.xlu1 %v2715_v14, %s3159_s27 }
 0x4ff   : > { %v1452_v29 = vpop.f32.mrf.mxu2 }
 0x501   : > { %v2796_v21 = vpop.eup %2795 }
 0x502   : > { %v1208_v60 = vpop.xlane.xlu0 %1207  ;;  %v1238_v25 = vmul.f32 %v2796_v21, %v1231_v31 }
 0x503   : > { %2797 = vrcp.f32 %v1208_v60 }
 0x504   : > { %2799 = vrcp.f32 %v1424_v19 }
 0x505   : > { %v1379_v20 = vpop.f32.mrf.mxu0  ;;  %2801 = vrcp.f32 %v1427_v3 }
 0x506   : > { %2803 = vrcp.f32 %v1354_v16 }
 0x509   : > { %v2798_v34 = vpop.eup %2797 }
 0x50a   : > { %v1351_v23 = vpop.xlane.xlu0 %1350  ;;  %v1239_v26 = vmul.f32 %v2798_v34, %v1233_v8  ;;  %v2800_v36 = vpop.eup %2799 }
 0x50b   : > { %2805 = vrcp.f32 %v1351_v23  ;;  %v2802_v38 = vpop.eup %2801  ;;  %v1457_v44 = vmul.f32 %v2800_v36, %v1450_v42 }
 0x50c   : > { %v2720_v28 = vpack.i.bf16 %v1239_v26, %v1238_v25  ;;  %2807 = vrcp.f32 %v1497_v17  ;;  %v2804_v40 = vpop.eup %2803  ;;  %v1458_v41 = vmul.f32 %v2802_v38, %v1452_v29 }
 0x50d   : > { %v1523_v32 = vpop.f32.mrf.mxu0  ;;  %2809 = vrcp.f32 %v1500_v27  ;;  %v1385_v45 = vmul.f32 %v2804_v40, %v1379_v20 }
 0x50e   : > { %2721 = vrot.lane.b32.xlu2 %v2720_v28, %s3158_s16  ;;  %v2730_v47 = vpack.i.bf16 %v1458_v41, %v1457_v44  ;;  %2811 = vrcp.f32 %v3600_v5  ;;  %s2565_s16 = sshll.u32 %s3267_s23, 3  ;;  %s2045_s23 = scalar_lea.sflag [#allocation4], %s3388_s1 }
 0x50f   : > { %2813 = vrcp.f32 %v3602_v39 }
 0x511   : > { %v2806_v43 = vpop.eup %2805 }
 0x512   : > { %v1384_v46 = vmul.f32 %v2806_v43, %v1377_v15  ;;  %v2808_v59 = vpop.eup %2807 }
 0x513   : > { %v2810_v48 = vpop.eup %2809  ;;  %v1530_v50 = vmul.f32 %v2808_v59, %v1523_v32 }
 0x514   : > { %v2725_v24 = vpack.i.bf16 %v1385_v45, %v1384_v46  ;;  %v2812_v63 = vpop.eup %2811 }
 0x515   : > { %v1525_v49 = vpop.f32.mrf.mxu0  ;;  %v2814_v33 = vpop.eup %2813  ;;  %v1020_v6 = vmul.f32 %v2812_v63, %v3508_v22  ;;  %v2409_v63 = vld [vmem:[#allocation13 + $0x50] sm:$0xf] }
 0x516   : > { %v1531_v51 = vmul.f32 %v2810_v48, %v1525_v49  ;;  %2731 = vrot.lane.b32.xlu2 %v2730_v47, %s3161_s4  ;;  %2726 = vrot.lane.b32.xlu1 %v2725_v24, %s3156_s30  ;;  %v1019_v31 = vmul.f32 %v2814_v33, %v3505_v18  ;;  %v2544_v33 = vld [vmem:[#allocation13 + $0x54] sm:$0xf0]  ;;  %s3730_s4 = sld [smem:[#allocation29_spill]] }
 0x518   : > { %v2735_v52 = vpack.i.bf16 %v1531_v51, %v1530_v50  ;;  %v2425_v50 = vld [vmem:[#allocation13 + $0x70] sm:$0xf]  ;;  %v2548_v51 = vld [vmem:[#allocation13 + $0x74] sm:$0xf0] }
 0x519   : > { %v2426_v53 = vor.u32 %v2548_v51, %v2425_v50  ;;  %v2554_v51 = vld [vmem:[#allocation14 + $0x28] sm:$0xff] }
 0x51a   : > { %2736 = vrot.lane.b32.xlu0 %v2735_v52, %s3155_s28  ;;  %v2547_v52 = vld [vmem:[#allocation13 + $0x74] sm:$0xf] }
 0x51b   : > { %v2430_v56 = vor.u32 %v2547_v52, %v2427_v55  ;;  %1844 = vmatpush.bf16.msrb.mxu2 %v2426_v53  ;;  %v2562_v52 = vld [vmem:[#allocation14 + $0x68] sm:$0xff] }
 0x51c   : > { %s2056_s22 = scalar_lea.hbm %s3730_s4, %s2565_s16  ;;  %s3079_s30 = scalar_lea.hbm %s3730_s4, 16 }
 0x51d   : > { %1858 = vmatpush.bf16.msra.mxu3 %v2430_v56  ;;  %v2553_v56 = vld [vmem:[#allocation14 + $0x20] sm:$0xff]  ;;  %s2059_s29 = sshll.u32 %s2056_s22, 4  ;;  %s2060_s29 = int_to_ptr.hbm [resolvable:$true] %s2059_s29 }
 0x51e   : > { %s3073_s3 = sshra.s32 %s2060_s29, 4  ;;  %s3074_s3 = int_to_ptr.hbm [resolvable:$true] %s3073_s3 }
 0x51f   : > { %1845 = vmatpush.bf16.msrb.mxu2 %v2418_v61  ;;  %s3075_s24 = scalar_lea.hbm %s3074_s3, 8  ;;  %p3080_p12 = scmp.lt.s32.totalorder %s3074_s3, %s3730_s4 }
 0x520   : > { %p3076_p1 = scmp.ne.s32.totalorder %s3074_s3, %s3075_s24  ;;  %p3081_p8 = scmp.lt.s32.totalorder %s3079_s30, %s3075_s24 }
 0x522   : > { %p3077_p3 = pnand %p3076_p1, %p3354_p13  ;;  %p3082_p7 = por %p3081_p8, %p3080_p12 }
 0x524   : > { %p3078_p4 = pneg %p3077_p3 }
 0x526   : > { %p3083_p9 = pnand %p3082_p7, %p3078_p4 }
 0x527   : > { %v2707_v37 = vpop.permute.xlu0 %2706 }
 0x528   : > { %v2709_v9 = vunpack.i.h.bf16 %v2707_v37  ;;  %v2708_v5 = vunpack.i.l.bf16 %v2707_v37  ;;  %v2543_v37 = vld [vmem:[#allocation13 + $0x54] sm:$0xf] }
 0x53d   : > { %v2712_v10 = vpop.permute.xlu0 %2711 }
 0x53e   : > { %v2714_v22 = vunpack.i.h.bf16 %v2712_v10  ;;  %v2713_v16 = vunpack.i.l.bf16 %v2712_v10  ;;  %v2393_v10 = vld [vmem:[#allocation13 + $0x30] sm:$0xf] }
 0x568   : > { %v2722_v54 = vpop.permute.xlu2 %2721 }
 0x569   : > { %v2724_v13 = vunpack.i.h.bf16 %v2722_v54  ;;  %v2723_v30 = vunpack.i.l.bf16 %v2722_v54  ;;  %v2542_v54 = vld [vmem:[#allocation13 + $0x44] sm:$0xf0] }
 0x570   : > { %v2717_v35 = vpop.permute.xlu1 %2716  ;;  %v2732_v60 = vpop.permute.xlu2 %2731 }
 0x571   : > { %v2719_v0 = vunpack.i.h.bf16 %v2717_v35  ;;  %v2718_v3 = vunpack.i.l.bf16 %v2717_v35  ;;  %v2734_v25 = vunpack.i.h.bf16 %v2732_v60  ;;  %v2733_v26 = vunpack.i.l.bf16 %v2732_v60  ;;  %v2387_v60 = vld [vmem:[#allocation13 + $0x28] sm:$0xf0] }
 0x572   : > { %v2422_v35 = vor.u32 %v2545_v58, %v2419_v62 }
 0x573   : > { %v1589_v7 = vsel %vm948_vm7, %v1020_v6, %v2719_v0  ;;  %v1588_v8 = vsel %vm948_vm7, %v1019_v31, %v2718_v3  ;;  %v2410_v0 = vor.u32 %v2544_v33, %v2409_v63  ;;  %v2411_v3 = vld [vmem:[#allocation13 + $0x58] sm:$0xf0]  ;;  %v2401_v31 = vld [vmem:[#allocation13 + $0x40] sm:$0xf] }
 0x574   : > { %v1592_v39 = vsel %vm1590_vm8, %v1589_v7, %v2709_v9  ;;  %v1591_v12 = vsel %vm1590_vm8, %v1588_v8, %v2708_v5  ;;  %1859 = vmatpush.bf16.msra.mxu3 %v2422_v35  ;;  %v2414_v6 = vor.u32 %v2543_v37, %v2411_v3  ;;  %v2541_v7 = vld [vmem:[#allocation13 + $0x44] sm:$0xf]  ;;  %v2402_v8 = vor.u32 %v2542_v54, %v2401_v31  ;;  %v2403_v9 = vld [vmem:[#allocation13 + $0x48] sm:$0xf0] }
 0x575   : > { %v1594_v14 = vsel %vm1593_vm9, %v1591_v12, %v2723_v30  ;;  %v1595_v15 = vsel %vm1593_vm9, %v1592_v39, %v2724_v13  ;;  %1846 = vmatpush.bf16.msrb.mxu2 %v2410_v0  ;;  %v2406_v5 = vor.u32 %v2541_v7, %v2403_v9  ;;  %v2540_v39 = vld [vmem:[#allocation13 + $0x34] sm:$0xf0]  ;;  %v2539_v12 = vld [vmem:[#allocation13 + $0x34] sm:$0xf]  ;;  %v2395_v30 = vld [vmem:[#allocation13 + $0x38] sm:$0xf0] }
 0x576   : > { %v1597_v20 = vsel %vm1596_vm10, %v1594_v14, %v2713_v16  ;;  %v1598_v21 = vsel %vm1596_vm10, %v1595_v15, %v2714_v22  ;;  %v2394_v13 = vor.u32 %v2540_v39, %v2393_v10  ;;  %v2398_v14 = vor.u32 %v2539_v12, %v2395_v30  ;;  %v2385_v15 = vld [vmem:[#allocation13 + $0x20] sm:$0xf]  ;;  %v2538_v22 = vld [vmem:[#allocation13 + $0x24] sm:$0xf0]  ;;  %v2537_v16 = vld [vmem:[#allocation13 + $0x24] sm:$0xf] }
 0x577   : > { %v2742_v0 = vld [vmem:[%s3697_s7] ss:$0 sm:$0xff]  ;;  %v2560_v39 = vld [vmem:[#allocation14 + $0x58] sm:$0xff]  ;;  %v2551_v12 = vld [vmem:[#allocation14 + $0x10] sm:$0xff] }
 0x578   : > { %1860 = vmatpush.bf16.msra.mxu3 %v2414_v6  ;;  %v2743_v7 = vld [vmem:[%s3698_s8] ss:$0 sm:$0xff] }
 0x579   : > { %1847 = vmatpush.bf16.msrb.mxu2 %v2402_v8  ;;  %v2558_v30 = vld [vmem:[#allocation14 + $0x48] sm:$0xff] }
 0x57c   : > { %1861 = vmatpush.bf16.msra.mxu3 %v2406_v5 }
 0x57d   : > { %1848 = vmatpush.bf16.msrb.mxu2 %v2394_v13  ;;  %v2559_v13 = vld [vmem:[#allocation14 + $0x50] sm:$0xff] }
 0x580   : > { %1862 = vmatpush.bf16.msra.mxu3 %v2398_v14  ;;  %v2549_v14 = vld [vmem:[#allocation14] sm:$0xff] }
 0x588   : > { %v2727_v18 = vpop.permute.xlu1 %2726 }
 0x589   : > { %v2729_v42 = vunpack.i.h.bf16 %v2727_v18  ;;  %v2728_v19 = vunpack.i.l.bf16 %v2727_v18  ;;  %v2386_v18 = vor.u32 %v2538_v22, %v2385_v15  ;;  %v2557_v15 = vld [vmem:[#allocation14 + $0x40] sm:$0xff]  ;;  %v1758_v22 = vld [vmem:[%s3700_s10] sm:$0x3] }
 0x58b   : > { %v1600_v34 = vsel %vm1599_vm11, %v1597_v20, %v2728_v19  ;;  %v1601_v23 = vsel %vm1599_vm11, %v1598_v21, %v2729_v42  ;;  %v2390_v42 = vor.u32 %v2537_v16, %v2387_v60  ;;  %1849 = vmatpush.bf16.msrb.mxu2 %v2386_v18  ;;  %v2377_v19 = vld [vmem:[#allocation13 + $0x10] sm:$0xf]  ;;  %v2536_v20 = vld [vmem:[#allocation13 + $0x14] sm:$0xf0]  ;;  %v2535_v21 = vld [vmem:[#allocation13 + $0x14] sm:$0xf] }
 0x58c   : > { %v2737_v17 = vpop.permute.xlu0 %2736  ;;  %v1603_v29 = vsel %vm1602_vm12, %v1600_v34, %v2733_v26  ;;  %v1604_v32 = vsel %vm1602_vm12, %v1601_v23, %v2734_v25  ;;  %v2378_v34 = vor.u32 %v2536_v20, %v2377_v19  ;;  %v2379_v23 = vld [vmem:[#allocation13 + $0x18] sm:$0xf0]  ;;  %v2369_v25 = vld [vmem:[#allocation13] sm:$0xf]  ;;  %v2534_v26 = vld [vmem:[#allocation13 + $0x4] sm:$0xf0] }
 0x58d   : > { %v2739_v27 = vunpack.i.h.bf16 %v2737_v17  ;;  %v2738_v28 = vunpack.i.l.bf16 %v2737_v17  ;;  %1863 = vmatpush.bf16.msra.mxu3 %v2390_v42  ;;  %v1760_v60 = vperm.slane %v1758_v22, 0  ;;  %v1761_v42 = vperm.slane %v1758_v22, 1 }
 0x58f   : > { %v1606_v36 = vsel %vm1605_vm13, %v1603_v29, %v2738_v28  ;;  %v1607_v38 = vsel %vm1605_vm13, %v1604_v32, %v2739_v27  ;;  %v2382_v27 = vor.u32 %v2535_v21, %v2379_v23  ;;  %v2533_v28 = vld [vmem:[#allocation13 + $0x4] sm:$0xf]  ;;  %v2371_v29 = vld [vmem:[#allocation13 + $0x8] sm:$0xf0]  ;;  %1850 = vmatpush.bf16.msrb.mxu2 %v2378_v34 }
 0x590   : > { %v1608_v40 = vpack.c.bf16 %v1607_v38, %v1606_v36  ;;  %v2370_v36 = vor.u32 %v2534_v26, %v2369_v25  ;;  %v2374_v38 = vor.u32 %v2533_v28, %v2371_v29 }
 0x591   : > { %1864 = vmatpush.bf16.msra.mxu3 %v2382_v27 }
 0x592   : > { %1681 = vmatmul.bf16.vlgmr.msrb.gmra.mxu1 %v1608_v40 }
 0x593   : > { %1851 = vmatpush.bf16.msrb.mxu2 %v2370_v36 }
 0x595   : > { %1865 = vmatpush.bf16.msra.mxu3 %v2374_v38 }
 0x60f   : > { %v1682_v41 = vpop.f32.mrf.mxu1 }
 0x610   : > { %v3616_v43 = vadd.f32 %v1682_v41, %v3414_v2  ;;  %v2556_v41 = vld [vmem:[#allocation14 + $0x38] sm:$0xff] }
 0x611   : > { %2010 = vmatpush.bf16.msrb.mxu0 %v2556_v41 }
 0x612   : > { %1691 = vadd.xlane.f32.xlu1 %v3616_v43 }
 0x617   : > { %v1684_v44 = vpop.f32.mrf.mxu1 }
 0x618   : > { %v3620_v45 = vadd.f32 %v1684_v44, %v3417_v4  ;;  %v2564_v44 = vld [vmem:[#allocation14 + $0x78] sm:$0xff] }
 0x619   : > { %2024 = vmatpush.bf16.msra.mxu1 %v2564_v44 }
 0x61a   : > { %1693 = vadd.xlane.f32.xlu2 %v3620_v45 }
 0x685   : > { %v1692_v46 = vpop.xlane.xlu1 %1691 }
 0x686   : > { %v1695_v59 = vmul.f32 %v1692_v46, %v3420_v11 }
 0x688   : > { %v3625_v47 = vsub.f32 %v3616_v43, %v1695_v59 }
 0x68a   : > { %v1699_v24 = vmul.f32 %v3625_v47, %v3625_v47 }
 0x68c   : > { %1701 = vadd.xlane.f32.xlu0 %v1699_v24  ;;  %v2555_v24 = vld [vmem:[#allocation14 + $0x30] sm:$0xff] }
 0x68d   : > { %v1694_v2 = vpop.xlane.xlu2 %1693  ;;  %2011 = vmatpush.bf16.msrb.mxu0 %v2555_v24 }
 0x68e   : > { %v1696_v48 = vmul.f32 %v1694_v2, %v3420_v11  ;;  %v2563_v2 = vld [vmem:[#allocation14 + $0x70] sm:$0xff] }
 0x68f   : > { %2025 = vmatpush.bf16.msra.mxu1 %v2563_v2 }
 0x690   : > { %v3631_v49 = vsub.f32 %v3620_v45, %v1696_v48 }
 0x691   : > { %2012 = vmatpush.bf16.msrb.mxu0 %v2554_v51 }
 0x692   : > { %v1700_v4 = vmul.f32 %v3631_v49, %v3631_v49 }
 0x693   : > { %2026 = vmatpush.bf16.msra.mxu1 %v2562_v52 }
 0x694   : > { %1703 = vadd.xlane.f32.xlu1 %v1700_v4 }
 0x695   : > { %2013 = vmatpush.bf16.msrb.mxu0 %v2553_v56 }
 0x697   : > { %2027 = vmatpush.bf16.msra.mxu1 %v2561_v1 }
 0x69b   : > { %2028 = vmatpush.bf16.msra.mxu1 %v2560_v39 }
 0x69f   : > { %2029 = vmatpush.bf16.msra.mxu1 %v2559_v13 }
 0x6a3   : > { %2030 = vmatpush.bf16.msra.mxu1 %v2558_v30 }
 0x6a7   : > { %2031 = vmatpush.bf16.msra.mxu1 %v2557_v15 }
 0x6ff   : > { %v1702_v17 = vpop.xlane.xlu0 %1701 }
 0x700   : > { %v1705_v32 = vmul.f32 %v1702_v17, %v3420_v11 }
 0x702   : > { %v1707_v40 = vadd.f32 1e-06, %v1705_v32 }
 0x704   : > { %2815 = vrsqrt.f32 %v1707_v40  ;;  %vm1715_vm15 = vweird.f32 %v1707_v40 }
 0x707   : > { %v1704_v46 = vpop.xlane.xlu1 %1703 }
 0x708   : > { %v1706_v59 = vmul.f32 %v1704_v46, %v3420_v11 }
 0x70a   : > { %v2816_v48 = vpop.eup %2815  ;;  %v1708_v4 = vadd.f32 1e-06, %v1706_v59 }
 0x70b   : > { %v1710_v50 = vmul.f32 %v2816_v48, %v1707_v40  ;;  %vm1716_vm14 = vweird.f32 %v2816_v48  ;;  %v2744_v40 = vld [vmem:[%s3702_s12] ss:$0 sm:$0xff] }
 0x70c   : > { %2817 = vrsqrt.f32 %v1708_v4  ;;  %vm1717_vm0 = vmor %vm1715_vm15, %vm1716_vm14  ;;  %vm1725_vm2 = vweird.f32 %v1708_v4 }
 0x70d   : > { %v1711_v53 = vmul.f32 %v2816_v48, %v1710_v50 }
 0x70f   : > { %v1712_v55 = vmul.f32 0.5, %v1711_v53 }
 0x711   : > { %v1713_v57 = vsub.f32 1.5, %v1712_v55 }
 0x712   : > { %v2818_v11 = vpop.eup %2817 }
 0x713   : > { %v1714_v58 = vmul.f32 %v2816_v48, %v1713_v57  ;;  %v1720_v61 = vmul.f32 %v2818_v11, %v1708_v4  ;;  %vm1726_vm1 = vweird.f32 %v2818_v11 }
 0x714   : > { %vm1727_vm3 = vmor %vm1725_vm2, %vm1726_vm1 }
 0x715   : > { %v1721_v62 = vmul.f32 %v2818_v11, %v1720_v61  ;;  %v1718_v35 = vsel %vm1717_vm0, %v2816_v48, %v1714_v58 }
 0x716   : > { %v1729_v37 = vmul.f32 %v1718_v35, %v3625_v47  ;;  %v2552_v47 = vld [vmem:[#allocation14 + $0x18] sm:$0xff] }
 0x717   : > { %v1722_v63 = vmul.f32 0.5, %v1721_v62  ;;  %2014 = vmatpush.bf16.msrb.mxu0 %v2552_v47 }
 0x718   : > { %v1734_v54 = vmul.f32 %v2742_v0, %v1729_v37 }
 0x719   : > { %v1723_v33 = vsub.f32 1.5, %v1722_v63 }
 0x71a   : > { %v1739_v9 = vadd.f32 %v2743_v7, %v1734_v54 }
 0x71b   : > { %v1724_v3 = vmul.f32 %v2818_v11, %v1723_v33  ;;  %2015 = vmatpush.bf16.msrb.mxu0 %v2551_v12 }
 0x71d   : > { %v1728_v6 = vsel %vm1727_vm3, %v2818_v11, %v1724_v3 }
 0x71e   : > { %v1730_v31 = vmul.f32 %v1728_v6, %v3631_v49  ;;  %v2550_v49 = vld [vmem:[#allocation14 + $0x8] sm:$0xff] }
 0x71f   : > { %2016 = vmatpush.bf16.msrb.mxu0 %v2550_v49 }
 0x720   : > { %v1735_v8 = vmul.f32 %v2742_v0, %v1730_v31 }
 0x722   : > { %v1740_v5 = vadd.f32 %v2743_v7, %v1735_v8 }
 0x723   : > { %2017 = vmatpush.bf16.msrb.mxu0 %v2549_v14 }
 0x724   : > { %v1741_v10 = vpack.c.bf16 %v1740_v5, %v1739_v9 }
 0x726   : > { %1852 = vmatmul.bf16.vlgmr.msrb.gmra.mxu2 %v1741_v10  ;;  %1866 = vmatmul.bf16.vlgmr.msra.gmra.mxu3 %v1741_v10 }
 0x7a9   : > { %v1853_v16 = vpop.f32.mrf.mxu2  ;;  %v1867_v18 = vpop.f32.mrf.mxu3 }
 0x7aa   : > { %v1854_v19 = vadd.f32 %v1853_v16, %v1760_v60  ;;  %v1868_v20 = vadd.f32 %v1867_v18, %v1761_v42 }
 0x7ac   : > { %v1872_v26 = vmax.f32 %v1854_v19, 0.0  ;;  %v1873_v17 = vmax.f32 %v1868_v20, 0.0 }
 0x7b1   : > { %v1855_v21 = vpop.f32.mrf.mxu2  ;;  %v1869_v34 = vpop.f32.mrf.mxu3 }
 0x7b2   : > { %v1856_v23 = vadd.f32 %v1855_v21, %v1760_v60  ;;  %v1870_v25 = vadd.f32 %v1869_v34, %v1761_v42 }
 0x7b4   : > { %v1874_v27 = vmax.f32 %v1856_v23, 0.0  ;;  %v1875_v28 = vmax.f32 %v1870_v25, 0.0 }
 0x7b6   : > { %v1876_v29 = vpack.c.bf16 %v1874_v27, %v1872_v26  ;;  %v1877_v32 = vpack.c.bf16 %v1875_v28, %v1873_v17 }
 0x7b8   : > { %2018 = vmatmul.bf16.vlgmr.msrb.gmra.mxu0 %v1876_v29  ;;  %2032 = vmatmul.bf16.vlgmr.msra.gmra.mxu1 %v1877_v32 }
 0x835   : > { %v2019_v36 = vpop.f32.mrf.mxu0  ;;  %v2033_v38 = vpop.f32.mrf.mxu1 }
 0x836   : > { %v2020_v41 = vadd.f32 %v2744_v40, %v2019_v36 }
 0x838   : > { %v2034_v46 = vadd.f32 %v2033_v38, %v2020_v41 }
 0x83a   : > { %v2038_v48 = vadd.f32 %v2034_v46, %v3616_v43 }
 0x83d   : > { %v2021_v44 = vpop.f32.mrf.mxu0  ;;  %v2035_v24 = vpop.f32.mrf.mxu1 }
 0x83e   : > { %v2022_v59 = vadd.f32 %v2744_v40, %v2021_v44 }
 0x840   : > { %v2036_v2 = vadd.f32 %v2035_v24, %v2022_v59 }
 0x842   : > { %v2039_v4 = vadd.f32 %v2036_v2, %v3620_v45 }
 0x844   : > { %v2573_v50 = vpack.c.bf16 %v2039_v4, %v2038_v48 }
 0x846   : > { %2574 = vst [vmem:[%s628_s25] sm:$0xff] %v2573_v50  }
 0x847   : > { %3086 = shalt.err (!%p3083_p9)
}
 0x848   : > { %s3162_s1 = smov 4  }
 0x849   : > { %2605 = dma.vmem_to_hbm [thread:$0]  (%p3354_p13), %s2058_s9, 128, %s2060_s29, %s2045_s23, %s3157_s6, %s3157_s6, %s3162_s1  }
 0x84a PF: > { %s2074_s21 = sand.u32 1, %s3129_s18   ;;  %p3731_p10 = scmp.ge.s32.totalorder %s3141_s13, 2 }
 0x84b   : > { %s2075_s22 = scalar_lea.sflag [#allocation4], %s2074_s21 }
 0x84c   : > { %p2634_p11 = pnand %p3731_p10, %p3359_p5 }
 0x84e   : > { %p2635_p0 = pneg %p2634_p11 }
 0x850   : > { %3124 = dma.done.wait (%p2635_p0), %s2075_s22, 128  }
 0x851   : > { %3126 = vsyncadd (%p2635_p0), %s2075_s22, 4294967168  ;;  %p32_p2 = scmp.ge.s32.totalorder %s3334_s14, 4   ;;  %s3732_s18 = smov %s3133_s19 }
 0x852   : > { %s3733_s19 = smov %s3137_s20  ;;  %s3734_s20 = smov %s3346_s15 }
 0x853   : > { %s3735_s13 = smov %s3334_s14  ;;  %34 = sbr.rel (!%p32_p2) target bundleno = 17 (0x11), region = 153 }
 0x858   :  { %2081 = vsyncpa [#allocation3], 1 }
 0x859   :  { %2083 = vsyncpa [#allocation3 + $0x1], 1 }
 0x85a   :  { %2084 = vsyncpa [#allocation6], 1 }
 0x85b   :  { %2085 = vsyncpa [#allocation9], 1 }
 0x85c   :  { %2086 = vsyncpa [#allocation12], 1 }
 0x85d   :  { %2087 = vsyncpa [#allocation15], 1 }
 0x85e   :  { %2088 = vsyncpa [#allocation4], 1 }
 0x85f   :  { %2090 = vsyncpa [#allocation4 + $0x1], 1 }

</bundles_post_ra>
